<compile_context>
chip_gen: v7x
topology: tpu7x:2x2x1
jax: 0.10.0
libtpu: 0.0.40
codegen_flags: <defaults>
</compile_context>

<pallas_src>
import functools
import math

import jax
import jax.numpy as jnp
from jax.experimental import pallas as pl
from jax.experimental.pallas import tpu as pltpu

_LOG_CLAMP = -100.0          # torch.nn.BCELoss clamps each log term at -100
_PI = math.pi

_LANE = 128                  # lanes per vreg
_SUB = 8                     # sublanes per compute sub-tile (1 vreg per value)
_MAX_BLOCK_SUBLANES = 256    # sublanes per DMA block (32768 samples / grid step)

# ---- channel maps ------------------------------------------------------------
_NPRED = 9                   # predicted parameters  [psi, theta, mu] x 3

_TRUE = 0                    # 9   true parameters
_V = 9                       # 12  VX/VY/VZ, 4 channels each: re00, re01, re11, im01
_EXP = 21                    # 18  true expectation values, row = o*6 + a*2 + k
_G = 39                      # 8   control unitary: re00,re01,re10,re11, im00,im01,im10,im11
_NSTAT = 47

# per-kind normalization (offset, scale) for psi / theta / mu (baked-in constants)
_NORM = ((_PI / 2.0, 1.0 / _PI), (0.0, 2.0 / _PI), (0.0, 1.0))


# --------------------------------- kernel ------------------------------------
def _combined_loss_kernel(pred_ref, stat_ref, out_ref, *, batch_size, block_sublanes):
    # pred_ref: (9,  TB1, 128) f32    stat_ref: (47, TB1, 128) f32
    # out_ref:  (1, 24, 128) f32 — rows 0:8 param, 8:16 trace, 16:24 expectation
    n_sub = block_sublanes // _SUB
    block_base = pl.program_id(0) * block_sublanes

    # local sample index within one (8,128) sub-tile (hoisted; reused every iter)
    sub_iota = jax.lax.broadcasted_iota(jnp.int32, (_SUB, _LANE), 0)
    lane_iota = jax.lax.broadcasted_iota(jnp.int32, (_SUB, _LANE), 1)
    local_idx = sub_iota * _LANE + lane_iota

    def norm(kind, x):                      # baked-in normalization constants
        off, scl = _NORM[kind]
        if off != 0.0:
            x = x + off
        if scl != 1.0:
            x = x * scl
        return x

    def bce(p, t):                          # elementwise BCE with torch's -100 clamp
        lp = jnp.maximum(jnp.log(p), _LOG_CLAMP)
        lq = jnp.maximum(jnp.log(1.0 - p), _LOG_CLAMP)
        return -(t * lp + (1.0 - t) * lq)

    def body(s, carry):
        param_acc, trace_acc, exp_acc = carry
        row0 = pl.multiple_of(s * _SUB, _SUB)

        def pch(c):                         # (8,128) tile of one predicted channel
            return pred_ref[c, pl.ds(row0, _SUB), :]

        def sch(c):                         # (8,128) tile of one static channel
            return stat_ref[c, pl.ds(row0, _SUB), :]

        # validity mask (samples are laid out sublane-major, lane-minor)
        idx = (block_base + row0) * _LANE + local_idx
        mask = jnp.where(idx < batch_size, 1.0, 0.0).astype(jnp.float32)

        # ---- parameter BCE (normalized predicted params reused below) --------
        pn = [norm(c % 3, pch(c)) for c in range(_NPRED)]
        p_part = jnp.zeros((_SUB, _LANE), jnp.float32)
        for c in range(_NPRED):
            p_part = p_part + bce(pn[c], norm(c % 3, sch(_TRUE + c)))

        # ---- shared conj(G)*G products for the Hermitian A_o = G^dag s_o G ---
        g00r, g01r, g10r, g11r = sch(_G + 0), sch(_G + 1), sch(_G + 2), sch(_G + 3)
        g00i, g01i, g10i, g11i = sch(_G + 4), sch(_G + 5), sch(_G + 6), sch(_G + 7)

        def cmul_conj(ar, ai, br, bi):      # conj(a) * b
            return ar * br + ai * bi, ar * bi - ai * br

        qar, qai = cmul_conj(g00r, g00i, g10r, g10i)   # conj(g00) g10
        qbr, qbi = cmul_conj(g01r, g01i, g11r, g11i)   # conj(g01) g11
        qcr, qci = cmul_conj(g00r, g00i, g11r, g11i)   # conj(g00) g11
        qdr, qdi = cmul_conj(g10r, g10i, g01r, g01i)   # conj(g10) g01
        qer, qei = cmul_conj(g00r, g00i, g01r, g01i)   # conj(g00) g01
        qfr, qfi = cmul_conj(g10r, g10i, g11r, g11i)   # conj(g10) g11
        n00 = g00r * g00r + g00i * g00i
        n10 = g10r * g10r + g10i * g10i
        n01 = g01r * g01r + g01i * g01i
        n11 = g11r * g11r + g11i * g11i

        # Hermitian A_o: (a00, a11, Re a01, Im a01); diagonals are exactly real.
        A = ((2.0 * qar, 2.0 * qbr, qcr + qdr, qci + qdi),     # sigma_x
             (2.0 * qai, 2.0 * qbi, qci - qdi, qdr - qcr),     # sigma_y
             (n00 - n10, n01 - n11, qer - qfr, qei - qfi))     # sigma_z

        t_part = jnp.zeros((_SUB, _LANE), jnp.float32)
        e_part = jnp.zeros((_SUB, _LANE), jnp.float32)
        for o in range(3):
            # normalized predicted params feed the VO construction (torch mutates
            # y_pred_parameters in place before building the VO operators)
            psi, theta, mu = pn[3 * o + 0], pn[3 * o + 1], pn[3 * o + 2]
            c2 = jnp.cos(2.0 * theta)              # each transcendental once
            s2 = jnp.sin(2.0 * theta)
            cp = jnp.cos(psi)
            sp = jnp.sin(psi)
            mc = mu * c2
            ms = mu * s2
            msc = ms * cp
            mss = ms * sp
            # V_est = [[mc, msc + i*mss], [msc - i*mss, -mc]]  (Hermitian, traceless)

            # -- trace loss: 0.5 * nuclear norm of the Hermitian 2x2 difference
            vb = _V + 4 * o                        # [re00, re01, re11, im01]
            d00 = mc - sch(vb + 0)
            ar_ = msc - sch(vb + 1)
            d11 = (-mc) - sch(vb + 2)
            br_ = mss - sch(vb + 3)
            h = 0.5 * (d00 + d11)
            r = jnp.sqrt(0.25 * (d00 - d11) ** 2 + ar_ * ar_ + br_ * br_)
            t_part = t_part + 0.5 * (jnp.abs(h + r) + jnp.abs(h - r))

            # -- expectation values via closed-form Hermitian traces -----------
            a0, a1, abr, abi = A[o]
            asum = a0 + a1
            adif = a0 - a1
            tr_ = mc * adif + 2.0 * (msc * abr + mss * abi)    # Re Tr(V A)
            tra = (msc * asum,                                 # Re Tr(V A sx)
                   -(mss * asum),                              # Re Tr(V A sy)
                   mc * asum)                                  # Re Tr(V A sz)
            for a_i in range(3):
                for k, sgn in enumerate((1.0, -1.0)):
                    p = 0.5 * (0.5 * (tr_ + sgn * tra[a_i]) + 1.0)
                    t = 0.5 * (sch(_EXP + o * 6 + a_i * 2 + k) + 1.0)
                    e_part = e_part + bce(p, t)

        return (param_acc + mask * p_part,
                trace_acc + mask * t_part,
                exp_acc + mask * e_part)

    zero8 = jnp.zeros((_SUB, _LANE), jnp.float32)
    param_acc, trace_acc, exp_acc = jax.lax.fori_loop(
        0, n_sub, body, (zero8, zero8, zero8))

    out_ref[0, 0:_SUB, :] = param_acc
    out_ref[0, _SUB:2 * _SUB, :] = trace_acc
    out_ref[0, 2 * _SUB:3 * _SUB, :] = exp_acc


# --------------------------------- wrapper -----------------------------------
def _round_up(x, m):
    return ((x + m - 1) // m) * m


def _tiling(batch):
    b1 = max(1, -(-batch // _LANE))                     # sublanes needed
    tb1 = min(_MAX_BLOCK_SUBLANES, _round_up(b1, _SUB))
    b1p = _round_up(b1, tb1)
    return b1p, tb1, b1p // tb1


def _pack_channels(feats, b1p):
    """(B, C) f32 -> (C, b1p, 128) channel-major; batch split (sublane, lane)."""
    B = feats.shape[0]
    feats = jnp.pad(feats, ((0, b1p * _LANE - B), (0, 0)))
    return feats.T.reshape(feats.shape[1], b1p, _LANE)


def pack_static_inputs(true_parameters, VX_true, VY_true, VZ_true,
                       true_expectations, control_unitaries):
    """Channel-major pack of everything constant across training steps.

    Build this once per dataset/batch and reuse via combined_loss_packed() to
    avoid re-doing the concatenate+transpose (which otherwise moves more HBM
    bytes than the kernel itself) every call.
    """
    f32 = jnp.float32
    B = true_parameters.shape[0]
    b1p, _, _ = _tiling(B)

    def pack_v(m):   # Hermitian 2x2: only re00, re01, re11, im01 are used
        return jnp.stack([jnp.real(m[:, 0, 0]), jnp.real(m[:, 0, 1]),
                          jnp.real(m[:, 1, 1]), jnp.imag(m[:, 0, 1])],
                         axis=1).astype(f32)

    def pack_u(m):   # full complex 2x2: row-major re then row-major im
        flat = m.reshape(B, 4)
        return jnp.concatenate([jnp.real(flat), jnp.imag(flat)], axis=1).astype(f32)

    feats = jnp.concatenate([
        true_parameters.astype(f32),                                 # 9
        pack_v(VX_true), pack_v(VY_true), pack_v(VZ_true),           # 12
        true_expectations.astype(f32),                               # 18
        pack_u(control_unitaries),                                   # 8
    ], axis=1)                                                       # (B, 47)
    return _pack_channels(feats, b1p)


def combined_loss_packed(y_pred_parameters, static_packed, batch):
    """Loss from per-step predictions + a cached static pack (batch must be a
    static Python int, e.g. y_pred_parameters.shape[0])."""
    f32 = jnp.float32
    b1p, tb1, num_blocks = _tiling(batch)
    samples = b1p * _LANE

    pred_packed = _pack_channels(y_pred_parameters.astype(f32), b1p)  # (9,B1,128)

    kernel = functools.partial(_combined_loss_kernel,
                               batch_size=batch, block_sublanes=tb1)

    partials = pl.pallas_call(
        kernel,
        out_shape=jax.ShapeDtypeStruct((num_blocks, 3 * _SUB, _LANE), f32),
        grid_spec=pltpu.PrefetchScalarGridSpec(
            num_scalar_prefetch=0,
            grid=(num_blocks,),
            in_specs=[pl.BlockSpec((_NPRED, tb1, _LANE), lambda i: (0, i, 0)),
                      pl.BlockSpec((_NSTAT, tb1, _LANE), lambda i: (0, i, 0))],
            out_specs=pl.BlockSpec((1, 3 * _SUB, _LANE), lambda i: (i, 0, 0))),
        compiler_params=pltpu.CompilerParams(
            dimension_semantics=("parallel",),
            vmem_limit_bytes=48 * 1024 * 1024),
        cost_estimate=pl.CostEstimate(
            flops=int(500 * samples),
            transcendentals=int(69 * samples),
            bytes_accessed=int(4 * ((_NPRED + _NSTAT) * samples
                                    + 3 * _SUB * _LANE * num_blocks))),
    )(pred_packed, static_packed)

    # final cross-block / cross-lane reduction; global-B divisors applied once
    sums = jnp.sum(partials.reshape(num_blocks, 3, _SUB, _LANE), axis=(0, 2, 3))
    parameter_loss = sums[0] / (9.0 * batch)
    trace_loss = sums[1] / (3.0 * batch)
    expectation_loss = sums[2] / (18.0 * batch)
    return parameter_loss + trace_loss + expectation_loss


def combined_loss(y_pred_parameters, true_parameters, VX_true, VY_true, VZ_true,
                  true_expectations, control_unitaries):
    """Drop-in equivalent of CombinedLoss.forward (packs everything per call)."""
    static_packed = pack_static_inputs(true_parameters, VX_true, VY_true, VZ_true,
                                       true_expectations, control_unitaries)
    return combined_loss_packed(y_pred_parameters, static_packed,
                                y_pred_parameters.shape[0])


# --------------------- pure-JAX reference (for checking) ---------------------
def _combined_loss_reference(y_pred, y_true, VX, VY, VZ, exps, G):
    f32 = jnp.float32
    B = y_pred.shape[0]
    off = jnp.array([_PI / 2, 0.0, 0.0] * 3, f32)
    scl = jnp.array([1.0 / _PI, 2.0 / _PI, 1.0] * 3, f32)
    pn = (y_pred.astype(f32) + off) * scl
    tn = (y_true.astype(f32) + off) * scl

    def bce_mean(p, t):
        lp = jnp.maximum(jnp.log(p), _LOG_CLAMP)
        lq = jnp.maximum(jnp.log(1.0 - p), _LOG_CLAMP)
        return -jnp.mean(t * lp + (1.0 - t) * lq)

    parameter_loss = bce_mean(pn, tn)

    def build_v(o):
        psi, th, mu = pn[:, 3 * o], pn[:, 3 * o + 1], pn[:, 3 * o + 2]
        c, s = jnp.cos(2 * th), jnp.sin(2 * th)
        e = jnp.cos(psi) + 1j * jnp.sin(psi)
        row0 = jnp.stack([(mu * c).astype(jnp.complex64), mu * s * e], axis=-1)
        row1 = jnp.stack([mu * s * jnp.conj(e), (-mu * c).astype(jnp.complex64)], axis=-1)
        return jnp.stack([row0, row1], axis=-2)

    v_est = [build_v(o) for o in range(3)]
    v_true = [VX.astype(jnp.complex64), VY.astype(jnp.complex64), VZ.astype(jnp.complex64)]

    dist = 0.0
    for o in range(3):
        d = v_est[o] - v_true[o]
        d00, d11 = jnp.real(d[:, 0, 0]), jnp.real(d[:, 1, 1])
        ar, br = jnp.real(d[:, 0, 1]), jnp.imag(d[:, 0, 1])
        h = 0.5 * (d00 + d11)
        r = jnp.sqrt(0.25 * (d00 - d11) ** 2 + ar * ar + br * br)
        dist = dist + jnp.sum(0.5 * (jnp.abs(h + r) + jnp.abs(h - r)))
    trace_loss = dist / (3 * B)

    sx = jnp.array([[0, 1], [1, 0]], jnp.complex64)
    sy = jnp.array([[0, -1j], [1j, 0]], jnp.complex64)
    sz = jnp.array([[1, 0], [0, -1]], jnp.complex64)
    Gc = G.astype(jnp.complex64)
    Gd = jnp.conjugate(jnp.swapaxes(Gc, -1, -2))
    rows = []
    for o, sig in enumerate((sx, sy, sz)):
        A = Gd @ sig @ Gc
        P = v_est[o] @ A
        tr = jnp.real(P[:, 0, 0] + P[:, 1, 1])
        tra = [jnp.real(P[:, 0, 1] + P[:, 1, 0]),
               jnp.imag(P[:, 1, 0]) - jnp.imag(P[:, 0, 1]),
               jnp.real(P[:, 0, 0] - P[:, 1, 1])]
        for a in range(3):
            for sgn in (1.0, -1.0):
                rows.append(0.5 * (tr + sgn * tra[a]))
    e_pred = jnp.stack(rows, axis=1)                                 # (B, 18)
    expectation_loss = bce_mean(0.5 * (e_pred + 1.0), 0.5 * (exps.astype(f32) + 1.0))
    return parameter_loss + trace_loss + expectation_loss


# ----------------------------------- demo ------------------------------------
if __name__ == "__main__":
    key = jax.random.PRNGKey(0)
    B = 200                                  # not a multiple of 128 -> exercises masking
    k1, k2, k3, k4, k5 = jax.random.split(key, 5)

    def make_params(k):
        kp, kt, km = jax.random.split(k, 3)
        psi = jax.random.uniform(kp, (B, 3), minval=-0.9 * jnp.pi / 2,
                                 maxval=0.9 * jnp.pi / 2)
        theta = jax.random.uniform(kt, (B, 3), minval=0.05, maxval=0.95 * jnp.pi / 2)
        mu = jax.random.uniform(km, (B, 3), minval=0.05, maxval=0.95)
        return jnp.stack([psi, theta, mu], axis=-1).reshape(B, 9).astype(jnp.float32)

    y_pred = make_params(k1)
    y_true = make_params(k2)

    def make_vo(k):
        kp, kt, km = jax.random.split(k, 3)
        psi = jax.random.uniform(kp, (B,), minval=-1.5, maxval=1.5)
        th = jax.random.uniform(kt, (B,), minval=0.0, maxval=1.5)
        mu = jax.random.uniform(km, (B,), minval=0.1, maxval=0.9)
        c, s = jnp.cos(2 * th), jnp.sin(2 * th)
        v = jnp.zeros((B, 2, 2), jnp.complex64)
        v = v.at[:, 0, 0].set(mu * c)
        v = v.at[:, 0, 1].set(mu * s * jnp.exp(1j * psi))
        v = v.at[:, 1, 0].set(mu * s * jnp.exp(-1j * psi))
        v = v.at[:, 1, 1].set(-mu * c)
        return v

    VX = make_vo(jax.random.fold_in(k3, 0))
    VY = make_vo(jax.random.fold_in(k3, 1))
    VZ = make_vo(jax.random.fold_in(k3, 2))

    true_exp = jax.random.uniform(k4, (B, 18), minval=-0.9, maxval=0.9).astype(jnp.float32)

    ka, kn = jax.random.split(k5)
    alpha = jax.random.uniform(ka, (B,), minval=0.0, maxval=jnp.pi)
    n = jax.random.normal(kn, (B, 3))
    n = n / jnp.linalg.norm(n, axis=1, keepdims=True)
    I2 = jnp.eye(2, dtype=jnp.complex64)
    sx = jnp.array([[0, 1], [1, 0]], jnp.complex64)
    sy = jnp.array([[0, -1j], [1j, 0]], jnp.complex64)
    sz = jnp.array([[1, 0], [0, -1]], jnp.complex64)
    ns = (n[:, 0, None, None] * sx + n[:, 1, None, None] * sy + n[:, 2, None, None] * sz)
    G = (jnp.cos(alpha)[:, None, None] * I2 - 1j * jnp.sin(alpha)[:, None, None] * ns)

    loss = jax.jit(combined_loss)(y_pred, y_true, VX, VY, VZ, true_exp, G)
    loss = jax.block_until_ready(loss)
    ref = jax.block_until_ready(_combined_loss_reference(y_pred, y_true, VX, VY, VZ,
                                                         true_exp, G))

    assert loss.shape == () and bool(jnp.isfinite(loss))
    assert abs(float(loss) - float(ref)) <= 1e-3 * max(1.0, abs(float(ref))), (loss, ref)
    print("KERNEL_OK")
</pallas_src>

<mosaic_0001>
module attributes {stable_mosaic.version = 11 : i64} {
  func.func @_combined_loss_kernel(%arg0: i32, %arg1: memref<9x8x128xf32, #tpu.memory_space<vmem>>, %arg2: memref<47x8x128xf32, #tpu.memory_space<vmem>>, %arg3: memref<1x24x128xf32, #tpu.memory_space<vmem>>) attributes {dimension_semantics = [#tpu.dimension_semantics<parallel>], iteration_bounds = array<i64: 1>, scalar_prefetch = 0 : i64, scratch_operands = 0 : i64, tpu.core_type = #tpu.core_type<tc>, window_params = [{transform_indices = @transform_0, window_bounds = array<i64: 9, 8, 128>}, {transform_indices = @transform_1, window_bounds = array<i64: 47, 8, 128>}, {transform_indices = @transform_2, window_bounds = array<i64: 1, 24, 128>}]} {
    %c8_i32 = arith.constant 8 : i32
    %0 = arith.muli %arg0, %c8_i32 : i32
    %1 = tpu.iota {dimensions = array<i32: 0>} : vector<8x128xi32>
    %2 = tpu.iota {dimensions = array<i32: 1>} : vector<8x128xi32>
    %c128_i32 = arith.constant 128 : i32
    %3 = vector.broadcast %c128_i32 : i32 to vector<8x128xi32>
    %4 = arith.muli %1, %3 : vector<8x128xi32>
    %5 = arith.addi %4, %2 : vector<8x128xi32>
    %cst = arith.constant 0.000000e+00 : f32
    %6 = vector.broadcast %cst : f32 to vector<8x128xf32>
    %c0_i32 = arith.constant 0 : i32
    %c8_i32_0 = arith.constant 8 : i32
    %7 = arith.muli %c0_i32, %c8_i32_0 : i32
    %8 = tpu.assume_multiple %7, 8 : i32
    %9 = arith.addi %0, %8 : i32
    %c128_i32_1 = arith.constant 128 : i32
    %10 = arith.muli %9, %c128_i32_1 : i32
    %11 = vector.broadcast %10 : i32 to vector<8x128xi32>
    %12 = arith.addi %11, %5 : vector<8x128xi32>
    %c200_i32 = arith.constant 200 : i32
    %13 = vector.broadcast %c200_i32 : i32 to vector<8x128xi32>
    %14 = arith.cmpi slt, %12, %13 : vector<8x128xi32>
    %cst_2 = arith.constant 1.000000e+00 : f32
    %cst_3 = arith.constant 0.000000e+00 : f32
    %15 = vector.broadcast %cst_2 : f32 to vector<8x128xf32>
    %16 = vector.broadcast %cst_3 : f32 to vector<8x128xf32>
    %17 = arith.select %14, %15, %16 : vector<8x128xi1>, vector<8x128xf32>
    %c0 = arith.constant 0 : index
    %18 = arith.index_cast %8 : i32 to index
    %c0_4 = arith.constant 0 : index
    %19 = vector.load %arg1[%c0, %18, %c0_4] : memref<9x8x128xf32, #tpu.memory_space<vmem>>, vector<1x8x128xf32>
    %20 = vector.shape_cast %19 : vector<1x8x128xf32> to vector<8x128xf32>
    %cst_5 = arith.constant 1.57079637 : f32
    %21 = vector.broadcast %cst_5 : f32 to vector<8x128xf32>
    %22 = arith.addf %20, %21 : vector<8x128xf32>
    %cst_6 = arith.constant 0.318309873 : f32
    %23 = vector.broadcast %cst_6 : f32 to vector<8x128xf32>
    %24 = arith.mulf %22, %23 : vector<8x128xf32>
    %c1 = arith.constant 1 : index
    %25 = arith.index_cast %8 : i32 to index
    %c0_7 = arith.constant 0 : index
    %26 = vector.load %arg1[%c1, %25, %c0_7] : memref<9x8x128xf32, #tpu.memory_space<vmem>>, vector<1x8x128xf32>
    %27 = vector.shape_cast %26 : vector<1x8x128xf32> to vector<8x128xf32>
    %cst_8 = arith.constant 0.636619746 : f32
    %28 = vector.broadcast %cst_8 : f32 to vector<8x128xf32>
    %29 = arith.mulf %27, %28 : vector<8x128xf32>
    %c2 = arith.constant 2 : index
    %30 = arith.index_cast %8 : i32 to index
    %c0_9 = arith.constant 0 : index
    %31 = vector.load %arg1[%c2, %30, %c0_9] : memref<9x8x128xf32, #tpu.memory_space<vmem>>, vector<1x8x128xf32>
    %32 = vector.shape_cast %31 : vector<1x8x128xf32> to vector<8x128xf32>
    %c3 = arith.constant 3 : index
    %33 = arith.index_cast %8 : i32 to index
    %c0_10 = arith.constant 0 : index
    %34 = vector.load %arg1[%c3, %33, %c0_10] : memref<9x8x128xf32, #tpu.memory_space<vmem>>, vector<1x8x128xf32>
    %35 = vector.shape_cast %34 : vector<1x8x128xf32> to vector<8x128xf32>
    %cst_11 = arith.constant 1.57079637 : f32
    %36 = vector.broadcast %cst_11 : f32 to vector<8x128xf32>
    %37 = arith.addf %35, %36 : vector<8x128xf32>
    %cst_12 = arith.constant 0.318309873 : f32
    %38 = vector.broadcast %cst_12 : f32 to vector<8x128xf32>
    %39 = arith.mulf %37, %38 : vector<8x128xf32>
    %c4 = arith.constant 4 : index
    %40 = arith.index_cast %8 : i32 to index
    %c0_13 = arith.constant 0 : index
    %41 = vector.load %arg1[%c4, %40, %c0_13] : memref<9x8x128xf32, #tpu.memory_space<vmem>>, vector<1x8x128xf32>
    %42 = vector.shape_cast %41 : vector<1x8x128xf32> to vector<8x128xf32>
    %cst_14 = arith.constant 0.636619746 : f32
    %43 = vector.broadcast %cst_14 : f32 to vector<8x128xf32>
    %44 = arith.mulf %42, %43 : vector<8x128xf32>
    %c5 = arith.constant 5 : index
    %45 = arith.index_cast %8 : i32 to index
    %c0_15 = arith.constant 0 : index
    %46 = vector.load %arg1[%c5, %45, %c0_15] : memref<9x8x128xf32, #tpu.memory_space<vmem>>, vector<1x8x128xf32>
    %47 = vector.shape_cast %46 : vector<1x8x128xf32> to vector<8x128xf32>
    %c6 = arith.constant 6 : index
    %48 = arith.index_cast %8 : i32 to index
    %c0_16 = arith.constant 0 : index
    %49 = vector.load %arg1[%c6, %48, %c0_16] : memref<9x8x128xf32, #tpu.memory_space<vmem>>, vector<1x8x128xf32>
    %50 = vector.shape_cast %49 : vector<1x8x128xf32> to vector<8x128xf32>
    %cst_17 = arith.constant 1.57079637 : f32
    %51 = vector.broadcast %cst_17 : f32 to vector<8x128xf32>
    %52 = arith.addf %50, %51 : vector<8x128xf32>
    %cst_18 = arith.constant 0.318309873 : f32
    %53 = vector.broadcast %cst_18 : f32 to vector<8x128xf32>
    %54 = arith.mulf %52, %53 : vector<8x128xf32>
    %c7 = arith.constant 7 : index
    %55 = arith.index_cast %8 : i32 to index
    %c0_19 = arith.constant 0 : index
    %56 = vector.load %arg1[%c7, %55, %c0_19] : memref<9x8x128xf32, #tpu.memory_space<vmem>>, vector<1x8x128xf32>
    %57 = vector.shape_cast %56 : vector<1x8x128xf32> to vector<8x128xf32>
    %cst_20 = arith.constant 0.636619746 : f32
    %58 = vector.broadcast %cst_20 : f32 to vector<8x128xf32>
    %59 = arith.mulf %57, %58 : vector<8x128xf32>
    %c8 = arith.constant 8 : index
    %60 = arith.index_cast %8 : i32 to index
    %c0_21 = arith.constant 0 : index
    %61 = vector.load %arg1[%c8, %60, %c0_21] : memref<9x8x128xf32, #tpu.memory_space<vmem>>, vector<1x8x128xf32>
    %62 = vector.shape_cast %61 : vector<1x8x128xf32> to vector<8x128xf32>
    %cst_22 = arith.constant 0.000000e+00 : f32
    %63 = vector.broadcast %cst_22 : f32 to vector<8x128xf32>
    %c0_23 = arith.constant 0 : index
    %64 = arith.index_cast %8 : i32 to index
    %c0_24 = arith.constant 0 : index
    %65 = vector.load %arg2[%c0_23, %64, %c0_24] : memref<47x8x128xf32, #tpu.memory_space<vmem>>, vector<1x8x128xf32>
    %66 = vector.shape_cast %65 : vector<1x8x128xf32> to vector<8x128xf32>
    %cst_25 = arith.constant 1.57079637 : f32
    %67 = vector.broadcast %cst_25 : f32 to vector<8x128xf32>
    %68 = arith.addf %66, %67 : vector<8x128xf32>
    %cst_26 = arith.constant 0.318309873 : f32
    %69 = vector.broadcast %cst_26 : f32 to vector<8x128xf32>
    %70 = arith.mulf %68, %69 : vector<8x128xf32>
    %71 = math.log %24 : vector<8x128xf32>
    %cst_27 = arith.constant -1.000000e+02 : f32
    %72 = vector.broadcast %cst_27 : f32 to vector<8x128xf32>
    %73 = arith.maximumf %71, %72 : vector<8x128xf32>
    %cst_28 = arith.constant 1.000000e+00 : f32
    %74 = vector.broadcast %cst_28 : f32 to vector<8x128xf32>
    %75 = arith.subf %74, %24 : vector<8x128xf32>
    %76 = math.log %75 : vector<8x128xf32>
    %cst_29 = arith.constant -1.000000e+02 : f32
    %77 = vector.broadcast %cst_29 : f32 to vector<8x128xf32>
    %78 = arith.maximumf %76, %77 : vector<8x128xf32>
    %79 = arith.mulf %70, %73 : vector<8x128xf32>
    %cst_30 = arith.constant 1.000000e+00 : f32
    %80 = vector.broadcast %cst_30 : f32 to vector<8x128xf32>
    %81 = arith.subf %80, %70 : vector<8x128xf32>
    %82 = arith.mulf %81, %78 : vector<8x128xf32>
    %83 = arith.addf %79, %82 : vector<8x128xf32>
    %cst_31 = arith.constant 0.000000e+00 : f32
    %84 = vector.broadcast %cst_31 : f32 to vector<8x128xf32>
    %85 = arith.subf %84, %83 : vector<8x128xf32>
    %86 = arith.addf %63, %85 : vector<8x128xf32>
    %c1_32 = arith.constant 1 : index
    %87 = arith.index_cast %8 : i32 to index
    %c0_33 = arith.constant 0 : index
    %88 = vector.load %arg2[%c1_32, %87, %c0_33] : memref<47x8x128xf32, #tpu.memory_space<vmem>>, vector<1x8x128xf32>
    %89 = vector.shape_cast %88 : vector<1x8x128xf32> to vector<8x128xf32>
    %cst_34 = arith.constant 0.636619746 : f32
    %90 = vector.broadcast %cst_34 : f32 to vector<8x128xf32>
    %91 = arith.mulf %89, %90 : vector<8x128xf32>
    %92 = math.log %29 : vector<8x128xf32>
    %cst_35 = arith.constant -1.000000e+02 : f32
    %93 = vector.broadcast %cst_35 : f32 to vector<8x128xf32>
    %94 = arith.maximumf %92, %93 : vector<8x128xf32>
    %cst_36 = arith.constant 1.000000e+00 : f32
    %95 = vector.broadcast %cst_36 : f32 to vector<8x128xf32>
    %96 = arith.subf %95, %29 : vector<8x128xf32>
    %97 = math.log %96 : vector<8x128xf32>
    %cst_37 = arith.constant -1.000000e+02 : f32
    %98 = vector.broadcast %cst_37 : f32 to vector<8x128xf32>
    %99 = arith.maximumf %97, %98 : vector<8x128xf32>
    %100 = arith.mulf %91, %94 : vector<8x128xf32>
    %cst_38 = arith.constant 1.000000e+00 : f32
    %101 = vector.broadcast %cst_38 : f32 to vector<8x128xf32>
    %102 = arith.subf %101, %91 : vector<8x128xf32>
    %103 = arith.mulf %102, %99 : vector<8x128xf32>
    %104 = arith.addf %100, %103 : vector<8x128xf32>
    %cst_39 = arith.constant 0.000000e+00 : f32
    %105 = vector.broadcast %cst_39 : f32 to vector<8x128xf32>
    %106 = arith.subf %105, %104 : vector<8x128xf32>
    %107 = arith.addf %86, %106 : vector<8x128xf32>
    %c2_40 = arith.constant 2 : index
    %108 = arith.index_cast %8 : i32 to index
    %c0_41 = arith.constant 0 : index
    %109 = vector.load %arg2[%c2_40, %108, %c0_41] : memref<47x8x128xf32, #tpu.memory_space<vmem>>, vector<1x8x128xf32>
    %110 = vector.shape_cast %109 : vector<1x8x128xf32> to vector<8x128xf32>
    %111 = math.log %32 : vector<8x128xf32>
    %cst_42 = arith.constant -1.000000e+02 : f32
    %112 = vector.broadcast %cst_42 : f32 to vector<8x128xf32>
    %113 = arith.maximumf %111, %112 : vector<8x128xf32>
    %cst_43 = arith.constant 1.000000e+00 : f32
    %114 = vector.broadcast %cst_43 : f32 to vector<8x128xf32>
    %115 = arith.subf %114, %32 : vector<8x128xf32>
    %116 = math.log %115 : vector<8x128xf32>
    %cst_44 = arith.constant -1.000000e+02 : f32
    %117 = vector.broadcast %cst_44 : f32 to vector<8x128xf32>
    %118 = arith.maximumf %116, %117 : vector<8x128xf32>
    %119 = arith.mulf %110, %113 : vector<8x128xf32>
    %cst_45 = arith.constant 1.000000e+00 : f32
    %120 = vector.broadcast %cst_45 : f32 to vector<8x128xf32>
    %121 = arith.subf %120, %110 : vector<8x128xf32>
    %122 = arith.mulf %121, %118 : vector<8x128xf32>
    %123 = arith.addf %119, %122 : vector<8x128xf32>
    %cst_46 = arith.constant 0.000000e+00 : f32
    %124 = vector.broadcast %cst_46 : f32 to vector<8x128xf32>
    %125 = arith.subf %124, %123 : vector<8x128xf32>
    %126 = arith.addf %107, %125 : vector<8x128xf32>
    %c3_47 = arith.constant 3 : index
    %127 = arith.index_cast %8 : i32 to index
    %c0_48 = arith.constant 0 : index
    %128 = vector.load %arg2[%c3_47, %127, %c0_48] : memref<47x8x128xf32, #tpu.memory_space<vmem>>, vector<1x8x128xf32>
    %129 = vector.shape_cast %128 : vector<1x8x128xf32> to vector<8x128xf32>
    %cst_49 = arith.constant 1.57079637 : f32
    %130 = vector.broadcast %cst_49 : f32 to vector<8x128xf32>
    %131 = arith.addf %129, %130 : vector<8x128xf32>
    %cst_50 = arith.constant 0.318309873 : f32
    %132 = vector.broadcast %cst_50 : f32 to vector<8x128xf32>
    %133 = arith.mulf %131, %132 : vector<8x128xf32>
    %134 = math.log %39 : vector<8x128xf32>
    %cst_51 = arith.constant -1.000000e+02 : f32
    %135 = vector.broadcast %cst_51 : f32 to vector<8x128xf32>
    %136 = arith.maximumf %134, %135 : vector<8x128xf32>
    %cst_52 = arith.constant 1.000000e+00 : f32
    %137 = vector.broadcast %cst_52 : f32 to vector<8x128xf32>
    %138 = arith.subf %137, %39 : vector<8x128xf32>
    %139 = math.log %138 : vector<8x128xf32>
    %cst_53 = arith.constant -1.000000e+02 : f32
    %140 = vector.broadcast %cst_53 : f32 to vector<8x128xf32>
    %141 = arith.maximumf %139, %140 : vector<8x128xf32>
    %142 = arith.mulf %133, %136 : vector<8x128xf32>
    %cst_54 = arith.constant 1.000000e+00 : f32
    %143 = vector.broadcast %cst_54 : f32 to vector<8x128xf32>
    %144 = arith.subf %143, %133 : vector<8x128xf32>
    %145 = arith.mulf %144, %141 : vector<8x128xf32>
    %146 = arith.addf %142, %145 : vector<8x128xf32>
    %cst_55 = arith.constant 0.000000e+00 : f32
    %147 = vector.broadcast %cst_55 : f32 to vector<8x128xf32>
    %148 = arith.subf %147, %146 : vector<8x128xf32>
    %149 = arith.addf %126, %148 : vector<8x128xf32>
    %c4_56 = arith.constant 4 : index
    %150 = arith.index_cast %8 : i32 to index
    %c0_57 = arith.constant 0 : index
    %151 = vector.load %arg2[%c4_56, %150, %c0_57] : memref<47x8x128xf32, #tpu.memory_space<vmem>>, vector<1x8x128xf32>
    %152 = vector.shape_cast %151 : vector<1x8x128xf32> to vector<8x128xf32>
    %cst_58 = arith.constant 0.636619746 : f32
    %153 = vector.broadcast %cst_58 : f32 to vector<8x128xf32>
    %154 = arith.mulf %152, %153 : vector<8x128xf32>
    %155 = math.log %44 : vector<8x128xf32>
    %cst_59 = arith.constant -1.000000e+02 : f32
    %156 = vector.broadcast %cst_59 : f32 to vector<8x128xf32>
    %157 = arith.maximumf %155, %156 : vector<8x128xf32>
    %cst_60 = arith.constant 1.000000e+00 : f32
    %158 = vector.broadcast %cst_60 : f32 to vector<8x128xf32>
    %159 = arith.subf %158, %44 : vector<8x128xf32>
    %160 = math.log %159 : vector<8x128xf32>
    %cst_61 = arith.constant -1.000000e+02 : f32
    %161 = vector.broadcast %cst_61 : f32 to vector<8x128xf32>
    %162 = arith.maximumf %160, %161 : vector<8x128xf32>
    %163 = arith.mulf %154, %157 : vector<8x128xf32>
    %cst_62 = arith.constant 1.000000e+00 : f32
    %164 = vector.broadcast %cst_62 : f32 to vector<8x128xf32>
    %165 = arith.subf %164, %154 : vector<8x128xf32>
    %166 = arith.mulf %165, %162 : vector<8x128xf32>
    %167 = arith.addf %163, %166 : vector<8x128xf32>
    %cst_63 = arith.constant 0.000000e+00 : f32
    %168 = vector.broadcast %cst_63 : f32 to vector<8x128xf32>
    %169 = arith.subf %168, %167 : vector<8x128xf32>
    %170 = arith.addf %149, %169 : vector<8x128xf32>
    %c5_64 = arith.constant 5 : index
    %171 = arith.index_cast %8 : i32 to index
    %c0_65 = arith.constant 0 : index
    %172 = vector.load %arg2[%c5_64, %171, %c0_65] : memref<47x8x128xf32, #tpu.memory_space<vmem>>, vector<1x8x128xf32>
    %173 = vector.shape_cast %172 : vector<1x8x128xf32> to vector<8x128xf32>
    %174 = math.log %47 : vector<8x128xf32>
    %cst_66 = arith.constant -1.000000e+02 : f32
    %175 = vector.broadcast %cst_66 : f32 to vector<8x128xf32>
    %176 = arith.maximumf %174, %175 : vector<8x128xf32>
    %cst_67 = arith.constant 1.000000e+00 : f32
    %177 = vector.broadcast %cst_67 : f32 to vector<8x128xf32>
    %178 = arith.subf %177, %47 : vector<8x128xf32>
    %179 = math.log %178 : vector<8x128xf32>
    %cst_68 = arith.constant -1.000000e+02 : f32
    %180 = vector.broadcast %cst_68 : f32 to vector<8x128xf32>
    %181 = arith.maximumf %179, %180 : vector<8x128xf32>
    %182 = arith.mulf %173, %176 : vector<8x128xf32>
    %cst_69 = arith.constant 1.000000e+00 : f32
    %183 = vector.broadcast %cst_69 : f32 to vector<8x128xf32>
    %184 = arith.subf %183, %173 : vector<8x128xf32>
    %185 = arith.mulf %184, %181 : vector<8x128xf32>
    %186 = arith.addf %182, %185 : vector<8x128xf32>
    %cst_70 = arith.constant 0.000000e+00 : f32
    %187 = vector.broadcast %cst_70 : f32 to vector<8x128xf32>
    %188 = arith.subf %187, %186 : vector<8x128xf32>
    %189 = arith.addf %170, %188 : vector<8x128xf32>
    %c6_71 = arith.constant 6 : index
    %190 = arith.index_cast %8 : i32 to index
    %c0_72 = arith.constant 0 : index
    %191 = vector.load %arg2[%c6_71, %190, %c0_72] : memref<47x8x128xf32, #tpu.memory_space<vmem>>, vector<1x8x128xf32>
    %192 = vector.shape_cast %191 : vector<1x8x128xf32> to vector<8x128xf32>
    %cst_73 = arith.constant 1.57079637 : f32
    %193 = vector.broadcast %cst_73 : f32 to vector<8x128xf32>
    %194 = arith.addf %192, %193 : vector<8x128xf32>
    %cst_74 = arith.constant 0.318309873 : f32
    %195 = vector.broadcast %cst_74 : f32 to vector<8x128xf32>
    %196 = arith.mulf %194, %195 : vector<8x128xf32>
    %197 = math.log %54 : vector<8x128xf32>
    %cst_75 = arith.constant -1.000000e+02 : f32
    %198 = vector.broadcast %cst_75 : f32 to vector<8x128xf32>
    %199 = arith.maximumf %197, %198 : vector<8x128xf32>
    %cst_76 = arith.constant 1.000000e+00 : f32
    %200 = vector.broadcast %cst_76 : f32 to vector<8x128xf32>
    %201 = arith.subf %200, %54 : vector<8x128xf32>
    %202 = math.log %201 : vector<8x128xf32>
    %cst_77 = arith.constant -1.000000e+02 : f32
    %203 = vector.broadcast %cst_77 : f32 to vector<8x128xf32>
    %204 = arith.maximumf %202, %203 : vector<8x128xf32>
    %205 = arith.mulf %196, %199 : vector<8x128xf32>
    %cst_78 = arith.constant 1.000000e+00 : f32
    %206 = vector.broadcast %cst_78 : f32 to vector<8x128xf32>
    %207 = arith.subf %206, %196 : vector<8x128xf32>
    %208 = arith.mulf %207, %204 : vector<8x128xf32>
    %209 = arith.addf %205, %208 : vector<8x128xf32>
    %cst_79 = arith.constant 0.000000e+00 : f32
    %210 = vector.broadcast %cst_79 : f32 to vector<8x128xf32>
    %211 = arith.subf %210, %209 : vector<8x128xf32>
    %212 = arith.addf %189, %211 : vector<8x128xf32>
    %c7_80 = arith.constant 7 : index
    %213 = arith.index_cast %8 : i32 to index
    %c0_81 = arith.constant 0 : index
    %214 = vector.load %arg2[%c7_80, %213, %c0_81] : memref<47x8x128xf32, #tpu.memory_space<vmem>>, vector<1x8x128xf32>
    %215 = vector.shape_cast %214 : vector<1x8x128xf32> to vector<8x128xf32>
    %cst_82 = arith.constant 0.636619746 : f32
    %216 = vector.broadcast %cst_82 : f32 to vector<8x128xf32>
    %217 = arith.mulf %215, %216 : vector<8x128xf32>
    %218 = math.log %59 : vector<8x128xf32>
    %cst_83 = arith.constant -1.000000e+02 : f32
    %219 = vector.broadcast %cst_83 : f32 to vector<8x128xf32>
    %220 = arith.maximumf %218, %219 : vector<8x128xf32>
    %cst_84 = arith.constant 1.000000e+00 : f32
    %221 = vector.broadcast %cst_84 : f32 to vector<8x128xf32>
    %222 = arith.subf %221, %59 : vector<8x128xf32>
    %223 = math.log %222 : vector<8x128xf32>
    %cst_85 = arith.constant -1.000000e+02 : f32
    %224 = vector.broadcast %cst_85 : f32 to vector<8x128xf32>
    %225 = arith.maximumf %223, %224 : vector<8x128xf32>
    %226 = arith.mulf %217, %220 : vector<8x128xf32>
    %cst_86 = arith.constant 1.000000e+00 : f32
    %227 = vector.broadcast %cst_86 : f32 to vector<8x128xf32>
    %228 = arith.subf %227, %217 : vector<8x128xf32>
    %229 = arith.mulf %228, %225 : vector<8x128xf32>
    %230 = arith.addf %226, %229 : vector<8x128xf32>
    %cst_87 = arith.constant 0.000000e+00 : f32
    %231 = vector.broadcast %cst_87 : f32 to vector<8x128xf32>
    %232 = arith.subf %231, %230 : vector<8x128xf32>
    %233 = arith.addf %212, %232 : vector<8x128xf32>
    %c8_88 = arith.constant 8 : index
    %234 = arith.index_cast %8 : i32 to index
    %c0_89 = arith.constant 0 : index
    %235 = vector.load %arg2[%c8_88, %234, %c0_89] : memref<47x8x128xf32, #tpu.memory_space<vmem>>, vector<1x8x128xf32>
    %236 = vector.shape_cast %235 : vector<1x8x128xf32> to vector<8x128xf32>
    %237 = math.log %62 : vector<8x128xf32>
    %cst_90 = arith.constant -1.000000e+02 : f32
    %238 = vector.broadcast %cst_90 : f32 to vector<8x128xf32>
    %239 = arith.maximumf %237, %238 : vector<8x128xf32>
    %cst_91 = arith.constant 1.000000e+00 : f32
    %240 = vector.broadcast %cst_91 : f32 to vector<8x128xf32>
    %241 = arith.subf %240, %62 : vector<8x128xf32>
    %242 = math.log %241 : vector<8x128xf32>
    %cst_92 = arith.constant -1.000000e+02 : f32
    %243 = vector.broadcast %cst_92 : f32 to vector<8x128xf32>
    %244 = arith.maximumf %242, %243 : vector<8x128xf32>
    %245 = arith.mulf %236, %239 : vector<8x128xf32>
    %cst_93 = arith.constant 1.000000e+00 : f32
    %246 = vector.broadcast %cst_93 : f32 to vector<8x128xf32>
    %247 = arith.subf %246, %236 : vector<8x128xf32>
    %248 = arith.mulf %247, %244 : vector<8x128xf32>
    %249 = arith.addf %245, %248 : vector<8x128xf32>
    %cst_94 = arith.constant 0.000000e+00 : f32
    %250 = vector.broadcast %cst_94 : f32 to vector<8x128xf32>
    %251 = arith.subf %250, %249 : vector<8x128xf32>
    %252 = arith.addf %233, %251 : vector<8x128xf32>
    %c39 = arith.constant 39 : index
    %253 = arith.index_cast %8 : i32 to index
    %c0_95 = arith.constant 0 : index
    %254 = vector.load %arg2[%c39, %253, %c0_95] : memref<47x8x128xf32, #tpu.memory_space<vmem>>, vector<1x8x128xf32>
    %255 = vector.shape_cast %254 : vector<1x8x128xf32> to vector<8x128xf32>
    %c40 = arith.constant 40 : index
    %256 = arith.index_cast %8 : i32 to index
    %c0_96 = arith.constant 0 : index
    %257 = vector.load %arg2[%c40, %256, %c0_96] : memref<47x8x128xf32, #tpu.memory_space<vmem>>, vector<1x8x128xf32>
    %258 = vector.shape_cast %257 : vector<1x8x128xf32> to vector<8x128xf32>
    %c41 = arith.constant 41 : index
    %259 = arith.index_cast %8 : i32 to index
    %c0_97 = arith.constant 0 : index
    %260 = vector.load %arg2[%c41, %259, %c0_97] : memref<47x8x128xf32, #tpu.memory_space<vmem>>, vector<1x8x128xf32>
    %261 = vector.shape_cast %260 : vector<1x8x128xf32> to vector<8x128xf32>
    %c42 = arith.constant 42 : index
    %262 = arith.index_cast %8 : i32 to index
    %c0_98 = arith.constant 0 : index
    %263 = vector.load %arg2[%c42, %262, %c0_98] : memref<47x8x128xf32, #tpu.memory_space<vmem>>, vector<1x8x128xf32>
    %264 = vector.shape_cast %263 : vector<1x8x128xf32> to vector<8x128xf32>
    %c43 = arith.constant 43 : index
    %265 = arith.index_cast %8 : i32 to index
    %c0_99 = arith.constant 0 : index
    %266 = vector.load %arg2[%c43, %265, %c0_99] : memref<47x8x128xf32, #tpu.memory_space<vmem>>, vector<1x8x128xf32>
    %267 = vector.shape_cast %266 : vector<1x8x128xf32> to vector<8x128xf32>
    %c44 = arith.constant 44 : index
    %268 = arith.index_cast %8 : i32 to index
    %c0_100 = arith.constant 0 : index
    %269 = vector.load %arg2[%c44, %268, %c0_100] : memref<47x8x128xf32, #tpu.memory_space<vmem>>, vector<1x8x128xf32>
    %270 = vector.shape_cast %269 : vector<1x8x128xf32> to vector<8x128xf32>
    %c45 = arith.constant 45 : index
    %271 = arith.index_cast %8 : i32 to index
    %c0_101 = arith.constant 0 : index
    %272 = vector.load %arg2[%c45, %271, %c0_101] : memref<47x8x128xf32, #tpu.memory_space<vmem>>, vector<1x8x128xf32>
    %273 = vector.shape_cast %272 : vector<1x8x128xf32> to vector<8x128xf32>
    %c46 = arith.constant 46 : index
    %274 = arith.index_cast %8 : i32 to index
    %c0_102 = arith.constant 0 : index
    %275 = vector.load %arg2[%c46, %274, %c0_102] : memref<47x8x128xf32, #tpu.memory_space<vmem>>, vector<1x8x128xf32>
    %276 = vector.shape_cast %275 : vector<1x8x128xf32> to vector<8x128xf32>
    %277 = arith.mulf %255, %261 : vector<8x128xf32>
    %278 = arith.mulf %267, %273 : vector<8x128xf32>
    %279 = arith.addf %277, %278 : vector<8x128xf32>
    %280 = arith.mulf %255, %273 : vector<8x128xf32>
    %281 = arith.mulf %267, %261 : vector<8x128xf32>
    %282 = arith.subf %280, %281 : vector<8x128xf32>
    %283 = arith.mulf %258, %264 : vector<8x128xf32>
    %284 = arith.mulf %270, %276 : vector<8x128xf32>
    %285 = arith.addf %283, %284 : vector<8x128xf32>
    %286 = arith.mulf %258, %276 : vector<8x128xf32>
    %287 = arith.mulf %270, %264 : vector<8x128xf32>
    %288 = arith.subf %286, %287 : vector<8x128xf32>
    %289 = arith.mulf %255, %264 : vector<8x128xf32>
    %290 = arith.mulf %267, %276 : vector<8x128xf32>
    %291 = arith.addf %289, %290 : vector<8x128xf32>
    %292 = arith.mulf %255, %276 : vector<8x128xf32>
    %293 = arith.mulf %267, %264 : vector<8x128xf32>
    %294 = arith.subf %292, %293 : vector<8x128xf32>
    %295 = arith.mulf %261, %258 : vector<8x128xf32>
    %296 = arith.mulf %273, %270 : vector<8x128xf32>
    %297 = arith.addf %295, %296 : vector<8x128xf32>
    %298 = arith.mulf %261, %270 : vector<8x128xf32>
    %299 = arith.mulf %273, %258 : vector<8x128xf32>
    %300 = arith.subf %298, %299 : vector<8x128xf32>
    %301 = arith.mulf %255, %258 : vector<8x128xf32>
    %302 = arith.mulf %267, %270 : vector<8x128xf32>
    %303 = arith.addf %301, %302 : vector<8x128xf32>
    %304 = arith.mulf %255, %270 : vector<8x128xf32>
    %305 = arith.mulf %267, %258 : vector<8x128xf32>
    %306 = arith.subf %304, %305 : vector<8x128xf32>
    %307 = arith.mulf %261, %264 : vector<8x128xf32>
    %308 = arith.mulf %273, %276 : vector<8x128xf32>
    %309 = arith.addf %307, %308 : vector<8x128xf32>
    %310 = arith.mulf %261, %276 : vector<8x128xf32>
    %311 = arith.mulf %273, %264 : vector<8x128xf32>
    %312 = arith.subf %310, %311 : vector<8x128xf32>
    %313 = arith.mulf %255, %255 : vector<8x128xf32>
    %314 = arith.mulf %267, %267 : vector<8x128xf32>
    %315 = arith.addf %313, %314 : vector<8x128xf32>
    %316 = arith.mulf %261, %261 : vector<8x128xf32>
    %317 = arith.mulf %273, %273 : vector<8x128xf32>
    %318 = arith.addf %316, %317 : vector<8x128xf32>
    %319 = arith.mulf %258, %258 : vector<8x128xf32>
    %320 = arith.mulf %270, %270 : vector<8x128xf32>
    %321 = arith.addf %319, %320 : vector<8x128xf32>
    %322 = arith.mulf %264, %264 : vector<8x128xf32>
    %323 = arith.mulf %276, %276 : vector<8x128xf32>
    %324 = arith.addf %322, %323 : vector<8x128xf32>
    %cst_103 = arith.constant 2.000000e+00 : f32
    %325 = vector.broadcast %cst_103 : f32 to vector<8x128xf32>
    %326 = arith.mulf %325, %279 : vector<8x128xf32>
    %cst_104 = arith.constant 2.000000e+00 : f32
    %327 = vector.broadcast %cst_104 : f32 to vector<8x128xf32>
    %328 = arith.mulf %327, %285 : vector<8x128xf32>
    %329 = arith.addf %291, %297 : vector<8x128xf32>
    %330 = arith.addf %294, %300 : vector<8x128xf32>
    %cst_105 = arith.constant 2.000000e+00 : f32
    %331 = vector.broadcast %cst_105 : f32 to vector<8x128xf32>
    %332 = arith.mulf %331, %282 : vector<8x128xf32>
    %cst_106 = arith.constant 2.000000e+00 : f32
    %333 = vector.broadcast %cst_106 : f32 to vector<8x128xf32>
    %334 = arith.mulf %333, %288 : vector<8x128xf32>
    %335 = arith.subf %294, %300 : vector<8x128xf32>
    %336 = arith.subf %297, %291 : vector<8x128xf32>
    %337 = arith.subf %315, %318 : vector<8x128xf32>
    %338 = arith.subf %321, %324 : vector<8x128xf32>
    %339 = arith.subf %303, %309 : vector<8x128xf32>
    %340 = arith.subf %306, %312 : vector<8x128xf32>
    %cst_107 = arith.constant 0.000000e+00 : f32
    %341 = vector.broadcast %cst_107 : f32 to vector<8x128xf32>
    %cst_108 = arith.constant 0.000000e+00 : f32
    %342 = vector.broadcast %cst_108 : f32 to vector<8x128xf32>
    %cst_109 = arith.constant 2.000000e+00 : f32
    %343 = vector.broadcast %cst_109 : f32 to vector<8x128xf32>
    %344 = arith.mulf %343, %29 : vector<8x128xf32>
    %345 = math.cos %344 : vector<8x128xf32>
    %cst_110 = arith.constant 2.000000e+00 : f32
    %346 = vector.broadcast %cst_110 : f32 to vector<8x128xf32>
    %347 = arith.mulf %346, %29 : vector<8x128xf32>
    %348 = math.sin %347 : vector<8x128xf32>
    %349 = math.cos %24 : vector<8x128xf32>
    %350 = math.sin %24 : vector<8x128xf32>
    %351 = arith.mulf %32, %345 : vector<8x128xf32>
    %352 = arith.mulf %32, %348 : vector<8x128xf32>
    %353 = arith.mulf %352, %349 : vector<8x128xf32>
    %354 = arith.mulf %352, %350 : vector<8x128xf32>
    %c9 = arith.constant 9 : index
    %355 = arith.index_cast %8 : i32 to index
    %c0_111 = arith.constant 0 : index
    %356 = vector.load %arg2[%c9, %355, %c0_111] : memref<47x8x128xf32, #tpu.memory_space<vmem>>, vector<1x8x128xf32>
    %357 = vector.shape_cast %356 : vector<1x8x128xf32> to vector<8x128xf32>
    %358 = arith.subf %351, %357 : vector<8x128xf32>
    %c10 = arith.constant 10 : index
    %359 = arith.index_cast %8 : i32 to index
    %c0_112 = arith.constant 0 : index
    %360 = vector.load %arg2[%c10, %359, %c0_112] : memref<47x8x128xf32, #tpu.memory_space<vmem>>, vector<1x8x128xf32>
    %361 = vector.shape_cast %360 : vector<1x8x128xf32> to vector<8x128xf32>
    %362 = arith.subf %353, %361 : vector<8x128xf32>
    %cst_113 = arith.constant 0.000000e+00 : f32
    %363 = vector.broadcast %cst_113 : f32 to vector<8x128xf32>
    %364 = arith.subf %363, %351 : vector<8x128xf32>
    %c11 = arith.constant 11 : index
    %365 = arith.index_cast %8 : i32 to index
    %c0_114 = arith.constant 0 : index
    %366 = vector.load %arg2[%c11, %365, %c0_114] : memref<47x8x128xf32, #tpu.memory_space<vmem>>, vector<1x8x128xf32>
    %367 = vector.shape_cast %366 : vector<1x8x128xf32> to vector<8x128xf32>
    %368 = arith.subf %364, %367 : vector<8x128xf32>
    %c12 = arith.constant 12 : index
    %369 = arith.index_cast %8 : i32 to index
    %c0_115 = arith.constant 0 : index
    %370 = vector.load %arg2[%c12, %369, %c0_115] : memref<47x8x128xf32, #tpu.memory_space<vmem>>, vector<1x8x128xf32>
    %371 = vector.shape_cast %370 : vector<1x8x128xf32> to vector<8x128xf32>
    %372 = arith.subf %354, %371 : vector<8x128xf32>
    %373 = arith.addf %358, %368 : vector<8x128xf32>
    %cst_116 = arith.constant 5.000000e-01 : f32
    %374 = vector.broadcast %cst_116 : f32 to vector<8x128xf32>
    %375 = arith.mulf %374, %373 : vector<8x128xf32>
    %376 = arith.subf %358, %368 : vector<8x128xf32>
    %377 = arith.mulf %376, %376 : vector<8x128xf32>
    %cst_117 = arith.constant 2.500000e-01 : f32
    %378 = vector.broadcast %cst_117 : f32 to vector<8x128xf32>
    %379 = arith.mulf %378, %377 : vector<8x128xf32>
    %380 = arith.mulf %362, %362 : vector<8x128xf32>
    %381 = arith.addf %379, %380 : vector<8x128xf32>
    %382 = arith.mulf %372, %372 : vector<8x128xf32>
    %383 = arith.addf %381, %382 : vector<8x128xf32>
    %384 = math.sqrt %383 : vector<8x128xf32>
    %385 = arith.addf %375, %384 : vector<8x128xf32>
    %386 = math.absf %385 : vector<8x128xf32>
    %387 = arith.subf %375, %384 : vector<8x128xf32>
    %388 = math.absf %387 : vector<8x128xf32>
    %389 = arith.addf %386, %388 : vector<8x128xf32>
    %cst_118 = arith.constant 5.000000e-01 : f32
    %390 = vector.broadcast %cst_118 : f32 to vector<8x128xf32>
    %391 = arith.mulf %390, %389 : vector<8x128xf32>
    %392 = arith.addf %341, %391 : vector<8x128xf32>
    %393 = arith.addf %326, %328 : vector<8x128xf32>
    %394 = arith.subf %326, %328 : vector<8x128xf32>
    %395 = arith.mulf %351, %394 : vector<8x128xf32>
    %396 = arith.mulf %353, %329 : vector<8x128xf32>
    %397 = arith.mulf %354, %330 : vector<8x128xf32>
    %398 = arith.addf %396, %397 : vector<8x128xf32>
    %cst_119 = arith.constant 2.000000e+00 : f32
    %399 = vector.broadcast %cst_119 : f32 to vector<8x128xf32>
    %400 = arith.mulf %399, %398 : vector<8x128xf32>
    %401 = arith.addf %395, %400 : vector<8x128xf32>
    %402 = arith.mulf %353, %393 : vector<8x128xf32>
    %403 = arith.mulf %354, %393 : vector<8x128xf32>
    %cst_120 = arith.constant 0.000000e+00 : f32
    %404 = vector.broadcast %cst_120 : f32 to vector<8x128xf32>
    %405 = arith.subf %404, %403 : vector<8x128xf32>
    %406 = arith.mulf %351, %393 : vector<8x128xf32>
    %cst_121 = arith.constant 1.000000e+00 : f32
    %407 = vector.broadcast %cst_121 : f32 to vector<8x128xf32>
    %408 = arith.mulf %407, %402 : vector<8x128xf32>
    %409 = arith.addf %401, %408 : vector<8x128xf32>
    %cst_122 = arith.constant 5.000000e-01 : f32
    %410 = vector.broadcast %cst_122 : f32 to vector<8x128xf32>
    %411 = arith.mulf %410, %409 : vector<8x128xf32>
    %cst_123 = arith.constant 1.000000e+00 : f32
    %412 = vector.broadcast %cst_123 : f32 to vector<8x128xf32>
    %413 = arith.addf %411, %412 : vector<8x128xf32>
    %cst_124 = arith.constant 5.000000e-01 : f32
    %414 = vector.broadcast %cst_124 : f32 to vector<8x128xf32>
    %415 = arith.mulf %414, %413 : vector<8x128xf32>
    %c21 = arith.constant 21 : index
    %416 = arith.index_cast %8 : i32 to index
    %c0_125 = arith.constant 0 : index
    %417 = vector.load %arg2[%c21, %416, %c0_125] : memref<47x8x128xf32, #tpu.memory_space<vmem>>, vector<1x8x128xf32>
    %418 = vector.shape_cast %417 : vector<1x8x128xf32> to vector<8x128xf32>
    %cst_126 = arith.constant 1.000000e+00 : f32
    %419 = vector.broadcast %cst_126 : f32 to vector<8x128xf32>
    %420 = arith.addf %418, %419 : vector<8x128xf32>
    %cst_127 = arith.constant 5.000000e-01 : f32
    %421 = vector.broadcast %cst_127 : f32 to vector<8x128xf32>
    %422 = arith.mulf %421, %420 : vector<8x128xf32>
    %423 = math.log %415 : vector<8x128xf32>
    %cst_128 = arith.constant -1.000000e+02 : f32
    %424 = vector.broadcast %cst_128 : f32 to vector<8x128xf32>
    %425 = arith.maximumf %423, %424 : vector<8x128xf32>
    %cst_129 = arith.constant 1.000000e+00 : f32
    %426 = vector.broadcast %cst_129 : f32 to vector<8x128xf32>
    %427 = arith.subf %426, %415 : vector<8x128xf32>
    %428 = math.log %427 : vector<8x128xf32>
    %cst_130 = arith.constant -1.000000e+02 : f32
    %429 = vector.broadcast %cst_130 : f32 to vector<8x128xf32>
    %430 = arith.maximumf %428, %429 : vector<8x128xf32>
    %431 = arith.mulf %422, %425 : vector<8x128xf32>
    %cst_131 = arith.constant 1.000000e+00 : f32
    %432 = vector.broadcast %cst_131 : f32 to vector<8x128xf32>
    %433 = arith.subf %432, %422 : vector<8x128xf32>
    %434 = arith.mulf %433, %430 : vector<8x128xf32>
    %435 = arith.addf %431, %434 : vector<8x128xf32>
    %cst_132 = arith.constant 0.000000e+00 : f32
    %436 = vector.broadcast %cst_132 : f32 to vector<8x128xf32>
    %437 = arith.subf %436, %435 : vector<8x128xf32>
    %438 = arith.addf %342, %437 : vector<8x128xf32>
    %cst_133 = arith.constant -1.000000e+00 : f32
    %439 = vector.broadcast %cst_133 : f32 to vector<8x128xf32>
    %440 = arith.mulf %439, %402 : vector<8x128xf32>
    %441 = arith.addf %401, %440 : vector<8x128xf32>
    %cst_134 = arith.constant 5.000000e-01 : f32
    %442 = vector.broadcast %cst_134 : f32 to vector<8x128xf32>
    %443 = arith.mulf %442, %441 : vector<8x128xf32>
    %cst_135 = arith.constant 1.000000e+00 : f32
    %444 = vector.broadcast %cst_135 : f32 to vector<8x128xf32>
    %445 = arith.addf %443, %444 : vector<8x128xf32>
    %cst_136 = arith.constant 5.000000e-01 : f32
    %446 = vector.broadcast %cst_136 : f32 to vector<8x128xf32>
    %447 = arith.mulf %446, %445 : vector<8x128xf32>
    %c22 = arith.constant 22 : index
    %448 = arith.index_cast %8 : i32 to index
    %c0_137 = arith.constant 0 : index
    %449 = vector.load %arg2[%c22, %448, %c0_137] : memref<47x8x128xf32, #tpu.memory_space<vmem>>, vector<1x8x128xf32>
    %450 = vector.shape_cast %449 : vector<1x8x128xf32> to vector<8x128xf32>
    %cst_138 = arith.constant 1.000000e+00 : f32
    %451 = vector.broadcast %cst_138 : f32 to vector<8x128xf32>
    %452 = arith.addf %450, %451 : vector<8x128xf32>
    %cst_139 = arith.constant 5.000000e-01 : f32
    %453 = vector.broadcast %cst_139 : f32 to vector<8x128xf32>
    %454 = arith.mulf %453, %452 : vector<8x128xf32>
    %455 = math.log %447 : vector<8x128xf32>
    %cst_140 = arith.constant -1.000000e+02 : f32
    %456 = vector.broadcast %cst_140 : f32 to vector<8x128xf32>
    %457 = arith.maximumf %455, %456 : vector<8x128xf32>
    %cst_141 = arith.constant 1.000000e+00 : f32
    %458 = vector.broadcast %cst_141 : f32 to vector<8x128xf32>
    %459 = arith.subf %458, %447 : vector<8x128xf32>
    %460 = math.log %459 : vector<8x128xf32>
    %cst_142 = arith.constant -1.000000e+02 : f32
    %461 = vector.broadcast %cst_142 : f32 to vector<8x128xf32>
    %462 = arith.maximumf %460, %461 : vector<8x128xf32>
    %463 = arith.mulf %454, %457 : vector<8x128xf32>
    %cst_143 = arith.constant 1.000000e+00 : f32
    %464 = vector.broadcast %cst_143 : f32 to vector<8x128xf32>
    %465 = arith.subf %464, %454 : vector<8x128xf32>
    %466 = arith.mulf %465, %462 : vector<8x128xf32>
    %467 = arith.addf %463, %466 : vector<8x128xf32>
    %cst_144 = arith.constant 0.000000e+00 : f32
    %468 = vector.broadcast %cst_144 : f32 to vector<8x128xf32>
    %469 = arith.subf %468, %467 : vector<8x128xf32>
    %470 = arith.addf %438, %469 : vector<8x128xf32>
    %cst_145 = arith.constant 1.000000e+00 : f32
    %471 = vector.broadcast %cst_145 : f32 to vector<8x128xf32>
    %472 = arith.mulf %471, %405 : vector<8x128xf32>
    %473 = arith.addf %401, %472 : vector<8x128xf32>
    %cst_146 = arith.constant 5.000000e-01 : f32
    %474 = vector.broadcast %cst_146 : f32 to vector<8x128xf32>
    %475 = arith.mulf %474, %473 : vector<8x128xf32>
    %cst_147 = arith.constant 1.000000e+00 : f32
    %476 = vector.broadcast %cst_147 : f32 to vector<8x128xf32>
    %477 = arith.addf %475, %476 : vector<8x128xf32>
    %cst_148 = arith.constant 5.000000e-01 : f32
    %478 = vector.broadcast %cst_148 : f32 to vector<8x128xf32>
    %479 = arith.mulf %478, %477 : vector<8x128xf32>
    %c23 = arith.constant 23 : index
    %480 = arith.index_cast %8 : i32 to index
    %c0_149 = arith.constant 0 : index
    %481 = vector.load %arg2[%c23, %480, %c0_149] : memref<47x8x128xf32, #tpu.memory_space<vmem>>, vector<1x8x128xf32>
    %482 = vector.shape_cast %481 : vector<1x8x128xf32> to vector<8x128xf32>
    %cst_150 = arith.constant 1.000000e+00 : f32
    %483 = vector.broadcast %cst_150 : f32 to vector<8x128xf32>
    %484 = arith.addf %482, %483 : vector<8x128xf32>
    %cst_151 = arith.constant 5.000000e-01 : f32
    %485 = vector.broadcast %cst_151 : f32 to vector<8x128xf32>
    %486 = arith.mulf %485, %484 : vector<8x128xf32>
    %487 = math.log %479 : vector<8x128xf32>
    %cst_152 = arith.constant -1.000000e+02 : f32
    %488 = vector.broadcast %cst_152 : f32 to vector<8x128xf32>
    %489 = arith.maximumf %487, %488 : vector<8x128xf32>
    %cst_153 = arith.constant 1.000000e+00 : f32
    %490 = vector.broadcast %cst_153 : f32 to vector<8x128xf32>
    %491 = arith.subf %490, %479 : vector<8x128xf32>
    %492 = math.log %491 : vector<8x128xf32>
    %cst_154 = arith.constant -1.000000e+02 : f32
    %493 = vector.broadcast %cst_154 : f32 to vector<8x128xf32>
    %494 = arith.maximumf %492, %493 : vector<8x128xf32>
    %495 = arith.mulf %486, %489 : vector<8x128xf32>
    %cst_155 = arith.constant 1.000000e+00 : f32
    %496 = vector.broadcast %cst_155 : f32 to vector<8x128xf32>
    %497 = arith.subf %496, %486 : vector<8x128xf32>
    %498 = arith.mulf %497, %494 : vector<8x128xf32>
    %499 = arith.addf %495, %498 : vector<8x128xf32>
    %cst_156 = arith.constant 0.000000e+00 : f32
    %500 = vector.broadcast %cst_156 : f32 to vector<8x128xf32>
    %501 = arith.subf %500, %499 : vector<8x128xf32>
    %502 = arith.addf %470, %501 : vector<8x128xf32>
    %cst_157 = arith.constant -1.000000e+00 : f32
    %503 = vector.broadcast %cst_157 : f32 to vector<8x128xf32>
    %504 = arith.mulf %503, %405 : vector<8x128xf32>
    %505 = arith.addf %401, %504 : vector<8x128xf32>
    %cst_158 = arith.constant 5.000000e-01 : f32
    %506 = vector.broadcast %cst_158 : f32 to vector<8x128xf32>
    %507 = arith.mulf %506, %505 : vector<8x128xf32>
    %cst_159 = arith.constant 1.000000e+00 : f32
    %508 = vector.broadcast %cst_159 : f32 to vector<8x128xf32>
    %509 = arith.addf %507, %508 : vector<8x128xf32>
    %cst_160 = arith.constant 5.000000e-01 : f32
    %510 = vector.broadcast %cst_160 : f32 to vector<8x128xf32>
    %511 = arith.mulf %510, %509 : vector<8x128xf32>
    %c24 = arith.constant 24 : index
    %512 = arith.index_cast %8 : i32 to index
    %c0_161 = arith.constant 0 : index
    %513 = vector.load %arg2[%c24, %512, %c0_161] : memref<47x8x128xf32, #tpu.memory_space<vmem>>, vector<1x8x128xf32>
    %514 = vector.shape_cast %513 : vector<1x8x128xf32> to vector<8x128xf32>
    %cst_162 = arith.constant 1.000000e+00 : f32
    %515 = vector.broadcast %cst_162 : f32 to vector<8x128xf32>
    %516 = arith.addf %514, %515 : vector<8x128xf32>
    %cst_163 = arith.constant 5.000000e-01 : f32
    %517 = vector.broadcast %cst_163 : f32 to vector<8x128xf32>
    %518 = arith.mulf %517, %516 : vector<8x128xf32>
    %519 = math.log %511 : vector<8x128xf32>
    %cst_164 = arith.constant -1.000000e+02 : f32
    %520 = vector.broadcast %cst_164 : f32 to vector<8x128xf32>
    %521 = arith.maximumf %519, %520 : vector<8x128xf32>
    %cst_165 = arith.constant 1.000000e+00 : f32
    %522 = vector.broadcast %cst_165 : f32 to vector<8x128xf32>
    %523 = arith.subf %522, %511 : vector<8x128xf32>
    %524 = math.log %523 : vector<8x128xf32>
    %cst_166 = arith.constant -1.000000e+02 : f32
    %525 = vector.broadcast %cst_166 : f32 to vector<8x128xf32>
    %526 = arith.maximumf %524, %525 : vector<8x128xf32>
    %527 = arith.mulf %518, %521 : vector<8x128xf32>
    %cst_167 = arith.constant 1.000000e+00 : f32
    %528 = vector.broadcast %cst_167 : f32 to vector<8x128xf32>
    %529 = arith.subf %528, %518 : vector<8x128xf32>
    %530 = arith.mulf %529, %526 : vector<8x128xf32>
    %531 = arith.addf %527, %530 : vector<8x128xf32>
    %cst_168 = arith.constant 0.000000e+00 : f32
    %532 = vector.broadcast %cst_168 : f32 to vector<8x128xf32>
    %533 = arith.subf %532, %531 : vector<8x128xf32>
    %534 = arith.addf %502, %533 : vector<8x128xf32>
    %cst_169 = arith.constant 1.000000e+00 : f32
    %535 = vector.broadcast %cst_169 : f32 to vector<8x128xf32>
    %536 = arith.mulf %535, %406 : vector<8x128xf32>
    %537 = arith.addf %401, %536 : vector<8x128xf32>
    %cst_170 = arith.constant 5.000000e-01 : f32
    %538 = vector.broadcast %cst_170 : f32 to vector<8x128xf32>
    %539 = arith.mulf %538, %537 : vector<8x128xf32>
    %cst_171 = arith.constant 1.000000e+00 : f32
    %540 = vector.broadcast %cst_171 : f32 to vector<8x128xf32>
    %541 = arith.addf %539, %540 : vector<8x128xf32>
    %cst_172 = arith.constant 5.000000e-01 : f32
    %542 = vector.broadcast %cst_172 : f32 to vector<8x128xf32>
    %543 = arith.mulf %542, %541 : vector<8x128xf32>
    %c25 = arith.constant 25 : index
    %544 = arith.index_cast %8 : i32 to index
    %c0_173 = arith.constant 0 : index
    %545 = vector.load %arg2[%c25, %544, %c0_173] : memref<47x8x128xf32, #tpu.memory_space<vmem>>, vector<1x8x128xf32>
    %546 = vector.shape_cast %545 : vector<1x8x128xf32> to vector<8x128xf32>
    %cst_174 = arith.constant 1.000000e+00 : f32
    %547 = vector.broadcast %cst_174 : f32 to vector<8x128xf32>
    %548 = arith.addf %546, %547 : vector<8x128xf32>
    %cst_175 = arith.constant 5.000000e-01 : f32
    %549 = vector.broadcast %cst_175 : f32 to vector<8x128xf32>
    %550 = arith.mulf %549, %548 : vector<8x128xf32>
    %551 = math.log %543 : vector<8x128xf32>
    %cst_176 = arith.constant -1.000000e+02 : f32
    %552 = vector.broadcast %cst_176 : f32 to vector<8x128xf32>
    %553 = arith.maximumf %551, %552 : vector<8x128xf32>
    %cst_177 = arith.constant 1.000000e+00 : f32
    %554 = vector.broadcast %cst_177 : f32 to vector<8x128xf32>
    %555 = arith.subf %554, %543 : vector<8x128xf32>
    %556 = math.log %555 : vector<8x128xf32>
    %cst_178 = arith.constant -1.000000e+02 : f32
    %557 = vector.broadcast %cst_178 : f32 to vector<8x128xf32>
    %558 = arith.maximumf %556, %557 : vector<8x128xf32>
    %559 = arith.mulf %550, %553 : vector<8x128xf32>
    %cst_179 = arith.constant 1.000000e+00 : f32
    %560 = vector.broadcast %cst_179 : f32 to vector<8x128xf32>
    %561 = arith.subf %560, %550 : vector<8x128xf32>
    %562 = arith.mulf %561, %558 : vector<8x128xf32>
    %563 = arith.addf %559, %562 : vector<8x128xf32>
    %cst_180 = arith.constant 0.000000e+00 : f32
    %564 = vector.broadcast %cst_180 : f32 to vector<8x128xf32>
    %565 = arith.subf %564, %563 : vector<8x128xf32>
    %566 = arith.addf %534, %565 : vector<8x128xf32>
    %cst_181 = arith.constant -1.000000e+00 : f32
    %567 = vector.broadcast %cst_181 : f32 to vector<8x128xf32>
    %568 = arith.mulf %567, %406 : vector<8x128xf32>
    %569 = arith.addf %401, %568 : vector<8x128xf32>
    %cst_182 = arith.constant 5.000000e-01 : f32
    %570 = vector.broadcast %cst_182 : f32 to vector<8x128xf32>
    %571 = arith.mulf %570, %569 : vector<8x128xf32>
    %cst_183 = arith.constant 1.000000e+00 : f32
    %572 = vector.broadcast %cst_183 : f32 to vector<8x128xf32>
    %573 = arith.addf %571, %572 : vector<8x128xf32>
    %cst_184 = arith.constant 5.000000e-01 : f32
    %574 = vector.broadcast %cst_184 : f32 to vector<8x128xf32>
    %575 = arith.mulf %574, %573 : vector<8x128xf32>
    %c26 = arith.constant 26 : index
    %576 = arith.index_cast %8 : i32 to index
    %c0_185 = arith.constant 0 : index
    %577 = vector.load %arg2[%c26, %576, %c0_185] : memref<47x8x128xf32, #tpu.memory_space<vmem>>, vector<1x8x128xf32>
    %578 = vector.shape_cast %577 : vector<1x8x128xf32> to vector<8x128xf32>
    %cst_186 = arith.constant 1.000000e+00 : f32
    %579 = vector.broadcast %cst_186 : f32 to vector<8x128xf32>
    %580 = arith.addf %578, %579 : vector<8x128xf32>
    %cst_187 = arith.constant 5.000000e-01 : f32
    %581 = vector.broadcast %cst_187 : f32 to vector<8x128xf32>
    %582 = arith.mulf %581, %580 : vector<8x128xf32>
    %583 = math.log %575 : vector<8x128xf32>
    %cst_188 = arith.constant -1.000000e+02 : f32
    %584 = vector.broadcast %cst_188 : f32 to vector<8x128xf32>
    %585 = arith.maximumf %583, %584 : vector<8x128xf32>
    %cst_189 = arith.constant 1.000000e+00 : f32
    %586 = vector.broadcast %cst_189 : f32 to vector<8x128xf32>
    %587 = arith.subf %586, %575 : vector<8x128xf32>
    %588 = math.log %587 : vector<8x128xf32>
    %cst_190 = arith.constant -1.000000e+02 : f32
    %589 = vector.broadcast %cst_190 : f32 to vector<8x128xf32>
    %590 = arith.maximumf %588, %589 : vector<8x128xf32>
    %591 = arith.mulf %582, %585 : vector<8x128xf32>
    %cst_191 = arith.constant 1.000000e+00 : f32
    %592 = vector.broadcast %cst_191 : f32 to vector<8x128xf32>
    %593 = arith.subf %592, %582 : vector<8x128xf32>
    %594 = arith.mulf %593, %590 : vector<8x128xf32>
    %595 = arith.addf %591, %594 : vector<8x128xf32>
    %cst_192 = arith.constant 0.000000e+00 : f32
    %596 = vector.broadcast %cst_192 : f32 to vector<8x128xf32>
    %597 = arith.subf %596, %595 : vector<8x128xf32>
    %598 = arith.addf %566, %597 : vector<8x128xf32>
    %cst_193 = arith.constant 2.000000e+00 : f32
    %599 = vector.broadcast %cst_193 : f32 to vector<8x128xf32>
    %600 = arith.mulf %599, %44 : vector<8x128xf32>
    %601 = math.cos %600 : vector<8x128xf32>
    %cst_194 = arith.constant 2.000000e+00 : f32
    %602 = vector.broadcast %cst_194 : f32 to vector<8x128xf32>
    %603 = arith.mulf %602, %44 : vector<8x128xf32>
    %604 = math.sin %603 : vector<8x128xf32>
    %605 = math.cos %39 : vector<8x128xf32>
    %606 = math.sin %39 : vector<8x128xf32>
    %607 = arith.mulf %47, %601 : vector<8x128xf32>
    %608 = arith.mulf %47, %604 : vector<8x128xf32>
    %609 = arith.mulf %608, %605 : vector<8x128xf32>
    %610 = arith.mulf %608, %606 : vector<8x128xf32>
    %c13 = arith.constant 13 : index
    %611 = arith.index_cast %8 : i32 to index
    %c0_195 = arith.constant 0 : index
    %612 = vector.load %arg2[%c13, %611, %c0_195] : memref<47x8x128xf32, #tpu.memory_space<vmem>>, vector<1x8x128xf32>
    %613 = vector.shape_cast %612 : vector<1x8x128xf32> to vector<8x128xf32>
    %614 = arith.subf %607, %613 : vector<8x128xf32>
    %c14 = arith.constant 14 : index
    %615 = arith.index_cast %8 : i32 to index
    %c0_196 = arith.constant 0 : index
    %616 = vector.load %arg2[%c14, %615, %c0_196] : memref<47x8x128xf32, #tpu.memory_space<vmem>>, vector<1x8x128xf32>
    %617 = vector.shape_cast %616 : vector<1x8x128xf32> to vector<8x128xf32>
    %618 = arith.subf %609, %617 : vector<8x128xf32>
    %cst_197 = arith.constant 0.000000e+00 : f32
    %619 = vector.broadcast %cst_197 : f32 to vector<8x128xf32>
    %620 = arith.subf %619, %607 : vector<8x128xf32>
    %c15 = arith.constant 15 : index
    %621 = arith.index_cast %8 : i32 to index
    %c0_198 = arith.constant 0 : index
    %622 = vector.load %arg2[%c15, %621, %c0_198] : memref<47x8x128xf32, #tpu.memory_space<vmem>>, vector<1x8x128xf32>
    %623 = vector.shape_cast %622 : vector<1x8x128xf32> to vector<8x128xf32>
    %624 = arith.subf %620, %623 : vector<8x128xf32>
    %c16 = arith.constant 16 : index
    %625 = arith.index_cast %8 : i32 to index
    %c0_199 = arith.constant 0 : index
    %626 = vector.load %arg2[%c16, %625, %c0_199] : memref<47x8x128xf32, #tpu.memory_space<vmem>>, vector<1x8x128xf32>
    %627 = vector.shape_cast %626 : vector<1x8x128xf32> to vector<8x128xf32>
    %628 = arith.subf %610, %627 : vector<8x128xf32>
    %629 = arith.addf %614, %624 : vector<8x128xf32>
    %cst_200 = arith.constant 5.000000e-01 : f32
    %630 = vector.broadcast %cst_200 : f32 to vector<8x128xf32>
    %631 = arith.mulf %630, %629 : vector<8x128xf32>
    %632 = arith.subf %614, %624 : vector<8x128xf32>
    %633 = arith.mulf %632, %632 : vector<8x128xf32>
    %cst_201 = arith.constant 2.500000e-01 : f32
    %634 = vector.broadcast %cst_201 : f32 to vector<8x128xf32>
    %635 = arith.mulf %634, %633 : vector<8x128xf32>
    %636 = arith.mulf %618, %618 : vector<8x128xf32>
    %637 = arith.addf %635, %636 : vector<8x128xf32>
    %638 = arith.mulf %628, %628 : vector<8x128xf32>
    %639 = arith.addf %637, %638 : vector<8x128xf32>
    %640 = math.sqrt %639 : vector<8x128xf32>
    %641 = arith.addf %631, %640 : vector<8x128xf32>
    %642 = math.absf %641 : vector<8x128xf32>
    %643 = arith.subf %631, %640 : vector<8x128xf32>
    %644 = math.absf %643 : vector<8x128xf32>
    %645 = arith.addf %642, %644 : vector<8x128xf32>
    %cst_202 = arith.constant 5.000000e-01 : f32
    %646 = vector.broadcast %cst_202 : f32 to vector<8x128xf32>
    %647 = arith.mulf %646, %645 : vector<8x128xf32>
    %648 = arith.addf %392, %647 : vector<8x128xf32>
    %649 = arith.addf %332, %334 : vector<8x128xf32>
    %650 = arith.subf %332, %334 : vector<8x128xf32>
    %651 = arith.mulf %607, %650 : vector<8x128xf32>
    %652 = arith.mulf %609, %335 : vector<8x128xf32>
    %653 = arith.mulf %610, %336 : vector<8x128xf32>
    %654 = arith.addf %652, %653 : vector<8x128xf32>
    %cst_203 = arith.constant 2.000000e+00 : f32
    %655 = vector.broadcast %cst_203 : f32 to vector<8x128xf32>
    %656 = arith.mulf %655, %654 : vector<8x128xf32>
    %657 = arith.addf %651, %656 : vector<8x128xf32>
    %658 = arith.mulf %609, %649 : vector<8x128xf32>
    %659 = arith.mulf %610, %649 : vector<8x128xf32>
    %cst_204 = arith.constant 0.000000e+00 : f32
    %660 = vector.broadcast %cst_204 : f32 to vector<8x128xf32>
    %661 = arith.subf %660, %659 : vector<8x128xf32>
    %662 = arith.mulf %607, %649 : vector<8x128xf32>
    %cst_205 = arith.constant 1.000000e+00 : f32
    %663 = vector.broadcast %cst_205 : f32 to vector<8x128xf32>
    %664 = arith.mulf %663, %658 : vector<8x128xf32>
    %665 = arith.addf %657, %664 : vector<8x128xf32>
    %cst_206 = arith.constant 5.000000e-01 : f32
    %666 = vector.broadcast %cst_206 : f32 to vector<8x128xf32>
    %667 = arith.mulf %666, %665 : vector<8x128xf32>
    %cst_207 = arith.constant 1.000000e+00 : f32
    %668 = vector.broadcast %cst_207 : f32 to vector<8x128xf32>
    %669 = arith.addf %667, %668 : vector<8x128xf32>
    %cst_208 = arith.constant 5.000000e-01 : f32
    %670 = vector.broadcast %cst_208 : f32 to vector<8x128xf32>
    %671 = arith.mulf %670, %669 : vector<8x128xf32>
    %c27 = arith.constant 27 : index
    %672 = arith.index_cast %8 : i32 to index
    %c0_209 = arith.constant 0 : index
    %673 = vector.load %arg2[%c27, %672, %c0_209] : memref<47x8x128xf32, #tpu.memory_space<vmem>>, vector<1x8x128xf32>
    %674 = vector.shape_cast %673 : vector<1x8x128xf32> to vector<8x128xf32>
    %cst_210 = arith.constant 1.000000e+00 : f32
    %675 = vector.broadcast %cst_210 : f32 to vector<8x128xf32>
    %676 = arith.addf %674, %675 : vector<8x128xf32>
    %cst_211 = arith.constant 5.000000e-01 : f32
    %677 = vector.broadcast %cst_211 : f32 to vector<8x128xf32>
    %678 = arith.mulf %677, %676 : vector<8x128xf32>
    %679 = math.log %671 : vector<8x128xf32>
    %cst_212 = arith.constant -1.000000e+02 : f32
    %680 = vector.broadcast %cst_212 : f32 to vector<8x128xf32>
    %681 = arith.maximumf %679, %680 : vector<8x128xf32>
    %cst_213 = arith.constant 1.000000e+00 : f32
    %682 = vector.broadcast %cst_213 : f32 to vector<8x128xf32>
    %683 = arith.subf %682, %671 : vector<8x128xf32>
    %684 = math.log %683 : vector<8x128xf32>
    %cst_214 = arith.constant -1.000000e+02 : f32
    %685 = vector.broadcast %cst_214 : f32 to vector<8x128xf32>
    %686 = arith.maximumf %684, %685 : vector<8x128xf32>
    %687 = arith.mulf %678, %681 : vector<8x128xf32>
    %cst_215 = arith.constant 1.000000e+00 : f32
    %688 = vector.broadcast %cst_215 : f32 to vector<8x128xf32>
    %689 = arith.subf %688, %678 : vector<8x128xf32>
    %690 = arith.mulf %689, %686 : vector<8x128xf32>
    %691 = arith.addf %687, %690 : vector<8x128xf32>
    %cst_216 = arith.constant 0.000000e+00 : f32
    %692 = vector.broadcast %cst_216 : f32 to vector<8x128xf32>
    %693 = arith.subf %692, %691 : vector<8x128xf32>
    %694 = arith.addf %598, %693 : vector<8x128xf32>
    %cst_217 = arith.constant -1.000000e+00 : f32
    %695 = vector.broadcast %cst_217 : f32 to vector<8x128xf32>
    %696 = arith.mulf %695, %658 : vector<8x128xf32>
    %697 = arith.addf %657, %696 : vector<8x128xf32>
    %cst_218 = arith.constant 5.000000e-01 : f32
    %698 = vector.broadcast %cst_218 : f32 to vector<8x128xf32>
    %699 = arith.mulf %698, %697 : vector<8x128xf32>
    %cst_219 = arith.constant 1.000000e+00 : f32
    %700 = vector.broadcast %cst_219 : f32 to vector<8x128xf32>
    %701 = arith.addf %699, %700 : vector<8x128xf32>
    %cst_220 = arith.constant 5.000000e-01 : f32
    %702 = vector.broadcast %cst_220 : f32 to vector<8x128xf32>
    %703 = arith.mulf %702, %701 : vector<8x128xf32>
    %c28 = arith.constant 28 : index
    %704 = arith.index_cast %8 : i32 to index
    %c0_221 = arith.constant 0 : index
    %705 = vector.load %arg2[%c28, %704, %c0_221] : memref<47x8x128xf32, #tpu.memory_space<vmem>>, vector<1x8x128xf32>
    %706 = vector.shape_cast %705 : vector<1x8x128xf32> to vector<8x128xf32>
    %cst_222 = arith.constant 1.000000e+00 : f32
    %707 = vector.broadcast %cst_222 : f32 to vector<8x128xf32>
    %708 = arith.addf %706, %707 : vector<8x128xf32>
    %cst_223 = arith.constant 5.000000e-01 : f32
    %709 = vector.broadcast %cst_223 : f32 to vector<8x128xf32>
    %710 = arith.mulf %709, %708 : vector<8x128xf32>
    %711 = math.log %703 : vector<8x128xf32>
    %cst_224 = arith.constant -1.000000e+02 : f32
    %712 = vector.broadcast %cst_224 : f32 to vector<8x128xf32>
    %713 = arith.maximumf %711, %712 : vector<8x128xf32>
    %cst_225 = arith.constant 1.000000e+00 : f32
    %714 = vector.broadcast %cst_225 : f32 to vector<8x128xf32>
    %715 = arith.subf %714, %703 : vector<8x128xf32>
    %716 = math.log %715 : vector<8x128xf32>
    %cst_226 = arith.constant -1.000000e+02 : f32
    %717 = vector.broadcast %cst_226 : f32 to vector<8x128xf32>
    %718 = arith.maximumf %716, %717 : vector<8x128xf32>
    %719 = arith.mulf %710, %713 : vector<8x128xf32>
    %cst_227 = arith.constant 1.000000e+00 : f32
    %720 = vector.broadcast %cst_227 : f32 to vector<8x128xf32>
    %721 = arith.subf %720, %710 : vector<8x128xf32>
    %722 = arith.mulf %721, %718 : vector<8x128xf32>
    %723 = arith.addf %719, %722 : vector<8x128xf32>
    %cst_228 = arith.constant 0.000000e+00 : f32
    %724 = vector.broadcast %cst_228 : f32 to vector<8x128xf32>
    %725 = arith.subf %724, %723 : vector<8x128xf32>
    %726 = arith.addf %694, %725 : vector<8x128xf32>
    %cst_229 = arith.constant 1.000000e+00 : f32
    %727 = vector.broadcast %cst_229 : f32 to vector<8x128xf32>
    %728 = arith.mulf %727, %661 : vector<8x128xf32>
    %729 = arith.addf %657, %728 : vector<8x128xf32>
    %cst_230 = arith.constant 5.000000e-01 : f32
    %730 = vector.broadcast %cst_230 : f32 to vector<8x128xf32>
    %731 = arith.mulf %730, %729 : vector<8x128xf32>
    %cst_231 = arith.constant 1.000000e+00 : f32
    %732 = vector.broadcast %cst_231 : f32 to vector<8x128xf32>
    %733 = arith.addf %731, %732 : vector<8x128xf32>
    %cst_232 = arith.constant 5.000000e-01 : f32
    %734 = vector.broadcast %cst_232 : f32 to vector<8x128xf32>
    %735 = arith.mulf %734, %733 : vector<8x128xf32>
    %c29 = arith.constant 29 : index
    %736 = arith.index_cast %8 : i32 to index
    %c0_233 = arith.constant 0 : index
    %737 = vector.load %arg2[%c29, %736, %c0_233] : memref<47x8x128xf32, #tpu.memory_space<vmem>>, vector<1x8x128xf32>
    %738 = vector.shape_cast %737 : vector<1x8x128xf32> to vector<8x128xf32>
    %cst_234 = arith.constant 1.000000e+00 : f32
    %739 = vector.broadcast %cst_234 : f32 to vector<8x128xf32>
    %740 = arith.addf %738, %739 : vector<8x128xf32>
    %cst_235 = arith.constant 5.000000e-01 : f32
    %741 = vector.broadcast %cst_235 : f32 to vector<8x128xf32>
    %742 = arith.mulf %741, %740 : vector<8x128xf32>
    %743 = math.log %735 : vector<8x128xf32>
    %cst_236 = arith.constant -1.000000e+02 : f32
    %744 = vector.broadcast %cst_236 : f32 to vector<8x128xf32>
    %745 = arith.maximumf %743, %744 : vector<8x128xf32>
    %cst_237 = arith.constant 1.000000e+00 : f32
    %746 = vector.broadcast %cst_237 : f32 to vector<8x128xf32>
    %747 = arith.subf %746, %735 : vector<8x128xf32>
    %748 = math.log %747 : vector<8x128xf32>
    %cst_238 = arith.constant -1.000000e+02 : f32
    %749 = vector.broadcast %cst_238 : f32 to vector<8x128xf32>
    %750 = arith.maximumf %748, %749 : vector<8x128xf32>
    %751 = arith.mulf %742, %745 : vector<8x128xf32>
    %cst_239 = arith.constant 1.000000e+00 : f32
    %752 = vector.broadcast %cst_239 : f32 to vector<8x128xf32>
    %753 = arith.subf %752, %742 : vector<8x128xf32>
    %754 = arith.mulf %753, %750 : vector<8x128xf32>
    %755 = arith.addf %751, %754 : vector<8x128xf32>
    %cst_240 = arith.constant 0.000000e+00 : f32
    %756 = vector.broadcast %cst_240 : f32 to vector<8x128xf32>
    %757 = arith.subf %756, %755 : vector<8x128xf32>
    %758 = arith.addf %726, %757 : vector<8x128xf32>
    %cst_241 = arith.constant -1.000000e+00 : f32
    %759 = vector.broadcast %cst_241 : f32 to vector<8x128xf32>
    %760 = arith.mulf %759, %661 : vector<8x128xf32>
    %761 = arith.addf %657, %760 : vector<8x128xf32>
    %cst_242 = arith.constant 5.000000e-01 : f32
    %762 = vector.broadcast %cst_242 : f32 to vector<8x128xf32>
    %763 = arith.mulf %762, %761 : vector<8x128xf32>
    %cst_243 = arith.constant 1.000000e+00 : f32
    %764 = vector.broadcast %cst_243 : f32 to vector<8x128xf32>
    %765 = arith.addf %763, %764 : vector<8x128xf32>
    %cst_244 = arith.constant 5.000000e-01 : f32
    %766 = vector.broadcast %cst_244 : f32 to vector<8x128xf32>
    %767 = arith.mulf %766, %765 : vector<8x128xf32>
    %c30 = arith.constant 30 : index
    %768 = arith.index_cast %8 : i32 to index
    %c0_245 = arith.constant 0 : index
    %769 = vector.load %arg2[%c30, %768, %c0_245] : memref<47x8x128xf32, #tpu.memory_space<vmem>>, vector<1x8x128xf32>
    %770 = vector.shape_cast %769 : vector<1x8x128xf32> to vector<8x128xf32>
    %cst_246 = arith.constant 1.000000e+00 : f32
    %771 = vector.broadcast %cst_246 : f32 to vector<8x128xf32>
    %772 = arith.addf %770, %771 : vector<8x128xf32>
    %cst_247 = arith.constant 5.000000e-01 : f32
    %773 = vector.broadcast %cst_247 : f32 to vector<8x128xf32>
    %774 = arith.mulf %773, %772 : vector<8x128xf32>
    %775 = math.log %767 : vector<8x128xf32>
    %cst_248 = arith.constant -1.000000e+02 : f32
    %776 = vector.broadcast %cst_248 : f32 to vector<8x128xf32>
    %777 = arith.maximumf %775, %776 : vector<8x128xf32>
    %cst_249 = arith.constant 1.000000e+00 : f32
    %778 = vector.broadcast %cst_249 : f32 to vector<8x128xf32>
    %779 = arith.subf %778, %767 : vector<8x128xf32>
    %780 = math.log %779 : vector<8x128xf32>
    %cst_250 = arith.constant -1.000000e+02 : f32
    %781 = vector.broadcast %cst_250 : f32 to vector<8x128xf32>
    %782 = arith.maximumf %780, %781 : vector<8x128xf32>
    %783 = arith.mulf %774, %777 : vector<8x128xf32>
    %cst_251 = arith.constant 1.000000e+00 : f32
    %784 = vector.broadcast %cst_251 : f32 to vector<8x128xf32>
    %785 = arith.subf %784, %774 : vector<8x128xf32>
    %786 = arith.mulf %785, %782 : vector<8x128xf32>
    %787 = arith.addf %783, %786 : vector<8x128xf32>
    %cst_252 = arith.constant 0.000000e+00 : f32
    %788 = vector.broadcast %cst_252 : f32 to vector<8x128xf32>
    %789 = arith.subf %788, %787 : vector<8x128xf32>
    %790 = arith.addf %758, %789 : vector<8x128xf32>
    %cst_253 = arith.constant 1.000000e+00 : f32
    %791 = vector.broadcast %cst_253 : f32 to vector<8x128xf32>
    %792 = arith.mulf %791, %662 : vector<8x128xf32>
    %793 = arith.addf %657, %792 : vector<8x128xf32>
    %cst_254 = arith.constant 5.000000e-01 : f32
    %794 = vector.broadcast %cst_254 : f32 to vector<8x128xf32>
    %795 = arith.mulf %794, %793 : vector<8x128xf32>
    %cst_255 = arith.constant 1.000000e+00 : f32
    %796 = vector.broadcast %cst_255 : f32 to vector<8x128xf32>
    %797 = arith.addf %795, %796 : vector<8x128xf32>
    %cst_256 = arith.constant 5.000000e-01 : f32
    %798 = vector.broadcast %cst_256 : f32 to vector<8x128xf32>
    %799 = arith.mulf %798, %797 : vector<8x128xf32>
    %c31 = arith.constant 31 : index
    %800 = arith.index_cast %8 : i32 to index
    %c0_257 = arith.constant 0 : index
    %801 = vector.load %arg2[%c31, %800, %c0_257] : memref<47x8x128xf32, #tpu.memory_space<vmem>>, vector<1x8x128xf32>
    %802 = vector.shape_cast %801 : vector<1x8x128xf32> to vector<8x128xf32>
    %cst_258 = arith.constant 1.000000e+00 : f32
    %803 = vector.broadcast %cst_258 : f32 to vector<8x128xf32>
    %804 = arith.addf %802, %803 : vector<8x128xf32>
    %cst_259 = arith.constant 5.000000e-01 : f32
    %805 = vector.broadcast %cst_259 : f32 to vector<8x128xf32>
    %806 = arith.mulf %805, %804 : vector<8x128xf32>
    %807 = math.log %799 : vector<8x128xf32>
    %cst_260 = arith.constant -1.000000e+02 : f32
    %808 = vector.broadcast %cst_260 : f32 to vector<8x128xf32>
    %809 = arith.maximumf %807, %808 : vector<8x128xf32>
    %cst_261 = arith.constant 1.000000e+00 : f32
    %810 = vector.broadcast %cst_261 : f32 to vector<8x128xf32>
    %811 = arith.subf %810, %799 : vector<8x128xf32>
    %812 = math.log %811 : vector<8x128xf32>
    %cst_262 = arith.constant -1.000000e+02 : f32
    %813 = vector.broadcast %cst_262 : f32 to vector<8x128xf32>
    %814 = arith.maximumf %812, %813 : vector<8x128xf32>
    %815 = arith.mulf %806, %809 : vector<8x128xf32>
    %cst_263 = arith.constant 1.000000e+00 : f32
    %816 = vector.broadcast %cst_263 : f32 to vector<8x128xf32>
    %817 = arith.subf %816, %806 : vector<8x128xf32>
    %818 = arith.mulf %817, %814 : vector<8x128xf32>
    %819 = arith.addf %815, %818 : vector<8x128xf32>
    %cst_264 = arith.constant 0.000000e+00 : f32
    %820 = vector.broadcast %cst_264 : f32 to vector<8x128xf32>
    %821 = arith.subf %820, %819 : vector<8x128xf32>
    %822 = arith.addf %790, %821 : vector<8x128xf32>
    %cst_265 = arith.constant -1.000000e+00 : f32
    %823 = vector.broadcast %cst_265 : f32 to vector<8x128xf32>
    %824 = arith.mulf %823, %662 : vector<8x128xf32>
    %825 = arith.addf %657, %824 : vector<8x128xf32>
    %cst_266 = arith.constant 5.000000e-01 : f32
    %826 = vector.broadcast %cst_266 : f32 to vector<8x128xf32>
    %827 = arith.mulf %826, %825 : vector<8x128xf32>
    %cst_267 = arith.constant 1.000000e+00 : f32
    %828 = vector.broadcast %cst_267 : f32 to vector<8x128xf32>
    %829 = arith.addf %827, %828 : vector<8x128xf32>
    %cst_268 = arith.constant 5.000000e-01 : f32
    %830 = vector.broadcast %cst_268 : f32 to vector<8x128xf32>
    %831 = arith.mulf %830, %829 : vector<8x128xf32>
    %c32 = arith.constant 32 : index
    %832 = arith.index_cast %8 : i32 to index
    %c0_269 = arith.constant 0 : index
    %833 = vector.load %arg2[%c32, %832, %c0_269] : memref<47x8x128xf32, #tpu.memory_space<vmem>>, vector<1x8x128xf32>
    %834 = vector.shape_cast %833 : vector<1x8x128xf32> to vector<8x128xf32>
    %cst_270 = arith.constant 1.000000e+00 : f32
    %835 = vector.broadcast %cst_270 : f32 to vector<8x128xf32>
    %836 = arith.addf %834, %835 : vector<8x128xf32>
    %cst_271 = arith.constant 5.000000e-01 : f32
    %837 = vector.broadcast %cst_271 : f32 to vector<8x128xf32>
    %838 = arith.mulf %837, %836 : vector<8x128xf32>
    %839 = math.log %831 : vector<8x128xf32>
    %cst_272 = arith.constant -1.000000e+02 : f32
    %840 = vector.broadcast %cst_272 : f32 to vector<8x128xf32>
    %841 = arith.maximumf %839, %840 : vector<8x128xf32>
    %cst_273 = arith.constant 1.000000e+00 : f32
    %842 = vector.broadcast %cst_273 : f32 to vector<8x128xf32>
    %843 = arith.subf %842, %831 : vector<8x128xf32>
    %844 = math.log %843 : vector<8x128xf32>
    %cst_274 = arith.constant -1.000000e+02 : f32
    %845 = vector.broadcast %cst_274 : f32 to vector<8x128xf32>
    %846 = arith.maximumf %844, %845 : vector<8x128xf32>
    %847 = arith.mulf %838, %841 : vector<8x128xf32>
    %cst_275 = arith.constant 1.000000e+00 : f32
    %848 = vector.broadcast %cst_275 : f32 to vector<8x128xf32>
    %849 = arith.subf %848, %838 : vector<8x128xf32>
    %850 = arith.mulf %849, %846 : vector<8x128xf32>
    %851 = arith.addf %847, %850 : vector<8x128xf32>
    %cst_276 = arith.constant 0.000000e+00 : f32
    %852 = vector.broadcast %cst_276 : f32 to vector<8x128xf32>
    %853 = arith.subf %852, %851 : vector<8x128xf32>
    %854 = arith.addf %822, %853 : vector<8x128xf32>
    %cst_277 = arith.constant 2.000000e+00 : f32
    %855 = vector.broadcast %cst_277 : f32 to vector<8x128xf32>
    %856 = arith.mulf %855, %59 : vector<8x128xf32>
    %857 = math.cos %856 : vector<8x128xf32>
    %cst_278 = arith.constant 2.000000e+00 : f32
    %858 = vector.broadcast %cst_278 : f32 to vector<8x128xf32>
    %859 = arith.mulf %858, %59 : vector<8x128xf32>
    %860 = math.sin %859 : vector<8x128xf32>
    %861 = math.cos %54 : vector<8x128xf32>
    %862 = math.sin %54 : vector<8x128xf32>
    %863 = arith.mulf %62, %857 : vector<8x128xf32>
    %864 = arith.mulf %62, %860 : vector<8x128xf32>
    %865 = arith.mulf %864, %861 : vector<8x128xf32>
    %866 = arith.mulf %864, %862 : vector<8x128xf32>
    %c17 = arith.constant 17 : index
    %867 = arith.index_cast %8 : i32 to index
    %c0_279 = arith.constant 0 : index
    %868 = vector.load %arg2[%c17, %867, %c0_279] : memref<47x8x128xf32, #tpu.memory_space<vmem>>, vector<1x8x128xf32>
    %869 = vector.shape_cast %868 : vector<1x8x128xf32> to vector<8x128xf32>
    %870 = arith.subf %863, %869 : vector<8x128xf32>
    %c18 = arith.constant 18 : index
    %871 = arith.index_cast %8 : i32 to index
    %c0_280 = arith.constant 0 : index
    %872 = vector.load %arg2[%c18, %871, %c0_280] : memref<47x8x128xf32, #tpu.memory_space<vmem>>, vector<1x8x128xf32>
    %873 = vector.shape_cast %872 : vector<1x8x128xf32> to vector<8x128xf32>
    %874 = arith.subf %865, %873 : vector<8x128xf32>
    %cst_281 = arith.constant 0.000000e+00 : f32
    %875 = vector.broadcast %cst_281 : f32 to vector<8x128xf32>
    %876 = arith.subf %875, %863 : vector<8x128xf32>
    %c19 = arith.constant 19 : index
    %877 = arith.index_cast %8 : i32 to index
    %c0_282 = arith.constant 0 : index
    %878 = vector.load %arg2[%c19, %877, %c0_282] : memref<47x8x128xf32, #tpu.memory_space<vmem>>, vector<1x8x128xf32>
    %879 = vector.shape_cast %878 : vector<1x8x128xf32> to vector<8x128xf32>
    %880 = arith.subf %876, %879 : vector<8x128xf32>
    %c20 = arith.constant 20 : index
    %881 = arith.index_cast %8 : i32 to index
    %c0_283 = arith.constant 0 : index
    %882 = vector.load %arg2[%c20, %881, %c0_283] : memref<47x8x128xf32, #tpu.memory_space<vmem>>, vector<1x8x128xf32>
    %883 = vector.shape_cast %882 : vector<1x8x128xf32> to vector<8x128xf32>
    %884 = arith.subf %866, %883 : vector<8x128xf32>
    %885 = arith.addf %870, %880 : vector<8x128xf32>
    %cst_284 = arith.constant 5.000000e-01 : f32
    %886 = vector.broadcast %cst_284 : f32 to vector<8x128xf32>
    %887 = arith.mulf %886, %885 : vector<8x128xf32>
    %888 = arith.subf %870, %880 : vector<8x128xf32>
    %889 = arith.mulf %888, %888 : vector<8x128xf32>
    %cst_285 = arith.constant 2.500000e-01 : f32
    %890 = vector.broadcast %cst_285 : f32 to vector<8x128xf32>
    %891 = arith.mulf %890, %889 : vector<8x128xf32>
    %892 = arith.mulf %874, %874 : vector<8x128xf32>
    %893 = arith.addf %891, %892 : vector<8x128xf32>
    %894 = arith.mulf %884, %884 : vector<8x128xf32>
    %895 = arith.addf %893, %894 : vector<8x128xf32>
    %896 = math.sqrt %895 : vector<8x128xf32>
    %897 = arith.addf %887, %896 : vector<8x128xf32>
    %898 = math.absf %897 : vector<8x128xf32>
    %899 = arith.subf %887, %896 : vector<8x128xf32>
    %900 = math.absf %899 : vector<8x128xf32>
    %901 = arith.addf %898, %900 : vector<8x128xf32>
    %cst_286 = arith.constant 5.000000e-01 : f32
    %902 = vector.broadcast %cst_286 : f32 to vector<8x128xf32>
    %903 = arith.mulf %902, %901 : vector<8x128xf32>
    %904 = arith.addf %648, %903 : vector<8x128xf32>
    %905 = arith.addf %337, %338 : vector<8x128xf32>
    %906 = arith.subf %337, %338 : vector<8x128xf32>
    %907 = arith.mulf %863, %906 : vector<8x128xf32>
    %908 = arith.mulf %865, %339 : vector<8x128xf32>
    %909 = arith.mulf %866, %340 : vector<8x128xf32>
    %910 = arith.addf %908, %909 : vector<8x128xf32>
    %cst_287 = arith.constant 2.000000e+00 : f32
    %911 = vector.broadcast %cst_287 : f32 to vector<8x128xf32>
    %912 = arith.mulf %911, %910 : vector<8x128xf32>
    %913 = arith.addf %907, %912 : vector<8x128xf32>
    %914 = arith.mulf %865, %905 : vector<8x128xf32>
    %915 = arith.mulf %866, %905 : vector<8x128xf32>
    %cst_288 = arith.constant 0.000000e+00 : f32
    %916 = vector.broadcast %cst_288 : f32 to vector<8x128xf32>
    %917 = arith.subf %916, %915 : vector<8x128xf32>
    %918 = arith.mulf %863, %905 : vector<8x128xf32>
    %cst_289 = arith.constant 1.000000e+00 : f32
    %919 = vector.broadcast %cst_289 : f32 to vector<8x128xf32>
    %920 = arith.mulf %919, %914 : vector<8x128xf32>
    %921 = arith.addf %913, %920 : vector<8x128xf32>
    %cst_290 = arith.constant 5.000000e-01 : f32
    %922 = vector.broadcast %cst_290 : f32 to vector<8x128xf32>
    %923 = arith.mulf %922, %921 : vector<8x128xf32>
    %cst_291 = arith.constant 1.000000e+00 : f32
    %924 = vector.broadcast %cst_291 : f32 to vector<8x128xf32>
    %925 = arith.addf %923, %924 : vector<8x128xf32>
    %cst_292 = arith.constant 5.000000e-01 : f32
    %926 = vector.broadcast %cst_292 : f32 to vector<8x128xf32>
    %927 = arith.mulf %926, %925 : vector<8x128xf32>
    %c33 = arith.constant 33 : index
    %928 = arith.index_cast %8 : i32 to index
    %c0_293 = arith.constant 0 : index
    %929 = vector.load %arg2[%c33, %928, %c0_293] : memref<47x8x128xf32, #tpu.memory_space<vmem>>, vector<1x8x128xf32>
    %930 = vector.shape_cast %929 : vector<1x8x128xf32> to vector<8x128xf32>
    %cst_294 = arith.constant 1.000000e+00 : f32
    %931 = vector.broadcast %cst_294 : f32 to vector<8x128xf32>
    %932 = arith.addf %930, %931 : vector<8x128xf32>
    %cst_295 = arith.constant 5.000000e-01 : f32
    %933 = vector.broadcast %cst_295 : f32 to vector<8x128xf32>
    %934 = arith.mulf %933, %932 : vector<8x128xf32>
    %935 = math.log %927 : vector<8x128xf32>
    %cst_296 = arith.constant -1.000000e+02 : f32
    %936 = vector.broadcast %cst_296 : f32 to vector<8x128xf32>
    %937 = arith.maximumf %935, %936 : vector<8x128xf32>
    %cst_297 = arith.constant 1.000000e+00 : f32
    %938 = vector.broadcast %cst_297 : f32 to vector<8x128xf32>
    %939 = arith.subf %938, %927 : vector<8x128xf32>
    %940 = math.log %939 : vector<8x128xf32>
    %cst_298 = arith.constant -1.000000e+02 : f32
    %941 = vector.broadcast %cst_298 : f32 to vector<8x128xf32>
    %942 = arith.maximumf %940, %941 : vector<8x128xf32>
    %943 = arith.mulf %934, %937 : vector<8x128xf32>
    %cst_299 = arith.constant 1.000000e+00 : f32
    %944 = vector.broadcast %cst_299 : f32 to vector<8x128xf32>
    %945 = arith.subf %944, %934 : vector<8x128xf32>
    %946 = arith.mulf %945, %942 : vector<8x128xf32>
    %947 = arith.addf %943, %946 : vector<8x128xf32>
    %cst_300 = arith.constant 0.000000e+00 : f32
    %948 = vector.broadcast %cst_300 : f32 to vector<8x128xf32>
    %949 = arith.subf %948, %947 : vector<8x128xf32>
    %950 = arith.addf %854, %949 : vector<8x128xf32>
    %cst_301 = arith.constant -1.000000e+00 : f32
    %951 = vector.broadcast %cst_301 : f32 to vector<8x128xf32>
    %952 = arith.mulf %951, %914 : vector<8x128xf32>
    %953 = arith.addf %913, %952 : vector<8x128xf32>
    %cst_302 = arith.constant 5.000000e-01 : f32
    %954 = vector.broadcast %cst_302 : f32 to vector<8x128xf32>
    %955 = arith.mulf %954, %953 : vector<8x128xf32>
    %cst_303 = arith.constant 1.000000e+00 : f32
    %956 = vector.broadcast %cst_303 : f32 to vector<8x128xf32>
    %957 = arith.addf %955, %956 : vector<8x128xf32>
    %cst_304 = arith.constant 5.000000e-01 : f32
    %958 = vector.broadcast %cst_304 : f32 to vector<8x128xf32>
    %959 = arith.mulf %958, %957 : vector<8x128xf32>
    %c34 = arith.constant 34 : index
    %960 = arith.index_cast %8 : i32 to index
    %c0_305 = arith.constant 0 : index
    %961 = vector.load %arg2[%c34, %960, %c0_305] : memref<47x8x128xf32, #tpu.memory_space<vmem>>, vector<1x8x128xf32>
    %962 = vector.shape_cast %961 : vector<1x8x128xf32> to vector<8x128xf32>
    %cst_306 = arith.constant 1.000000e+00 : f32
    %963 = vector.broadcast %cst_306 : f32 to vector<8x128xf32>
    %964 = arith.addf %962, %963 : vector<8x128xf32>
    %cst_307 = arith.constant 5.000000e-01 : f32
    %965 = vector.broadcast %cst_307 : f32 to vector<8x128xf32>
    %966 = arith.mulf %965, %964 : vector<8x128xf32>
    %967 = math.log %959 : vector<8x128xf32>
    %cst_308 = arith.constant -1.000000e+02 : f32
    %968 = vector.broadcast %cst_308 : f32 to vector<8x128xf32>
    %969 = arith.maximumf %967, %968 : vector<8x128xf32>
    %cst_309 = arith.constant 1.000000e+00 : f32
    %970 = vector.broadcast %cst_309 : f32 to vector<8x128xf32>
    %971 = arith.subf %970, %959 : vector<8x128xf32>
    %972 = math.log %971 : vector<8x128xf32>
    %cst_310 = arith.constant -1.000000e+02 : f32
    %973 = vector.broadcast %cst_310 : f32 to vector<8x128xf32>
    %974 = arith.maximumf %972, %973 : vector<8x128xf32>
    %975 = arith.mulf %966, %969 : vector<8x128xf32>
    %cst_311 = arith.constant 1.000000e+00 : f32
    %976 = vector.broadcast %cst_311 : f32 to vector<8x128xf32>
    %977 = arith.subf %976, %966 : vector<8x128xf32>
    %978 = arith.mulf %977, %974 : vector<8x128xf32>
    %979 = arith.addf %975, %978 : vector<8x128xf32>
    %cst_312 = arith.constant 0.000000e+00 : f32
    %980 = vector.broadcast %cst_312 : f32 to vector<8x128xf32>
    %981 = arith.subf %980, %979 : vector<8x128xf32>
    %982 = arith.addf %950, %981 : vector<8x128xf32>
    %cst_313 = arith.constant 1.000000e+00 : f32
    %983 = vector.broadcast %cst_313 : f32 to vector<8x128xf32>
    %984 = arith.mulf %983, %917 : vector<8x128xf32>
    %985 = arith.addf %913, %984 : vector<8x128xf32>
    %cst_314 = arith.constant 5.000000e-01 : f32
    %986 = vector.broadcast %cst_314 : f32 to vector<8x128xf32>
    %987 = arith.mulf %986, %985 : vector<8x128xf32>
    %cst_315 = arith.constant 1.000000e+00 : f32
    %988 = vector.broadcast %cst_315 : f32 to vector<8x128xf32>
    %989 = arith.addf %987, %988 : vector<8x128xf32>
    %cst_316 = arith.constant 5.000000e-01 : f32
    %990 = vector.broadcast %cst_316 : f32 to vector<8x128xf32>
    %991 = arith.mulf %990, %989 : vector<8x128xf32>
    %c35 = arith.constant 35 : index
    %992 = arith.index_cast %8 : i32 to index
    %c0_317 = arith.constant 0 : index
    %993 = vector.load %arg2[%c35, %992, %c0_317] : memref<47x8x128xf32, #tpu.memory_space<vmem>>, vector<1x8x128xf32>
    %994 = vector.shape_cast %993 : vector<1x8x128xf32> to vector<8x128xf32>
    %cst_318 = arith.constant 1.000000e+00 : f32
    %995 = vector.broadcast %cst_318 : f32 to vector<8x128xf32>
    %996 = arith.addf %994, %995 : vector<8x128xf32>
    %cst_319 = arith.constant 5.000000e-01 : f32
    %997 = vector.broadcast %cst_319 : f32 to vector<8x128xf32>
    %998 = arith.mulf %997, %996 : vector<8x128xf32>
    %999 = math.log %991 : vector<8x128xf32>
    %cst_320 = arith.constant -1.000000e+02 : f32
    %1000 = vector.broadcast %cst_320 : f32 to vector<8x128xf32>
    %1001 = arith.maximumf %999, %1000 : vector<8x128xf32>
    %cst_321 = arith.constant 1.000000e+00 : f32
    %1002 = vector.broadcast %cst_321 : f32 to vector<8x128xf32>
    %1003 = arith.subf %1002, %991 : vector<8x128xf32>
    %1004 = math.log %1003 : vector<8x128xf32>
    %cst_322 = arith.constant -1.000000e+02 : f32
    %1005 = vector.broadcast %cst_322 : f32 to vector<8x128xf32>
    %1006 = arith.maximumf %1004, %1005 : vector<8x128xf32>
    %1007 = arith.mulf %998, %1001 : vector<8x128xf32>
    %cst_323 = arith.constant 1.000000e+00 : f32
    %1008 = vector.broadcast %cst_323 : f32 to vector<8x128xf32>
    %1009 = arith.subf %1008, %998 : vector<8x128xf32>
    %1010 = arith.mulf %1009, %1006 : vector<8x128xf32>
    %1011 = arith.addf %1007, %1010 : vector<8x128xf32>
    %cst_324 = arith.constant 0.000000e+00 : f32
    %1012 = vector.broadcast %cst_324 : f32 to vector<8x128xf32>
    %1013 = arith.subf %1012, %1011 : vector<8x128xf32>
    %1014 = arith.addf %982, %1013 : vector<8x128xf32>
    %cst_325 = arith.constant -1.000000e+00 : f32
    %1015 = vector.broadcast %cst_325 : f32 to vector<8x128xf32>
    %1016 = arith.mulf %1015, %917 : vector<8x128xf32>
    %1017 = arith.addf %913, %1016 : vector<8x128xf32>
    %cst_326 = arith.constant 5.000000e-01 : f32
    %1018 = vector.broadcast %cst_326 : f32 to vector<8x128xf32>
    %1019 = arith.mulf %1018, %1017 : vector<8x128xf32>
    %cst_327 = arith.constant 1.000000e+00 : f32
    %1020 = vector.broadcast %cst_327 : f32 to vector<8x128xf32>
    %1021 = arith.addf %1019, %1020 : vector<8x128xf32>
    %cst_328 = arith.constant 5.000000e-01 : f32
    %1022 = vector.broadcast %cst_328 : f32 to vector<8x128xf32>
    %1023 = arith.mulf %1022, %1021 : vector<8x128xf32>
    %c36 = arith.constant 36 : index
    %1024 = arith.index_cast %8 : i32 to index
    %c0_329 = arith.constant 0 : index
    %1025 = vector.load %arg2[%c36, %1024, %c0_329] : memref<47x8x128xf32, #tpu.memory_space<vmem>>, vector<1x8x128xf32>
    %1026 = vector.shape_cast %1025 : vector<1x8x128xf32> to vector<8x128xf32>
    %cst_330 = arith.constant 1.000000e+00 : f32
    %1027 = vector.broadcast %cst_330 : f32 to vector<8x128xf32>
    %1028 = arith.addf %1026, %1027 : vector<8x128xf32>
    %cst_331 = arith.constant 5.000000e-01 : f32
    %1029 = vector.broadcast %cst_331 : f32 to vector<8x128xf32>
    %1030 = arith.mulf %1029, %1028 : vector<8x128xf32>
    %1031 = math.log %1023 : vector<8x128xf32>
    %cst_332 = arith.constant -1.000000e+02 : f32
    %1032 = vector.broadcast %cst_332 : f32 to vector<8x128xf32>
    %1033 = arith.maximumf %1031, %1032 : vector<8x128xf32>
    %cst_333 = arith.constant 1.000000e+00 : f32
    %1034 = vector.broadcast %cst_333 : f32 to vector<8x128xf32>
    %1035 = arith.subf %1034, %1023 : vector<8x128xf32>
    %1036 = math.log %1035 : vector<8x128xf32>
    %cst_334 = arith.constant -1.000000e+02 : f32
    %1037 = vector.broadcast %cst_334 : f32 to vector<8x128xf32>
    %1038 = arith.maximumf %1036, %1037 : vector<8x128xf32>
    %1039 = arith.mulf %1030, %1033 : vector<8x128xf32>
    %cst_335 = arith.constant 1.000000e+00 : f32
    %1040 = vector.broadcast %cst_335 : f32 to vector<8x128xf32>
    %1041 = arith.subf %1040, %1030 : vector<8x128xf32>
    %1042 = arith.mulf %1041, %1038 : vector<8x128xf32>
    %1043 = arith.addf %1039, %1042 : vector<8x128xf32>
    %cst_336 = arith.constant 0.000000e+00 : f32
    %1044 = vector.broadcast %cst_336 : f32 to vector<8x128xf32>
    %1045 = arith.subf %1044, %1043 : vector<8x128xf32>
    %1046 = arith.addf %1014, %1045 : vector<8x128xf32>
    %cst_337 = arith.constant 1.000000e+00 : f32
    %1047 = vector.broadcast %cst_337 : f32 to vector<8x128xf32>
    %1048 = arith.mulf %1047, %918 : vector<8x128xf32>
    %1049 = arith.addf %913, %1048 : vector<8x128xf32>
    %cst_338 = arith.constant 5.000000e-01 : f32
    %1050 = vector.broadcast %cst_338 : f32 to vector<8x128xf32>
    %1051 = arith.mulf %1050, %1049 : vector<8x128xf32>
    %cst_339 = arith.constant 1.000000e+00 : f32
    %1052 = vector.broadcast %cst_339 : f32 to vector<8x128xf32>
    %1053 = arith.addf %1051, %1052 : vector<8x128xf32>
    %cst_340 = arith.constant 5.000000e-01 : f32
    %1054 = vector.broadcast %cst_340 : f32 to vector<8x128xf32>
    %1055 = arith.mulf %1054, %1053 : vector<8x128xf32>
    %c37 = arith.constant 37 : index
    %1056 = arith.index_cast %8 : i32 to index
    %c0_341 = arith.constant 0 : index
    %1057 = vector.load %arg2[%c37, %1056, %c0_341] : memref<47x8x128xf32, #tpu.memory_space<vmem>>, vector<1x8x128xf32>
    %1058 = vector.shape_cast %1057 : vector<1x8x128xf32> to vector<8x128xf32>
    %cst_342 = arith.constant 1.000000e+00 : f32
    %1059 = vector.broadcast %cst_342 : f32 to vector<8x128xf32>
    %1060 = arith.addf %1058, %1059 : vector<8x128xf32>
    %cst_343 = arith.constant 5.000000e-01 : f32
    %1061 = vector.broadcast %cst_343 : f32 to vector<8x128xf32>
    %1062 = arith.mulf %1061, %1060 : vector<8x128xf32>
    %1063 = math.log %1055 : vector<8x128xf32>
    %cst_344 = arith.constant -1.000000e+02 : f32
    %1064 = vector.broadcast %cst_344 : f32 to vector<8x128xf32>
    %1065 = arith.maximumf %1063, %1064 : vector<8x128xf32>
    %cst_345 = arith.constant 1.000000e+00 : f32
    %1066 = vector.broadcast %cst_345 : f32 to vector<8x128xf32>
    %1067 = arith.subf %1066, %1055 : vector<8x128xf32>
    %1068 = math.log %1067 : vector<8x128xf32>
    %cst_346 = arith.constant -1.000000e+02 : f32
    %1069 = vector.broadcast %cst_346 : f32 to vector<8x128xf32>
    %1070 = arith.maximumf %1068, %1069 : vector<8x128xf32>
    %1071 = arith.mulf %1062, %1065 : vector<8x128xf32>
    %cst_347 = arith.constant 1.000000e+00 : f32
    %1072 = vector.broadcast %cst_347 : f32 to vector<8x128xf32>
    %1073 = arith.subf %1072, %1062 : vector<8x128xf32>
    %1074 = arith.mulf %1073, %1070 : vector<8x128xf32>
    %1075 = arith.addf %1071, %1074 : vector<8x128xf32>
    %cst_348 = arith.constant 0.000000e+00 : f32
    %1076 = vector.broadcast %cst_348 : f32 to vector<8x128xf32>
    %1077 = arith.subf %1076, %1075 : vector<8x128xf32>
    %1078 = arith.addf %1046, %1077 : vector<8x128xf32>
    %cst_349 = arith.constant -1.000000e+00 : f32
    %1079 = vector.broadcast %cst_349 : f32 to vector<8x128xf32>
    %1080 = arith.mulf %1079, %918 : vector<8x128xf32>
    %1081 = arith.addf %913, %1080 : vector<8x128xf32>
    %cst_350 = arith.constant 5.000000e-01 : f32
    %1082 = vector.broadcast %cst_350 : f32 to vector<8x128xf32>
    %1083 = arith.mulf %1082, %1081 : vector<8x128xf32>
    %cst_351 = arith.constant 1.000000e+00 : f32
    %1084 = vector.broadcast %cst_351 : f32 to vector<8x128xf32>
    %1085 = arith.addf %1083, %1084 : vector<8x128xf32>
    %cst_352 = arith.constant 5.000000e-01 : f32
    %1086 = vector.broadcast %cst_352 : f32 to vector<8x128xf32>
    %1087 = arith.mulf %1086, %1085 : vector<8x128xf32>
    %c38 = arith.constant 38 : index
    %1088 = arith.index_cast %8 : i32 to index
    %c0_353 = arith.constant 0 : index
    %1089 = vector.load %arg2[%c38, %1088, %c0_353] : memref<47x8x128xf32, #tpu.memory_space<vmem>>, vector<1x8x128xf32>
    %1090 = vector.shape_cast %1089 : vector<1x8x128xf32> to vector<8x128xf32>
    %cst_354 = arith.constant 1.000000e+00 : f32
    %1091 = vector.broadcast %cst_354 : f32 to vector<8x128xf32>
    %1092 = arith.addf %1090, %1091 : vector<8x128xf32>
    %cst_355 = arith.constant 5.000000e-01 : f32
    %1093 = vector.broadcast %cst_355 : f32 to vector<8x128xf32>
    %1094 = arith.mulf %1093, %1092 : vector<8x128xf32>
    %1095 = math.log %1087 : vector<8x128xf32>
    %cst_356 = arith.constant -1.000000e+02 : f32
    %1096 = vector.broadcast %cst_356 : f32 to vector<8x128xf32>
    %1097 = arith.maximumf %1095, %1096 : vector<8x128xf32>
    %cst_357 = arith.constant 1.000000e+00 : f32
    %1098 = vector.broadcast %cst_357 : f32 to vector<8x128xf32>
    %1099 = arith.subf %1098, %1087 : vector<8x128xf32>
    %1100 = math.log %1099 : vector<8x128xf32>
    %cst_358 = arith.constant -1.000000e+02 : f32
    %1101 = vector.broadcast %cst_358 : f32 to vector<8x128xf32>
    %1102 = arith.maximumf %1100, %1101 : vector<8x128xf32>
    %1103 = arith.mulf %1094, %1097 : vector<8x128xf32>
    %cst_359 = arith.constant 1.000000e+00 : f32
    %1104 = vector.broadcast %cst_359 : f32 to vector<8x128xf32>
    %1105 = arith.subf %1104, %1094 : vector<8x128xf32>
    %1106 = arith.mulf %1105, %1102 : vector<8x128xf32>
    %1107 = arith.addf %1103, %1106 : vector<8x128xf32>
    %cst_360 = arith.constant 0.000000e+00 : f32
    %1108 = vector.broadcast %cst_360 : f32 to vector<8x128xf32>
    %1109 = arith.subf %1108, %1107 : vector<8x128xf32>
    %1110 = arith.addf %1078, %1109 : vector<8x128xf32>
    %1111 = arith.mulf %17, %252 : vector<8x128xf32>
    %1112 = arith.addf %6, %1111 : vector<8x128xf32>
    %1113 = arith.mulf %17, %904 : vector<8x128xf32>
    %1114 = arith.addf %6, %1113 : vector<8x128xf32>
    %1115 = arith.mulf %17, %1110 : vector<8x128xf32>
    %1116 = arith.addf %6, %1115 : vector<8x128xf32>
    %c1_i32 = arith.constant 1 : i32
    %c0_361 = arith.constant 0 : index
    %c0_362 = arith.constant 0 : index
    %c0_363 = arith.constant 0 : index
    %1117 = vector.load %arg3[%c0_361, %c0_362, %c0_363] : memref<1x24x128xf32, #tpu.memory_space<vmem>>, vector<1x8x128xf32>
    %1118 = vector.shape_cast %1117 : vector<1x8x128xf32> to vector<8x128xf32>
    %1119 = vector.shape_cast %1112 : vector<8x128xf32> to vector<1x8x128xf32>
    tpu.vector_store %arg3[%c0_361, %c0_362, %c0_363], %1119 {strides = array<i32>} : memref<1x24x128xf32, #tpu.memory_space<vmem>>, vector<1x8x128xf32>,
    %c0_364 = arith.constant 0 : index
    %c8_365 = arith.constant 8 : index
    %c0_366 = arith.constant 0 : index
    %1120 = vector.load %arg3[%c0_364, %c8_365, %c0_366] : memref<1x24x128xf32, #tpu.memory_space<vmem>>, vector<1x8x128xf32>
    %1121 = vector.shape_cast %1120 : vector<1x8x128xf32> to vector<8x128xf32>
    %1122 = vector.shape_cast %1114 : vector<8x128xf32> to vector<1x8x128xf32>
    tpu.vector_store %arg3[%c0_364, %c8_365, %c0_366], %1122 {strides = array<i32>} : memref<1x24x128xf32, #tpu.memory_space<vmem>>, vector<1x8x128xf32>,
    %c0_367 = arith.constant 0 : index
    %c16_368 = arith.constant 16 : index
    %c0_369 = arith.constant 0 : index
    %1123 = vector.load %arg3[%c0_367, %c16_368, %c0_369] : memref<1x24x128xf32, #tpu.memory_space<vmem>>, vector<1x8x128xf32>
    %1124 = vector.shape_cast %1123 : vector<1x8x128xf32> to vector<8x128xf32>
    %1125 = vector.shape_cast %1116 : vector<8x128xf32> to vector<1x8x128xf32>
    tpu.vector_store %arg3[%c0_367, %c16_368, %c0_369], %1125 {strides = array<i32>} : memref<1x24x128xf32, #tpu.memory_space<vmem>>, vector<1x8x128xf32>,
    return
  }
  func.func @transform_0(%arg0: i32) -> (i32, i32, i32) {
    %c0_i32 = arith.constant 0 : i32
    %c0_i32_0 = arith.constant 0 : i32
    %c0_i32_1 = arith.constant 0 : i32
    return %c0_i32, %arg0, %c0_i32_0 : i32, i32, i32
  }
  func.func @transform_1(%arg0: i32) -> (i32, i32, i32) {
    %c0_i32 = arith.constant 0 : i32
    %c0_i32_0 = arith.constant 0 : i32
    %c0_i32_1 = arith.constant 0 : i32
    return %c0_i32, %arg0, %c0_i32_0 : i32, i32, i32
  }
  func.func @transform_2(%arg0: i32) -> (i32, i32, i32) {
    %c0_i32 = arith.constant 0 : i32
    %c0_i32_0 = arith.constant 0 : i32
    %c0_i32_1 = arith.constant 0 : i32
    return %arg0, %c0_i32, %c0_i32_0 : i32, i32, i32
  }
}

</mosaic_0001>

<bundles_post_ra>
// kernel: custom-call.4
= control target key start
LH: loop header
LB: loop body
LE: loop exit
PB: predicated region body
PF: predicated region fallthrough
CT: control target
= control target key end

     0   :  { %2 = vsyncpa [#allocation0], 0  ;;  %s61_s0 = inlined_call_operand.hbm [shape: c64[200,2,2], index: 0, kind: input, shape index: {}]   ;;  %s62_s1 = inlined_call_operand.vmem [shape: f32[200,2,2], index: 1, kind: output, shape index: {}]  }
   0x1   :  { %s3_s8 = sshll.u32 %s62_s1, 4  ;;  %s9_s11 = scalar_lea.hbm %s61_s0, 128  ;;  %s4_s8 = int_to_ptr.vmem [resolvable:$true] %s3_s8 }
   0x2   :  { %p10_p0 = scmp.ne.s32.totalorder %s61_s0, %s9_s11  ;;  %s11_s16 = scalar_lea.hbm %s61_s0, 256 }
   0x3   :  { %p12_p1 = scmp.lt.u32.totalorder %s11_s16, %s9_s11  ;;  %p13_p2 = scmp.lt.u32.totalorder %s9_s11, %s61_s0 }
   0x5   :  { %p14_p3 = por %p13_p2, %p12_p1 }
   0x7   :  { %p15_p4 = pnand %p14_p3, %p10_p0 }
   0x9   :  { %18 = shalt.err (!%p15_p4)  }
   0xa   :  { %s19_s1 = scalar_lea.vmem %s4_s8, 128  ;;  %p24_p6 = scmp.lt.s32.totalorder %s4_s8, %s4_s8 }
   0xb   :  { %p20_p5 = scmp.ne.s32.totalorder %s4_s8, %s19_s1  ;;  %p25_p7 = scmp.lt.s32.totalorder %s19_s1, %s19_s1 }
   0xd   :  { %p26_p8 = por %p25_p7, %p24_p6 }
   0xf   :  { %p27_p9 = pnand %p26_p8, %p20_p5 }
  0x11   :  { %30 = shalt.err (!%p27_p9)  }
  0x12   :  { %6 = dma.hbm_to_vmem [thread:$0]  %s61_s0, 128, %s4_s8, [#allocation0] }
  0x13   :  { %31 = dma.done.wait [#allocation0], 128  }
  0x14   :  { %32 = vsyncadd [#allocation0], 4294967168 }
  0x15   :  { %8 = vsyncpa [#allocation0], 1 }

// kernel: custom-call.5
= control target key start
LH: loop header
LB: loop body
LE: loop exit
PB: predicated region body
PF: predicated region fallthrough
CT: control target
= control target key end

     0   :  { %s59_s0 = inlined_call_operand.hbm [shape: c64[200,2,2], index: 0, kind: input, shape index: {}]   ;;  %s60_s1 = inlined_call_operand.vmem [shape: f32[200,2,2], index: 1, kind: output, shape index: {}]  }
   0x1   :  { %s2_s8 = scalar_lea.hbm %s59_s0, 128 }
   0x2   :  { %3 = vsyncpa [#allocation0], 0  ;;  %s4_s11 = sshll.u32 %s60_s1, 4  ;;  %s34_s14 = scalar_lea.hbm %s59_s0, 256  ;;  %s5_s11 = int_to_ptr.vmem [resolvable:$true] %s4_s11 }
   0x3   :  { %p11_p0 = scmp.ne.s32.totalorder %s2_s8, %s34_s14  ;;  %p13_p1 = scmp.lt.u32.totalorder %s2_s8, %s59_s0 }
   0x4   :  { %p14_p2 = scmp.lt.u32.totalorder %s34_s14, %s34_s14  ;;  %p16_p4 = scmp.lt.u32.totalorder %s34_s14, %s2_s8 }
   0x6   :  { %p15_p3 = por %p14_p2, %p13_p1 }
   0x8   :  { %p17_p5 = por %p16_p4, %p15_p3 }
   0xa   :  { %p18_p6 = pnand %p17_p5, %p11_p0 }
   0xc   :  { %21 = shalt.err (!%p18_p6)  }
   0xd   :  { %s22_s17 = scalar_lea.vmem %s5_s11, 128  ;;  %p27_p8 = scmp.lt.s32.totalorder %s5_s11, %s5_s11 }
   0xe   :  { %p23_p7 = scmp.ne.s32.totalorder %s5_s11, %s22_s17  ;;  %p28_p9 = scmp.lt.s32.totalorder %s22_s17, %s22_s17 }
  0x10   :  { %p29_p10 = por %p28_p9, %p27_p8 }
  0x12   :  { %p30_p11 = pnand %p29_p10, %p23_p7 }
  0x14   :  { %33 = shalt.err (!%p30_p11)  }
  0x15   :  { %7 = dma.hbm_to_vmem [thread:$0]  %s2_s8, 128, %s5_s11, [#allocation0] }
  0x16   :  { %35 = dma.done.wait [#allocation0], 128  }
  0x17   :  { %36 = vsyncadd [#allocation0], 4294967168 }
  0x18   :  { %9 = vsyncpa [#allocation0], 1 }

// kernel: combined_loss.1
= control target key start
LH: loop header
LB: loop body
LE: loop exit
PB: predicated region body
PF: predicated region fallthrough
CT: control target
= control target key end

     0   :  { %v12_v0 = vlaneseq  ;;  %v2444_v37 = vmov 0.0   ;;  %s3938_s0 = inlined_call_operand.vmem [shape: f32[9,8,128], index: 0, kind: input, shape index: {}]   ;;  %s3939_s1 = inlined_call_operand.vmem [shape: f32[47,8,128], index: 1, kind: input, shape index: {}]   ;;  %s3940_s2 = inlined_call_operand.vmem [shape: f32[1,24,128], index: 2, kind: output, shape index: {}]  }
   0x1   :  { %v24_v2 = vld [vmem:[%s3938_s0] sm:$0xff]  ;;  %v2172_v3 = vld [vmem:[%s3938_s0 + $0x18] sm:$0xff]  ;;  %v2170_v6 = vld [vmem:[%s3938_s0 + $0x8] sm:$0xff] }
   0x2   :  { %v13_v1 = vshrl.u32 %v12_v0, 7  ;;  %v15_v4 = vand.u32 127, %v12_v0  ;;  %v2175_v7 = vld [vmem:[%s3938_s0 + $0x30] sm:$0xff]  ;;  %v25_v8 = vadd.f32 1.5707964, %v24_v2  ;;  %v2173_v10 = vld [vmem:[%s3938_s0 + $0x20] sm:$0xff] }
   0x3   :  { %v37_v9 = vadd.f32 1.5707964, %v2172_v3  ;;  %v30_v11 = vmul.f32 0.63661975, %v2170_v6  ;;  %v2171_v12 = vld [vmem:[%s3938_s0 + $0x10] sm:$0xff]  ;;  %v58_v14 = vld [vmem:[%s3939_s1] sm:$0xff] }
   0x4   :  { %v16_v5 = vmul.u32 128, %v13_v1  ;;  %v49_v13 = vadd.f32 1.5707964, %v2175_v7  ;;  %v2176_v16 = vld [vmem:[%s3938_s0 + $0x38] sm:$0xff]  ;;  %v95_v17 = vsub.f32 1.0, %v2171_v12  ;;  %v2178_v22 = vld [vmem:[%s3939_s1 + $0x8] sm:$0xff]  ;;  %2303 = vlog2.f32 %v2171_v12 }
   0x5   :  { %v2490_v18 = vmul.f32 0.31830987, %v25_v8  ;;  %v2492_v19 = vmul.f32 0.63661975, %v2173_v10  ;;  %v2494_v20 = vmul.f32 0.31830987, %v37_v9  ;;  %2305 = vlog2.f32 %v30_v11 }
   0x6   :  { %v17_v15 = vadd.s32 %v16_v5, %v15_v4  ;;  %v59_v21 = vadd.f32 1.5707964, %v58_v14  ;;  %v2499_v23 = vmul.f32 0.31830987, %v49_v13  ;;  %v2501_v24 = vmul.f32 0.63661975, %v2176_v16 }
   0x7   :  { %3994 = vst [vmem:[#allocation2_spill] sm:$0xff] %v2494_v20  ;;  %v2503_v25 = vmul.f32 2.0, %v30_v11  ;;  %v64_v26 = vsub.f32 1.0, %v2490_v18  ;;  %2307 = vlog2.f32 %v95_v17  ;;  %v2180_v27 = vld [vmem:[%s3939_s1 + $0x18] sm:$0xff]  ;;  %v3941_v28 = vand.u32 2147483647, %v2490_v18 }
   0x8   :  { %3995 = vst [vmem:[#allocation3_spill] sm:$0xff] %v2499_v23  ;;  %3996 = vst [vmem:[#allocation4_spill] sm:$0xff] %v2501_v24  ;;  %vm22_vm0 = vcmp.lt.s32.totalorder %v17_v15, 200  ;;  %2309 = vlog2.f32 %v2490_v18  ;;  %v2511_v29 = vmul.f32 0.63661975, %v2178_v22  ;;  %v80_v33 = vsub.f32 1.0, %v30_v11 }
   0x9   :  { %v3942_v30 = vand.u32 2147483647, %v2503_v25  ;;  %v289_v31 = vand.u32 2139095040, %v2503_v25  ;;  %v2515_v32 = vmul.f32 0.31830987, %v59_v21  ;;  %v2520_v34 = vld [vmem:[%s3939_s1 + $0x10] sm:$0xff]  ;;  %2311 = vlog2.f32 %v2494_v20 }
   0xa   :  { %v2181_v35 = vld [vmem:[%s3939_s1 + $0x20] sm:$0xff]  ;;  %v496_v36 = vand.u32 2139095040, %v2490_v18  ;;  %v2528_v38 = vsel %vm22_vm0, 1.0, %v2444_v37  ;;  %v107_v39 = vadd.f32 1.5707964, %v2180_v27  ;;  %v112_v40 = vsub.f32 1.0, %v2494_v20 }
   0xb   :  { %3997 = vst [vmem:[#allocation5_spill] sm:$0xff] %v2528_v38  ;;  %v290_v41 = vshrl.u32 %v289_v31, 23  ;;  %2313 = vlog2.f32 %v64_v26  ;;  %v293_v42 = vand.u32 8388607, %v3942_v30  ;;  %v500_v44 = vand.u32 8388607, %v3941_v28 }
   0xc   :  { %v497_v43 = vshrl.u32 %v496_v36, 23  ;;  %v100_v45 = vsub.f32 1.0, %v2520_v34  ;;  %v2536_v46 = vmul.f32 0.63661975, %v2181_v35  ;;  %v128_v47 = vsub.f32 1.0, %v2492_v19  ;;  %v2542_v49 = vld [vmem:[%s3938_s0 + $0x28] sm:$0xff] }
   0xd   :  { %v2194_v48 = vadd.s32 4294967169, %v290_v41  ;;  %v69_v50 = vsub.f32 1.0, %v2515_v32  ;;  %2315 = vlog2.f32 %v80_v33  ;;  %v85_v51 = vsub.f32 1.0, %v2511_v29  ;;  %v2549_v52 = vld [vmem:[%s3939_s1 + $0x28] sm:$0xff]  ;;  %v2183_v56 = vld [vmem:[%s3939_s1 + $0x30] sm:$0xff] }
   0xe   :  { %v2202_v53 = vadd.s32 4294967169, %v497_v43  ;;  %v2551_v54 = vmul.f32 0.31830987, %v107_v39  ;;  %2317 = vlog2.f32 %v112_v40  ;;  %v143_v55 = vsub.f32 1.0, %v2542_v49  ;;  %v2557_v58 = vpop.eup %2303 }
   0xf   :  { %v296_v57 = vadd.s32 1, %v2194_v48  ;;  %2319 = vlog2.f32 %v2492_v19  ;;  %v294_v59 = vor.u32 8388608, %v293_v42  ;;  %v501_v60 = vor.u32 8388608, %v500_v44  ;;  %v2560_v62 = vpop.eup %2305 }
  0x10   :  { %v503_v61 = vadd.s32 1, %v2202_v53  ;;  %2321 = vlog2.f32 %v128_v47  ;;  %v2566_v2 = vadd.f32 1.5707964, %v2183_v56  ;;  %v3943_v14 = vmov 683565275  }
  0x11   :  { %vm297_vm1 = vcmp.gt.s32.totalorder %v296_v57, 0  ;;  %v2564_v1 = vpop.eup %2307  ;;  %v2572_v9 = vshll.u32 %v294_v59, 8  ;;  %v2578_v12 = vshll.u32 %v501_v60, 8  ;;  %v3945_v16 = vmov 2475754826  }
  0x12   :  { %v298_v3 = vsel %vm297_vm1, %v296_v57, 0  ;;  %vm504_vm2 = vcmp.gt.s32.totalorder %v503_v61, 0  ;;  %v2568_v4 = vpop.eup %2309  ;;  %v3947_v21 = vmov 2131351028   ;;  %v3955_v27 = vmov 2102212464  }
  0x13   :  { %v299_v5 = vshrl.u32 %v298_v3, 5  ;;  %v300_v6 = vand.u32 31, %v298_v3  ;;  %v505_v7 = vsel %vm504_vm2, %v503_v61, 0  ;;  %v2570_v8 = vpop.eup %2311  ;;  %v3967_v33 = vmov 920167782  }
  0x14   :  { %v2574_v10 = vshrl.u32 %v505_v7, 5  ;;  %v2576_v11 = vand.u32 31, %v505_v7  ;;  %v2588_v36 = vmul.f32 2.0, %v2492_v19  ;;  %v3965_v44 = vmov 1326507024  }
  0x15   :  { %v301_v13 = vsub.s32 32, %v300_v6  ;;  %v303_v15 = vshll.u32 %v3943_v14, %v300_v6  ;;  %v306_v17 = vshll.u32 %v3945_v16, %v300_v6  ;;  %v309_v22 = vshll.u32 %v3947_v21, %v300_v6  ;;  %v2583_v26 = vpop.eup %2313 }
  0x16   :  { %v312_v31 = vshll.u32 %v3955_v27, %v300_v6  ;;  %v315_v35 = vshll.u32 %v3967_v33, %v300_v6  ;;  %vm318_vm3 = vcmp.lt.s32.totalorder %v299_v5, 1  ;;  %3998 = vst [vmem:[#allocation6_spill] sm:$0xff] %v2588_v36  ;;  %vm319_vm4 = vcmp.lt.s32.totalorder %v299_v5, 2 }
  0x17   :  { %v302_v37 = vshrl.u32 %v3943_v14, %v301_v13  ;;  %v304_v39 = vshrl.u32 %v3945_v16, %v301_v13  ;;  %v307_v40 = vshrl.u32 %v3947_v21, %v301_v13  ;;  %v310_v41 = vshrl.u32 %v3955_v27, %v301_v13  ;;  %v2594_v42 = vpop.eup %2315 }
  0x18   :  { %v313_v43 = vshrl.u32 %v3967_v33, %v301_v13  ;;  %v316_v47 = vshrl.u32 %v3965_v44, %v301_v13  ;;  %vm321_vm5 = vcmp.lt.s32.totalorder %v299_v5, 4  ;;  %v2598_v48 = vpop.eup %2317  ;;  %v508_v57 = vsub.s32 32, %v2576_v11 }
  0x19   :  { %v305_v19 = vor.u32 %v304_v39, %v303_v15  ;;  %v308_v53 = vor.u32 %v307_v40, %v306_v17  ;;  %v311_v56 = vor.u32 %v310_v41, %v309_v22  ;;  %v2601_v59 = vpop.eup %2319  ;;  %vm320_vm6 = vcmp.lt.s32.totalorder %v299_v5, 3 }
  0x1a   :  { %v314_v60 = vor.u32 %v313_v43, %v312_v31  ;;  %v317_v61 = vor.u32 %v316_v47, %v315_v35  ;;  %v510_v3 = vshll.u32 %v3943_v14, %v2576_v11  ;;  %v2605_v6 = vpop.eup %2321  ;;  %v513_v35 = vshll.u32 %v3945_v16, %v2576_v11 }
  0x1b   :  { %v322_v7 = vsel %vm318_vm3, %v302_v37, %v305_v19  ;;  %v323_v13 = vsel %vm321_vm5, %v311_v56, 2102212464  ;;  %v326_v15 = vsel %vm318_vm3, %v305_v19, %v308_v53  ;;  %v330_v17 = vsel %vm318_vm3, %v308_v53, %v311_v56 }
  0x1c   :  { %v324_v22 = vsel %vm320_vm6, %v308_v53, %v323_v13  ;;  %v327_v39 = vsel %vm321_vm5, %v314_v60, 920167782  ;;  %v331_v31 = vsel %vm321_vm5, %v317_v61, 1326507024  ;;  %v509_v43 = vshrl.u32 %v3943_v14, %v508_v57 }
  0x1d   :  { %v328_v40 = vsel %vm320_vm6, %v311_v56, %v327_v39  ;;  %v332_v41 = vsel %vm320_vm6, %v314_v60, %v331_v31  ;;  %v511_v37 = vshrl.u32 %v3945_v16, %v508_v57  ;;  %v325_v47 = vsel %vm319_vm4, %v322_v7, %v324_v22 }
  0x1e   :  { %v329_v19 = vsel %vm319_vm4, %v326_v15, %v328_v40  ;;  %v333_v28 = vsel %vm319_vm4, %v330_v17, %v332_v41  ;;  %v514_v53 = vshrl.u32 %v3947_v21, %v508_v57  ;;  %v516_v7 = vshll.u32 %v3947_v21, %v2576_v11 }
  0x1f   :  { %v2622_v13 = vmul.u32.u64.low %v2572_v9, %v333_v28  ;;  %v2623_v61 = vmul.u32.u64.high %v2572_v9, %v333_v28, %v2622_v13  ;;  %v2626_v30 = vmul.u32.u64.low %v2572_v9, %v329_v19  ;;  %v2627_v56 = vmul.u32.u64.high %v2572_v9, %v329_v19, %v2626_v30 }
  0x20   :  { %v512_v60 = vor.u32 %v511_v37, %v510_v3  ;;  %v515_v39 = vor.u32 %v514_v53, %v513_v35  ;;  %v517_v15 = vshrl.u32 %v3955_v27, %v508_v57  ;;  %v519_v5 = vshll.u32 %v3955_v27, %v2576_v11  ;;  %v2184_v53 = vld [vmem:[%s3939_s1 + $0x38] sm:$0xff] }
  0x21   :  { %v520_v17 = vshrl.u32 %v3967_v33, %v508_v57  ;;  %v522_v28 = vshll.u32 %v3967_v33, %v2576_v11  ;;  %v523_v22 = vshrl.u32 %v3965_v44, %v508_v57  ;;  %v341_v31 = vmul.u32 %v2572_v9, %v325_v47 }
  0x22   :  { %v518_v40 = vor.u32 %v517_v15, %v516_v7  ;;  %vm525_vm7 = vcmp.lt.s32.totalorder %v2574_v10, 1  ;;  %vm526_vm8 = vcmp.lt.s32.totalorder %v2574_v10, 2  ;;  %vm343_vm9 = vc.u32 %v2623_v61, %v2626_v30 }
  0x23   :  { %v344_v3 = vadd.s32 1, %v2627_v56  ;;  %v521_v35 = vor.u32 %v520_v17, %v519_v5  ;;  %vm527_vm10 = vcmp.lt.s32.totalorder %v2574_v10, 3  ;;  %v524_v41 = vor.u32 %v523_v22, %v522_v28 }
  0x24   :  { %vm528_vm11 = vcmp.lt.s32.totalorder %v2574_v10, 4  ;;  %v529_v11 = vsel %vm525_vm7, %v509_v43, %v512_v60  ;;  %v533_v57 = vsel %vm525_vm7, %v512_v60, %v515_v39  ;;  %v537_v19 = vsel %vm525_vm7, %v515_v39, %v518_v40 }
  0x25   :  { %v345_v9 = vsel %vm343_vm9, %v344_v3, %v2627_v56  ;;  %v530_v37 = vsel %vm528_vm11, %v518_v40, 2102212464  ;;  %v534_v47 = vsel %vm528_vm11, %v521_v35, 920167782  ;;  %v538_v5 = vsel %vm528_vm11, %v524_v41, 1326507024 }
  0x26   :  { %v346_v13 = vadd.s32 %v345_v9, %v341_v31  ;;  %v531_v7 = vsel %vm527_vm10, %v515_v39, %v530_v37  ;;  %v535_v15 = vsel %vm527_vm10, %v518_v40, %v534_v47  ;;  %v160_v43 = vsub.f32 1.0, %v2499_v23 }
  0x27   :  { %v532_v56 = vsel %vm526_vm8, %v529_v11, %v531_v7  ;;  %v536_v60 = vsel %vm526_vm8, %v533_v57, %v535_v15  ;;  %v539_v17 = vsel %vm527_vm10, %v521_v35, %v538_v5  ;;  %v93_v40 = vmul.f32 0.6931472, %v2557_v58 }
  0x28   :  { %v347_v28 = vadd.s32 536870912, %v346_v13  ;;  %v540_v22 = vsel %vm526_vm8, %v537_v19, %v539_v17  ;;  %v2665_v39 = vmul.u32.u64.low %v2578_v12, %v536_v60  ;;  %v2666_v31 = vmul.u32.u64.high %v2578_v12, %v536_v60, %v2665_v39  ;;  %v2706_v60 = vld [vmem:[%s3939_s1 + $0x40] sm:$0xff] }
  0x29   :  { %v2670_v3 = vmul.f32 0.63661975, %v2184_v53  ;;  %v2673_v41 = vmul.u32.u64.low %v2578_v12, %v540_v22  ;;  %v2674_v11 = vmul.u32.u64.high %v2578_v12, %v540_v22, %v2673_v41  ;;  %v117_v57 = vsub.f32 1.0, %v2551_v54 }
  0x2a   :  { %2323 = vlog2.f32 %v2542_v49  ;;  %v2678_v35 = vshrl.u32 %v347_v28, 30  ;;  %v895_v10 = vand.u32 2139095040, %v2588_v36  ;;  %v78_v9 = vmul.f32 0.6931472, %v2560_v62 }
  0x2b   :  { %v97_v37 = vmul.f32 0.6931472, %v2564_v1  ;;  %v176_v58 = vsub.f32 1.0, %v2501_v24  ;;  %v548_v47 = vmul.u32 %v2578_v12, %v532_v56  ;;  %2325 = vlog2.f32 %v143_v55  ;;  %v2177_v1 = vld [vmem:[%s3938_s0 + $0x40] sm:$0xff] }
  0x2c   :  { %v349_v19 = vshll.u32 %v2678_v35, 30  ;;  %v551_v53 = vadd.s32 1, %v2666_v31  ;;  %v896_v7 = vshrl.u32 %v895_v10, 23  ;;  %v94_v15 = vmax.f32 %v93_v40, -100.0 }
  0x2d   :  { %v2690_v5 = vmul.f32 0.31830987, %v2566_v2  ;;  %vm550_vm12 = vc.u32 %v2674_v11, %v2665_v39  ;;  %2327 = vlog2.f32 %v2499_v23  ;;  %v62_v56 = vmul.f32 0.6931472, %v2568_v4 }
  0x2e   :  { %v2699_v49 = vsub.s32 %v346_v13, %v349_v19  ;;  %v552_v55 = vsel %vm550_vm12, %v551_v53, %v2666_v31  ;;  %v2220_v12 = vadd.s32 4294967169, %v896_v7  ;;  %v98_v2 = vmax.f32 %v97_v37, -100.0 }
  0x2f   :  { %v191_v17 = vsub.f32 1.0, %v2177_v1  ;;  %v553_v28 = vadd.s32 %v552_v55, %v548_v47  ;;  %v66_v22 = vmul.f32 0.6931472, %v2583_v26  ;;  %v79_v40 = vmax.f32 %v78_v9, -100.0 }
  0x30   :  { %v352_v41 = vsub.s32 0, %v2699_v49  ;;  %v902_v13 = vadd.s32 1, %v2220_v12  ;;  %v82_v10 = vmul.f32 0.6931472, %v2594_v42  ;;  %2329 = vlog2.f32 %v160_v43 }
  0x31   :  { %v554_v4 = vadd.s32 536870912, %v553_v28  ;;  %v99_v37 = vmul.f32 %v2520_v34, %v94_v15  ;;  %2331 = vlog2.f32 %v2501_v24  ;;  %v101_v26 = vmul.f32 %v100_v45, %v98_v2 }
  0x32   :  { %v2195_v47 = vmin.u32 %v352_v41, %v2699_v49  ;;  %v110_v9 = vmul.f32 0.6931472, %v2570_v8  ;;  %vm903_vm13 = vcmp.gt.s32.totalorder %v902_v13, 0  ;;  %v63_v43 = vmax.f32 %v62_v56, -100.0  ;;  %v2728_v8 = vld [vmem:[%s3939_s1 + $0x138] sm:$0xff] }
  0x33   :  { %v2719_v53 = vshrl.u32 %v554_v4, 30  ;;  %v67_v7 = vmax.f32 %v66_v22, -100.0  ;;  %v114_v55 = vmul.f32 0.6931472, %v2598_v48  ;;  %v83_v12 = vmax.f32 %v82_v10, -100.0  ;;  %4000 = vst [vmem:[#allocation8_spill] sm:$0xff] %v2728_v8 }
  0x34   :  { %v2324_v42 = vpop.eup %2323  ;;  %v354_v15 = vclz %v2195_v47  ;;  %2333 = vlog2.f32 %v176_v58  ;;  %v904_v62 = vsel %vm903_vm13, %v902_v13, 0  ;;  %v84_v34 = vmul.f32 %v79_v40, %v2511_v29  ;;  %v2733_v48 = vld [vmem:[%s3939_s1 + $0x148] sm:$0xff] }
  0x35   :  { %3999 = vst [vmem:[#allocation7_spill] sm:$0xff] %v2719_v53  ;;  %v556_v19 = vshll.u32 %v2719_v53, 30  ;;  %v2326_v41 = vpop.eup %2325  ;;  %v126_v45 = vmul.f32 0.6931472, %v2601_v59  ;;  %2335 = vlog2.f32 %v2177_v1  ;;  %v2735_v56 = vadd.f32 %v101_v26, %v99_v37  ;;  %v2754_v26 = vld [vmem:[%s3939_s1 + $0x158] sm:$0xff] }
  0x36   :  { %v2196_v58 = vadd.s32 4294967294, %v354_v15  ;;  %v111_v2 = vmax.f32 %v110_v9, -100.0  ;;  %v2739_v22 = vmul.f32 %v2733_v48, %v2728_v8  ;;  %v68_v40 = vmul.f32 %v63_v43, %v2515_v32 }
  0x37   :  { %v2741_v59 = vsub.s32 %v553_v28, %v556_v19  ;;  %v2328_v1 = vpop.eup %2327  ;;  %v70_v13 = vmul.f32 %v69_v50, %v67_v7  ;;  %v115_v10 = vmax.f32 %v114_v55, -100.0  ;;  %v906_v4 = vand.u32 31, %v904_v62  ;;  %v2759_v28 = vld [vmem:[%s3939_s1 + $0x168] sm:$0xff] }
  0x38   :  { %v86_v47 = vmul.f32 %v85_v51, %v83_v12  ;;  %v2749_v37 = vmul.f32 0.6931472, %v2605_v6  ;;  %4001 = vst [vmem:[#allocation9_spill] sm:$0xff] %v2759_v28  ;;  %vm2197_vm14 = vcmp.lt.s32.totalorder %v2196_v58, 0  ;;  %v127_v50 = vmax.f32 %v126_v45, -100.0 }
  0x39   :  { %v559_v32 = vsub.s32 0, %v2741_v59  ;;  %v2762_v19 = vmul.f32 0.6931472, %v2324_v42  ;;  %2337 = vlog2.f32 %v191_v17  ;;  %v2766_v29 = vmul.f32 %v2759_v28, %v2754_v26 }
  0x3a   :  { %v2768_v51 = vpop.eup %2329  ;;  %v116_v9 = vmul.f32 %v111_v2, %v2551_v54  ;;  %v2774_v43 = vmul.f32 %v2759_v28, %v2728_v8  ;;  %v2779_v42 = vadd.f32 %v70_v13, %v68_v40  ;;  %v118_v17 = vmul.f32 %v117_v57, %v115_v10 }
  0x3b   :  { %v2203_v7 = vmin.u32 %v559_v32, %v2741_v59  ;;  %v2777_v55 = vpop.eup %2331  ;;  %v357_v15 = vsel %vm2197_vm14, 0, %v2196_v58  ;;  %v2783_v12 = vsub.s32 32, %v906_v4  ;;  %v2785_v45 = vadd.f32 %v86_v47, %v84_v34 }
  0x3c   :  { %v131_v2 = vmax.f32 %v2749_v37, -100.0  ;;  %v2788_v31 = vmul.f32 0.6931472, %v2326_v41  ;;  %v2791_v0 = vmul.f32 %v127_v50, %v2536_v46  ;;  %v2794_v40 = vmul.f32 0.6931472, %v2328_v1 }
  0x3d   :  { %v561_v6 = vclz %v2203_v7  ;;  %v3964_v54 = vand.u32 2147483647, %v2588_v36  ;;  %v362_v58 = vsub.s32 4294967266, %v357_v15  ;;  %v909_v34 = vshll.u32 %v3943_v14, %v906_v4 }
  0x3e   :  { %v2797_v57 = vpop.eup %2333  ;;  %v912_v10 = vshll.u32 %v3945_v16, %v906_v4  ;;  %v910_v47 = vshrl.u32 %v3945_v16, %v2783_v12  ;;  %v913_v37 = vshrl.u32 %v3947_v21, %v2783_v12  ;;  %v915_v1 = vshll.u32 %v3947_v21, %v906_v4 }
  0x3f   :  { %v2204_v13 = vadd.s32 4294967294, %v561_v6  ;;  %v2801_v41 = vpop.eup %2335  ;;  %v916_v50 = vshrl.u32 %v3955_v27, %v2783_v12  ;;  %v2810_v7 = vshrl.u32 %v904_v62, 5  ;;  %v918_v6 = vshll.u32 %v3955_v27, %v906_v4 }
  0x40   :  { %v919_v14 = vshrl.u32 %v3967_v33, %v2783_v12  ;;  %v899_v16 = vand.u32 8388607, %v3964_v54  ;;  %v921_v63 = vshll.u32 %v3967_v33, %v906_v4  ;;  %v922_v21 = vshrl.u32 %v3965_v44, %v2783_v12 }
  0x41   :  { %vm2205_vm15 = vcmp.lt.s32.totalorder %v2204_v13, 0  ;;  %v342_v38 = vadd.s32 %v2626_v30, %v2623_v61  ;;  %v358_v23 = vsub.s32 32, %v357_v15  ;;  %v363_v62 = vadd.s32 127, %v362_v58 }
  0x42   :  { %v564_v32 = vsel %vm2205_vm15, 0, %v2204_v13  ;;  %v920_v24 = vor.u32 %v919_v14, %v918_v6  ;;  %v911_v53 = vor.u32 %v910_v47, %v909_v34  ;;  %v914_v8 = vor.u32 %v913_v37, %v912_v10 }
  0x43   :  { %v2822_v28 = vpop.eup %2337  ;;  %v569_v27 = vsub.s32 4294967266, %v564_v32  ;;  %v917_v13 = vor.u32 %v916_v50, %v915_v1  ;;  %v72_v36 = vsub.f32 0.0, %v2779_v42  ;;  %vm924_vm0 = vcmp.lt.s32.totalorder %v2810_v7, 1 }
  0x44   :  { %vm926_vm1 = vcmp.lt.s32.totalorder %v2810_v7, 3  ;;  %vm927_vm2 = vcmp.lt.s32.totalorder %v2810_v7, 4  ;;  %v359_v4 = vshll.u32 %v2699_v49, %v357_v15  ;;  %v549_v30 = vadd.s32 %v2665_v39, %v2674_v11 }
  0x45   :  { %v900_v14 = vor.u32 8388608, %v899_v16  ;;  %v923_v61 = vor.u32 %v922_v21, %v921_v63  ;;  %v360_v58 = vshrl.u32 %v342_v38, %v358_v23  ;;  %v364_v6 = vshll.u32 %v363_v62, 23 }
  0x46   :  { %v565_v34 = vsub.s32 32, %v564_v32  ;;  %v933_v10 = vsel %vm927_vm2, %v920_v24, 920167782  ;;  %v570_v42 = vadd.s32 127, %v569_v27  ;;  %vm925_vm3 = vcmp.lt.s32.totalorder %v2810_v7, 2 }
  0x47   :  { %v932_v47 = vsel %vm924_vm0, %v911_v53, %v914_v8  ;;  %v934_v49 = vsel %vm926_vm1, %v917_v13, %v933_v10  ;;  %v88_v15 = vsub.f32 0.0, %v2785_v45  ;;  %v119_v39 = vadd.f32 %v118_v17, %v116_v9 }
  0x48   :  { %v146_v63 = vmax.f32 %v2788_v31, -100.0  ;;  %v936_v23 = vsel %vm924_vm0, %v914_v8, %v917_v13  ;;  %v4002_v38 = vsub.f32 1.0, %v2536_v46  ;;  %v937_v21 = vsel %vm927_vm2, %v923_v61, 1326507024 }
  0x49   :  { %v2846_v27 = vshll.u32 %v900_v14, 8  ;;  %v1102_v11 = vand.u32 2139095040, %v2494_v20  ;;  %v361_v37 = vor.u32 %v360_v58, %v359_v4  ;;  %v365_v1 = vor.u32 4788187, %v364_v6 }
  0x4a   :  { %v134_v16 = vmul.f32 %v4002_v38, %v131_v2  ;;  %v935_v9 = vsel %vm925_vm3, %v932_v47, %v934_v49  ;;  %v938_v31 = vsel %vm926_vm1, %v920_v24, %v937_v21  ;;  %v566_v17 = vshll.u32 %v2741_v59, %v564_v32 }
  0x4b   :  { %v567_v45 = vshrl.u32 %v549_v30, %v565_v34  ;;  %v571_v46 = vshll.u32 %v570_v42, 23  ;;  %v939_v2 = vsel %vm925_vm3, %v936_v23, %v938_v31  ;;  %v89_v50 = vadd.f32 %v88_v15, %v72_v36 }
  0x4c   :  { %v4003_v62 = vmax.f32 %v2762_v19, -100.0  ;;  %v4004_v4 = vsub.f32 1.0, %v2549_v52  ;;  %v162_v58 = vmul.f32 0.6931472, %v2768_v51  ;;  %v4005_v6 = vmov 683565275  }
  0x4d   :  { %v908_v24 = vshrl.u32 %v4005_v6, %v2783_v12  ;;  %v2865_v59 = vmul.u32.u64.low %v2846_v27, %v935_v9  ;;  %v2866_v32 = vmul.u32.u64.high %v2846_v27, %v935_v9, %v2865_v59  ;;  %v1103_v30 = vshrl.u32 %v1102_v11, 23 }
  0x4e   :  { %v147_v14 = vmul.f32 %v2549_v52, %v4003_v62  ;;  %v149_v61 = vmul.f32 %v4004_v4, %v146_v63  ;;  %v366_v34 = vand.u32 2147483647, %v365_v1  ;;  %v368_v36 = vcvt.s32.f32 %v361_v37  ;;  %v2909_v4 = vld [vmem:[%s3939_s1 + $0x150] sm:$0xff] }
  0x4f   :  { %v2870_v19 = vmul.u32.u64.low %v2846_v27, %v939_v2  ;;  %v2871_v10 = vmul.u32.u64.high %v2846_v27, %v939_v2, %v2870_v19  ;;  %v2875_v52 = vadd.f32 %v2766_v29, %v2739_v22  ;;  %v568_v51 = vor.u32 %v567_v45, %v566_v17 }
  0x50   :  { %v572_v42 = vor.u32 4788187, %v571_v46  ;;  %v929_v12 = vsel %vm927_vm2, %v917_v13, 2102212464  ;;  %v135_v47 = vadd.f32 %v134_v16, %v2791_v0  ;;  %v159_v49 = vmax.f32 %v2794_v40, -100.0 }
  0x51   :  { %v163_v15 = vmax.f32 %v162_v58, -100.0  ;;  %v174_v63 = vmul.f32 0.6931472, %v2777_v55  ;;  %v4006_v23 = vsub.f32 0.0, %v2735_v56  ;;  %v120_v21 = vsub.f32 0.0, %v119_v39  ;;  %v2919_v58 = vld [vmem:[%s3939_s1 + $0x170] sm:$0xff] }
  0x52   :  { %v150_v11 = vadd.f32 %v149_v61, %v147_v14  ;;  %v178_v22 = vmul.f32 0.6931472, %v2797_v57  ;;  %v369_v29 = vmul.f32 %v368_v36, %v366_v34  ;;  %v928_v37 = vsel %vm924_vm0, %v908_v24, %v911_v53  ;;  %v2914_v61 = vld [vmem:[%s3939_s1 + $0x160] sm:$0xff] }
  0x53   :  { %v104_v38 = vadd.f32 %v4006_v23, %v89_v50  ;;  %v930_v13 = vsel %vm926_vm1, %v914_v8, %v929_v12  ;;  %v2228_v0 = vadd.s32 4294967169, %v1103_v30  ;;  %v189_v40 = vmul.f32 0.6931472, %v2801_v41 }
  0x54   :  { %v193_v16 = vmul.f32 0.6931472, %v2822_v28  ;;  %v573_v55 = vand.u32 2147483647, %v572_v42  ;;  %v575_v1 = vcvt.s32.f32 %v568_v51  ;;  %v136_v56 = vsub.f32 0.0, %v135_v47 }
  0x55   :  { %v164_v39 = vmul.f32 %v159_v49, %v2690_v5  ;;  %v4007_v9 = vsub.f32 1.0, %v2690_v5  ;;  %v175_v31 = vmax.f32 %v174_v63, -100.0  ;;  %v151_v17 = vsub.f32 0.0, %v150_v11  ;;  %v2902_v5 = vld [vmem:[%s3939_s1 + $0x140] sm:$0xff] }
  0x56   :  { %v179_v45 = vmax.f32 %v178_v22, -100.0  ;;  %v931_v53 = vsel %vm925_vm3, %v928_v37, %v930_v13  ;;  %v950_v8 = vadd.s32 1, %v2866_v32  ;;  %v121_v46 = vadd.f32 %v120_v21, %v104_v38 }
  0x57   :  { %v166_v57 = vmul.f32 %v4007_v9, %v163_v15  ;;  %v370_v41 = vxor.u32 2147483648, %v369_v29  ;;  %vm949_vm4 = vc.u32 %v2871_v10, %v2865_v59  ;;  %v1109_v28 = vadd.s32 1, %v2228_v0 }
  0x58   :  { %v190_v2 = vmax.f32 %v189_v40, -100.0  ;;  %v194_v50 = vmax.f32 %v193_v16, -100.0  ;;  %vm288_vm5 = vcmp.lt.s32.totalorder %v2503_v25, 0  ;;  %v576_v62 = vmul.f32 %v575_v1, %v573_v55  ;;  %v4013_v16 = vld [vmem:[#allocation8_spill] sm:$0xff] }
  0x59   :  { %v167_v7 = vadd.f32 %v166_v57, %v164_v39  ;;  %v180_v14 = vmul.f32 %v175_v31, %v2670_v3  ;;  %v2923_v24 = vmul.f32 %v2754_v26, %v2733_v48  ;;  %v947_v30 = vmul.u32 %v2846_v27, %v931_v53  ;;  %v4017_v31 = vld [vmem:[#allocation7_spill] sm:$0xff] }
  0x5a   :  { %v4008_v34 = vsub.f32 1.0, %v2670_v3  ;;  %v231_v19 = vmul.f32 %v2909_v4, %v2902_v5  ;;  %v232_v51 = vmul.f32 %v2919_v58, %v2914_v61  ;;  %v951_v42 = vsel %vm949_vm4, %v950_v8, %v2866_v32 }
  0x5b   :  { %v137_v12 = vadd.f32 %v136_v56, %v121_v46  ;;  %v4009_v47 = vand.u32 2147483647, %v2503_v25  ;;  %v371_v3 = vsel %vm288_vm5, %v370_v41, %v369_v29  ;;  %vm1110_vm7 = vcmp.gt.s32.totalorder %v1109_v28, 0 }
  0x5c   :  { %v182_v36 = vmul.f32 %v4008_v34, %v179_v45  ;;  %v195_v27 = vmul.f32 %v2706_v60, %v190_v2  ;;  %v4012_v15 = vsub.f32 1.0, %v2706_v60  ;;  %v372_v23 = vsub.s32 4, %v2678_v35 }
  0x5d   :  { %vm2938_vm6 = vcmp.le.f32.partialorder %v4009_v47, 0.7853982  ;;  %v577_v38 = vxor.u32 2147483648, %v576_v62  ;;  %v168_v32 = vsub.f32 0.0, %v167_v7  ;;  %vm495_vm8 = vcmp.lt.s32.totalorder %v2490_v18, 0 }
  0x5e   :  { %v197_v63 = vmul.f32 %v4012_v15, %v194_v50  ;;  %v2951_v11 = vadd.s32 %v951_v42, %v947_v30  ;;  %v183_v22 = vadd.f32 %v182_v36, %v180_v14  ;;  %v2953_v37 = vadd.f32 %v232_v51, %v231_v19  ;;  %v4018_v30 = vld [vmem:[#allocation9_spill] sm:$0xff] }
  0x5f   :  { %v374_v29 = vsel %vm2938_vm6, %v2503_v25, %v371_v3  ;;  %v1111_v60 = vsel %vm1110_vm7, %v1109_v28, 0  ;;  %v152_v13 = vadd.f32 %v151_v17, %v137_v12  ;;  %v2960_v0 = vmul.f32 %v2919_v58, %v2902_v5 }
  0x60   :  { %v2964_v40 = vmul.f32 %v2914_v61, %v2909_v4  ;;  %v237_v55 = vmul.f32 %v2909_v4, %v4013_v16  ;;  %v2968_v1 = vadd.f32 %v197_v63, %v195_v27  ;;  %v373_v56 = vsel %vm288_vm5, %v372_v23, %v2678_v35 }
  0x61   :  { %v4014_v39 = vand.u32 2147483647, %v2490_v18  ;;  %v578_v57 = vsel %vm495_vm8, %v577_v38, %v576_v62  ;;  %2339 = vcosq.f32 %v374_v29  ;;  %v579_v17 = vsub.s32 4, %v4017_v31 }
  0x62   :  { %v953_v45 = vadd.s32 536870912, %v2951_v11  ;;  %v1113_v53 = vand.u32 31, %v1111_v60  ;;  %v238_v8 = vmul.f32 %v2919_v58, %v2754_v26  ;;  %v240_v35 = vmul.f32 %v2919_v58, %v4013_v16 }
  0x63   :  { %vm2975_vm9 = vcmp.le.f32.partialorder %v4014_v39, 0.7853982  ;;  %v241_v46 = vmul.f32 %v2754_v26, %v2909_v4  ;;  %2341 = vsinq.f32 %v374_v29  ;;  %v184_v41 = vsub.f32 0.0, %v183_v22 }
  0x64   :  { %v375_v2 = vsel %vm2938_vm6, 0, %v373_v56  ;;  %v581_v50 = vsel %vm2975_vm9, %v2490_v18, %v578_v57  ;;  %v169_v62 = vadd.f32 %v168_v32, %v152_v13  ;;  %v243_v14 = vmul.f32 %v2733_v48, %v2902_v5 }
  0x65   :  { %v244_v34 = vmul.f32 %v4018_v30, %v2914_v61  ;;  %v580_v36 = vsel %vm495_vm8, %v579_v17, %v4017_v31  ;;  %v3004_v19 = vshrl.u32 %v953_v45, 30  ;;  %v3963_v51 = vand.u32 2147483647, %v2494_v20 }
  0x66   :  { %v3007_v42 = vsub.s32 32, %v1113_v53  ;;  %v3009_v12 = vadd.f32 %v238_v8, %v237_v55  ;;  %v3011_v47 = vsub.f32 %v240_v35, %v241_v46  ;;  %v482_v49 = vadd.s32 3, %v375_v2 }
  0x67   :  { %4019 = vst [vmem:[#allocation8_spill] sm:$0xff] %v3004_v19  ;;  %2343 = vcosq.f32 %v581_v50  ;;  %v246_v3 = vmul.f32 %v2914_v61, %v2733_v48  ;;  %v247_v27 = vmul.f32 %v4018_v30, %v2902_v5  ;;  %v3019_v15 = vmul.f32 %v2902_v5, %v4013_v16 }
  0x68   :  { %2345 = vsinq.f32 %v581_v50  ;;  %v3021_v63 = vadd.f32 %v184_v41, %v169_v62  ;;  %v3023_v23 = vadd.f32 %v244_v34, %v243_v14  ;;  %v3025_v38 = vand.u32 3, %v375_v2 }
  0x69   :  { %v582_v32 = vsel %vm2975_vm9, 0, %v580_v36  ;;  %v955_v22 = vshll.u32 %v3004_v19, 30  ;;  %v1106_v29 = vand.u32 8388607, %v3963_v51  ;;  %v4020_v13 = vmov 2102212464  }
  0x6a   :  { %v1125_v55 = vshll.u32 %v4020_v13, %v1113_v53  ;;  %v1126_v56 = vshrl.u32 %v3967_v33, %v3007_v42  ;;  %v3037_v39 = vmul.f32 %v2914_v61, %v2754_v26  ;;  %v3041_v57 = vmul.f32 %v2914_v61, %v4013_v16 }
  0x6b   :  { %v483_v9 = vand.u32 3, %v482_v49  ;;  %v3043_v31 = vshrl.u32 %v1111_v60, 5  ;;  %v2340_v17 = vpop.eup %2339  ;;  %v3045_v45 = vsub.f32 %v246_v3, %v247_v27  ;;  %v689_v8 = vadd.s32 3, %v582_v32 }
  0x6c   :  { %v1116_v35 = vshll.u32 %v4005_v6, %v1113_v53  ;;  %v4021_v46 = vmov 2475754826   ;;  %v4022_v62 = vmov 2131351028   ;;  %v1123_v60 = vshrl.u32 %v4020_v13, %v3007_v42 }
  0x6d   :  { %v1119_v41 = vshll.u32 %v4021_v46, %v1113_v53  ;;  %v2342_v2 = vpop.eup %2341  ;;  %v1117_v50 = vshrl.u32 %v4021_v46, %v3007_v42  ;;  %v1120_v14 = vshrl.u32 %v4022_v62, %v3007_v42  ;;  %v1122_v34 = vshll.u32 %v4022_v62, %v1113_v53 }
  0x6e   :  { %vm381_vm10 = vcmp.eq.s32.totalorder %v3025_v38, 0  ;;  %v3058_v36 = vsub.s32 %v2951_v11, %v955_v22  ;;  %v1107_v49 = vor.u32 8388608, %v1106_v29  ;;  %v1127_v3 = vor.u32 %v1126_v56, %v1125_v55 }
  0x6f   :  { %vm485_vm11 = vcmp.eq.s32.totalorder %v483_v9, 0  ;;  %v1128_v27 = vshll.u32 %v3967_v33, %v1113_v53  ;;  %v1129_v51 = vshrl.u32 %v3965_v44, %v3007_v42  ;;  %vm1134_vm12 = vcmp.lt.s32.totalorder %v3043_v31, 4 }
  0x70   :  { %v382_v54 = vxor.u32 2147483648, %v2342_v2  ;;  %v385_v28 = vxor.u32 2147483648, %v2340_v17  ;;  %vm488_vm13 = vcmp.eq.s32.totalorder %v483_v9, 2  ;;  %v586_v21 = vand.u32 3, %v582_v32 }
  0x71   :  { %v2344_v7 = vpop.eup %2343  ;;  %vm378_vm14 = vweird.f32 %v2503_v25  ;;  %vm380_vm15 = vcmp.lt.s32.totalorder %v3025_v38, 2  ;;  %v690_v11 = vand.u32 3, %v689_v8  ;;  %v1118_v22 = vor.u32 %v1117_v50, %v1116_v35 }
  0x72   :  { %v1121_v29 = vor.u32 %v1120_v14, %v1119_v41  ;;  %v1124_v55 = vor.u32 %v1123_v60, %v1122_v34  ;;  %v2346_v56 = vpop.eup %2345  ;;  %v958_v53 = vsub.s32 0, %v3058_v36  ;;  %vm1131_vm0 = vcmp.lt.s32.totalorder %v3043_v31, 1 }
  0x73   :  { %vm1133_vm1 = vcmp.lt.s32.totalorder %v3043_v31, 3  ;;  %v1140_v44 = vsel %vm1134_vm12, %v1127_v3, 920167782  ;;  %vm384_vm2 = vcmp.eq.s32.totalorder %v3025_v38, 2  ;;  %vm484_vm3 = vcmp.lt.s32.totalorder %v483_v9, 2 }
  0x74   :  { %v1130_v32 = vor.u32 %v1129_v51, %v1128_v27  ;;  %v3072_v33 = vshll.u32 %v1107_v49, 8  ;;  %v487_v8 = vsel %vm485_vm11, %v2340_v17, %v382_v54  ;;  %v490_v35 = vsel %vm488_vm13, %v385_v28, %v2342_v2 }
  0x75   :  { %vm587_vm4 = vcmp.lt.s32.totalorder %v586_v21, 2  ;;  %vm1132_vm5 = vcmp.lt.s32.totalorder %v3043_v31, 2  ;;  %v589_v41 = vxor.u32 2147483648, %v2346_v56  ;;  %v592_v50 = vxor.u32 2147483648, %v2344_v7 }
  0x76   :  { %v1139_v14 = vsel %vm1131_vm0, %v1118_v22, %v1121_v29  ;;  %v1141_v34 = vsel %vm1133_vm1, %v1124_v55, %v1140_v44  ;;  %vm588_vm6 = vcmp.eq.s32.totalorder %v586_v21, 0  ;;  %vm591_vm7 = vcmp.eq.s32.totalorder %v586_v21, 2 }
  0x77   :  { %vm695_vm8 = vcmp.eq.s32.totalorder %v690_v11, 2  ;;  %v2221_v51 = vmin.u32 %v958_v53, %v3058_v36  ;;  %vm691_vm9 = vcmp.lt.s32.totalorder %v690_v11, 2  ;;  %vm692_vm11 = vcmp.eq.s32.totalorder %v690_v11, 0 }
  0x78   :  { %v1115_v60 = vshrl.u32 %v4005_v6, %v3007_v42  ;;  %v1144_v49 = vsel %vm1134_vm12, %v1130_v32, 1326507024  ;;  %v383_v27 = vsel %vm381_vm10, %v2340_v17, %v382_v54  ;;  %v386_v20 = vsel %vm384_vm2, %v385_v28, %v2342_v2 }
  0x79   :  { %v491_v44 = vsel %vm484_vm3, %v487_v8, %v490_v35  ;;  %v1142_v13 = vsel %vm1132_vm5, %v1139_v14, %v1141_v34  ;;  %v590_v53 = vsel %vm588_vm6, %v2344_v7, %v589_v41  ;;  %v593_v62 = vsel %vm591_vm7, %v592_v50, %v2346_v56 }
  0x7a   :  { %v697_v46 = vsel %vm695_vm8, %v592_v50, %v2346_v56  ;;  %v1143_v42 = vsel %vm1131_vm0, %v1121_v29, %v1124_v55  ;;  %v694_v6 = vsel %vm692_vm11, %v2344_v7, %v589_v41  ;;  %v960_v19 = vclz %v2221_v51 }
  0x7b   :  { %v1136_v32 = vsel %vm1134_vm12, %v1124_v55, 2102212464  ;;  %v1145_v54 = vsel %vm1133_vm1, %v1127_v3, %v1144_v49  ;;  %v3101_v28 = vmul.f32 %v2754_v26, %v2902_v5  ;;  %v255_v9 = vmul.f32 %v2909_v4, %v2733_v48 }
  0x7c   :  { %v3106_v17 = vmul.u32.u64.low %v3072_v33, %v1142_v13  ;;  %v3107_v2 = vmul.u32.u64.high %v3072_v33, %v1142_v13, %v3106_v17  ;;  %v387_v7 = vsel %vm380_vm15, %v383_v27, %v386_v20  ;;  %v492_v55 = vsel %vm378_vm14, nan, %v491_v44 }
  0x7d   :  { %4023 = vst [vmem:[#allocation7_spill] sm:$0xff] %v3101_v28  ;;  %vm585_vm10 = vweird.f32 %v2490_v18  ;;  %v1146_v3 = vsel %vm1132_vm5, %v1143_v42, %v1145_v54  ;;  %v594_v56 = vsel %vm587_vm4, %v590_v53, %v593_v62  ;;  %v698_v8 = vsel %vm691_vm9, %v694_v6, %v697_v46  ;;  %v2441_v46 = vld [vmem:[%s3938_s0 + $0x10] sm:$0xff] }
  0x7e   :  { %v1135_v13 = vsel %vm1131_vm0, %v1115_v60, %v1118_v22  ;;  %v1137_v35 = vsel %vm1133_vm1, %v1121_v29, %v1136_v32  ;;  %v4024_v20 = vsub.f32 0.0, %v2968_v1  ;;  %v256_v41 = vmul.f32 %v2919_v58, %v4018_v30 }
  0x7f   :  { %v3132_v21 = vmul.f32 %v2919_v58, %v2733_v48  ;;  %v2222_v62 = vadd.s32 4294967294, %v960_v19  ;;  %v388_v6 = vsel %vm378_vm14, nan, %v387_v7  ;;  %v701_v11 = vmul.f32 %v2441_v46, %v492_v55 }
  0x80   :  { %v3126_v38 = vadd.f32 %v4024_v20, %v3021_v63  ;;  %v3140_v1 = vmul.u32.u64.low %v3072_v33, %v1146_v3  ;;  %v3141_v63 = vmul.u32.u64.high %v3072_v33, %v1146_v3, %v3140_v1  ;;  %v595_v22 = vsel %vm585_vm10, nan, %v594_v56 }
  0x81   :  { %v699_v29 = vsel %vm585_vm10, nan, %v698_v8  ;;  %v1138_v19 = vsel %vm1132_vm5, %v1135_v13, %v1137_v35  ;;  %v1157_v25 = vadd.s32 1, %v3107_v2  ;;  %v3152_v50 = vmul.f32 %v4018_v30, %v2909_v4 }
  0x82   :  { %4025 = vst [vmem:[#allocation9_spill] sm:$0xff] %v3126_v38  ;;  %v261_v14 = vmul.f32 %v4013_v16, %v4013_v16  ;;  %v262_v34 = vmul.f32 %v2754_v26, %v2754_v26  ;;  %v264_v51 = vmul.f32 %v2733_v48, %v2733_v48  ;;  %v275_v18 = vadd.f32 %v3023_v23, %v3009_v12  ;;  %v4049_v38 = vld [vmem:[#allocation2_spill] sm:$0xff] }
  0x83   :  { %v276_v31 = vadd.f32 %v3045_v45, %v3011_v47  ;;  %v3164_v60 = vmul.f32 %v2441_v46, %v388_v6  ;;  %vm2223_vm12 = vcmp.lt.s32.totalorder %v2222_v62, 0  ;;  %v3166_v49 = vmul.f32 %v701_v11, %v595_v22 }
  0x84   :  { %v3168_v27 = vmul.f32 %v701_v11, %v699_v29  ;;  %v1154_v16 = vmul.u32 %v3072_v33, %v1138_v19  ;;  %vm1156_vm13 = vc.u32 %v3141_v63, %v3106_v17  ;;  %v265_v48 = vmul.f32 %v4018_v30, %v4018_v30  ;;  %v2216_v29 = vld [vmem:[%s3939_s1 + $0xb8] sm:$0xff] }
  0x85   :  { %v267_v26 = vmul.f32 %v2902_v5, %v2902_v5  ;;  %v268_v44 = vmul.f32 %v2914_v61, %v2914_v61  ;;  %v1158_v53 = vsel %vm1156_vm13, %v1157_v25, %v3107_v2  ;;  %v270_v42 = vmul.f32 %v2909_v4, %v2909_v4  ;;  %v2210_v4 = vld [vmem:[%s3939_s1 + $0x48] sm:$0xff] }
  0x86   :  { %v271_v33 = vmul.f32 %v2919_v58, %v2919_v58  ;;  %v712_v32 = vsub.f32 0.0, %v3164_v60  ;;  %v3185_v54 = vsel %vm2223_vm12, 0, %v2222_v62  ;;  %v3189_v30 = vadd.f32 %v3037_v39, %v3019_v15  ;;  %v2212_v58 = vld [vmem:[%s3939_s1 + $0x58] sm:$0xff] }
  0x87   :  { %v3193_v61 = vadd.f32 %v256_v41, %v255_v9  ;;  %v273_v2 = vmul.f32 2.0, %v2875_v52  ;;  %v274_v7 = vmul.f32 2.0, %v2953_v37  ;;  %v747_v15 = vmul.f32 %v3166_v49, %v275_v18  ;;  %v2214_v9 = vld [vmem:[%s3939_s1 + $0xa8] sm:$0xff]  ;;  %v2215_v52 = vld [vmem:[%s3939_s1 + $0xb0] sm:$0xff] }
  0x88   :  { %4026 = vst [vmem:[#allocation10_spill] sm:$0xff] %v3189_v30  ;;  %v748_v39 = vmul.f32 %v3168_v27, %v276_v31  ;;  %v1159_v55 = vadd.s32 %v1158_v53, %v1154_v16  ;;  %v263_v56 = vadd.f32 %v262_v34, %v261_v14  ;;  %v266_v8 = vadd.f32 %v265_v48, %v264_v51 }
  0x89   :  { %4027 = vst [vmem:[#allocation11_spill] sm:$0xff] %v3193_v61  ;;  %v968_v37 = vsub.s32 4294967266, %v3185_v54  ;;  %v269_v13 = vadd.f32 %v268_v44, %v267_v26  ;;  %v272_v35 = vadd.f32 %v271_v33, %v270_v42  ;;  %v3215_v20 = vsub.f32 %v3164_v60, %v2210_v4  ;;  %v2211_v44 = vld [vmem:[%s3939_s1 + $0x50] sm:$0xff] }
  0x8a   :  { %v3217_v41 = vsub.f32 %v712_v32, %v2212_v58  ;;  %v4028_v62 = vsub.f32 %v2774_v43, %v2923_v24  ;;  %v4029_v46 = vsub.f32 %v2960_v0, %v2964_v40  ;;  %v763_v1 = vadd.f32 1.0, %v2214_v9  ;;  %v2217_v43 = vld [vmem:[%s3939_s1 + $0xc0] sm:$0xff]  ;;  %v2218_v32 = vld [vmem:[%s3939_s1 + $0xc8] sm:$0xff]  ;;  %v4033_v4 = vld [vmem:[#allocation4_spill] sm:$0xff] }
  0x8b   :  { %v786_v22 = vadd.f32 1.0, %v2215_v52  ;;  %v745_v25 = vsub.f32 %v273_v2, %v274_v7  ;;  %v749_v14 = vadd.f32 %v748_v39, %v747_v15  ;;  %v1160_v24 = vadd.s32 536870912, %v1159_v55 }
  0x8c   :  { %v3222_v6 = vmul.f32 2.0, %v4028_v62  ;;  %v3227_v11 = vmul.f32 2.0, %v4029_v46  ;;  %v744_v34 = vadd.f32 %v274_v7, %v273_v2  ;;  %v948_v0 = vadd.s32 %v2865_v59, %v2871_v10 }
  0x8d   :  { %v964_v40 = vsub.s32 32, %v3185_v54  ;;  %v969_v51 = vadd.s32 127, %v968_v37  ;;  %v3242_v31 = vsub.f32 %v263_v56, %v266_v8  ;;  %v723_v16 = vsub.f32 %v3215_v20, %v3217_v41 }
  0x8e   :  { %4030 = vst [vmem:[#allocation12_spill] sm:$0xff] %v3227_v11  ;;  %v808_v48 = vadd.f32 1.0, %v2216_v29  ;;  %v3246_v26 = vsub.f32 %v269_v13, %v272_v35  ;;  %v3251_v53 = vmul.f32 0.5, %v763_v1  ;;  %v3253_v59 = vmul.f32 0.5, %v786_v22  ;;  %v2213_v13 = vld [vmem:[%s3939_s1 + $0x60] sm:$0xff] }
  0x8f   :  { %4031 = vst [vmem:[#allocation13_spill] sm:$0xff] %v3242_v31  ;;  %v831_v10 = vadd.f32 1.0, %v2217_v43  ;;  %v746_v42 = vmul.f32 %v745_v25, %v3164_v60  ;;  %v750_v33 = vmul.f32 2.0, %v749_v14  ;;  %v3259_v2 = vshrl.u32 %v1160_v24, 30 }
  0x90   :  { %4032 = vst [vmem:[#allocation14_spill] sm:$0xff] %v3246_v26  ;;  %v3262_v58 = vmul.f32 2.0, %v4033_v4  ;;  %v752_v7 = vmul.f32 %v744_v34, %v3166_v49  ;;  %v965_v15 = vshll.u32 %v3058_v36, %v3185_v54  ;;  %v966_v39 = vshrl.u32 %v948_v0, %v964_v40 }
  0x91   :  { %v970_v9 = vshll.u32 %v969_v51, 23  ;;  %v711_v56 = vsub.f32 %v3166_v49, %v2211_v44  ;;  %v724_v8 = vmul.f32 %v723_v16, %v723_v16  ;;  %v3270_v37 = vmul.f32 0.5, %v808_v48  ;;  %v2219_v49 = vld [vmem:[%s3939_s1 + $0xd0] sm:$0xff] }
  0x92   :  { %4034 = vst [vmem:[#allocation4_spill] sm:$0xff] %v3262_v58  ;;  %v753_v35 = vmul.f32 %v744_v34, %v3168_v27  ;;  %v3277_v46 = vmul.f32 0.5, %v831_v10  ;;  %v853_v36 = vadd.f32 1.0, %v2218_v32  ;;  %v3279_v54 = vadd.f32 %v750_v33, %v746_v42  ;;  %v4035_v42 = vld [vmem:[#allocation8_spill] sm:$0xff] }
  0x93   :  { %v1162_v22 = vshll.u32 %v3259_v2, 30  ;;  %v1501_v29 = vand.u32 2139095040, %v3262_v58  ;;  %v778_v25 = vmul.f32 -1.0, %v752_v7  ;;  %v967_v14 = vor.u32 %v966_v39, %v965_v15 }
  0x94   :  { %v971_v43 = vor.u32 4788187, %v970_v9  ;;  %v3977_v24 = vand.u32 2147483647, %v3262_v58  ;;  %v720_v0 = vsub.f32 %v3168_v27, %v2213_v13  ;;  %v725_v40 = vmul.f32 0.25, %v724_v8  ;;  %v4036_v9 = vld [vmem:[#allocation6_spill] sm:$0xff] }
  0x95   :  { %v726_v51 = vmul.f32 %v711_v56, %v711_v56  ;;  %v1163_v16 = vsub.s32 %v1159_v55, %v1162_v22  ;;  %v754_v48 = vsub.f32 0.0, %v753_v35  ;;  %v876_v10 = vadd.f32 1.0, %v2219_v49 }
  0x96   :  { %v978_v33 = vsub.s32 4, %v4035_v42  ;;  %v756_v32 = vadd.f32 %v752_v7, %v3279_v54  ;;  %v1502_v15 = vshrl.u32 %v1501_v29, 23  ;;  %v779_v39 = vadd.f32 %v778_v25, %v3279_v54 }
  0x97   :  { %v1165_v52 = vsub.s32 0, %v1163_v16  ;;  %vm894_vm14 = vcmp.lt.s32.totalorder %v4036_v9, 0  ;;  %v972_v27 = vand.u32 2147483647, %v971_v43  ;;  %v974_v8 = vcvt.s32.f32 %v967_v14 }
  0x98   :  { %v727_v56 = vadd.f32 %v726_v51, %v725_v40  ;;  %v728_v55 = vmul.f32 %v720_v0, %v720_v0  ;;  %v1505_v35 = vand.u32 8388607, %v3977_v24  ;;  %v755_v49 = vmul.f32 %v744_v34, %v3164_v60 }
  0x99   :  { %v2229_v13 = vmin.u32 %v1165_v52, %v1163_v16  ;;  %v823_v22 = vmul.f32 -1.0, %v754_v48  ;;  %v3298_v7 = vmul.f32 0.5, %v853_v36  ;;  %v979_v29 = vsel %vm894_vm14, %v978_v33, %v4035_v42  ;;  %v4042_v42 = vld [vmem:[#allocation3_spill] sm:$0xff] }
  0x9a   :  { %v757_v25 = vmul.f32 0.5, %v756_v32  ;;  %v801_v5 = vadd.f32 %v754_v48, %v3279_v54  ;;  %v2246_v14 = vadd.s32 4294967169, %v1502_v15  ;;  %v780_v40 = vmul.f32 0.5, %v779_v39 }
  0x9b   :  { %4037 = vst [vmem:[#allocation8_spill] sm:$0xff] %v3298_v7  ;;  %v1167_v43 = vclz %v2229_v13  ;;  %v3304_v0 = vmul.f32 0.5, %v876_v10  ;;  %v4039_v52 = vand.u32 2147483647, %v4036_v9  ;;  %v975_v60 = vmul.f32 %v974_v8, %v972_v27 }
  0x9c   :  { %v3312_v34 = vadd.f32 %v728_v55, %v727_v56  ;;  %v1506_v24 = vor.u32 8388608, %v1505_v35  ;;  %v824_v48 = vadd.f32 %v823_v22, %v3279_v54  ;;  %v868_v32 = vmul.f32 -1.0, %v755_v49 }
  0x9d   :  { %4038 = vst [vmem:[#allocation6_spill] sm:$0xff] %v3304_v0  ;;  %vm3308_vm15 = vcmp.le.f32.partialorder %v4039_v52, 0.7853982  ;;  %v2230_v36 = vadd.s32 4294967294, %v1167_v43  ;;  %v1508_v15 = vadd.s32 1, %v2246_v14  ;;  %v758_v39 = vadd.f32 1.0, %v757_v25 }
  0x9e   :  { %v3318_v10 = vsel %vm3308_vm15, 0, %v979_v29  ;;  %v802_v13 = vmul.f32 0.5, %v801_v5  ;;  %v1155_v52 = vadd.s32 %v3106_v17, %v3141_v63  ;;  %v781_v27 = vadd.f32 1.0, %v780_v40 }
  0x9f   :  { %vm2231_vm0 = vcmp.lt.s32.totalorder %v2230_v36, 0  ;;  %v976_v8 = vxor.u32 2147483648, %v975_v60  ;;  %vm1509_vm1 = vcmp.gt.s32.totalorder %v1508_v15, 0  ;;  %2347 = vrsqrt.f32 %v3312_v34 }
  0xa0   :  { %v1170_v56 = vsel %vm2231_vm0, 0, %v2230_v36  ;;  %v3323_v43 = vmul.f32 0.5, %v824_v48  ;;  %v846_v29 = vadd.f32 %v755_v49, %v3279_v54  ;;  %v3327_v25 = vadd.f32 %v868_v32, %v3279_v54 }
  0xa1   :  { %v1171_v55 = vsub.s32 32, %v1170_v56  ;;  %v1172_v35 = vshll.u32 %v1163_v16, %v1170_v56  ;;  %v1175_v22 = vsub.s32 4294967266, %v1170_v56  ;;  %v1510_v5 = vsel %vm1509_vm1, %v1508_v15, 0 }
  0xa2   :  { %v803_v14 = vadd.f32 1.0, %v802_v13  ;;  %v1512_v40 = vand.u32 31, %v1510_v5  ;;  %v3329_v3 = vmul.f32 0.5, %v758_v39  ;;  %v3331_v36 = vmul.f32 0.5, %v781_v27 }
  0xa3   :  { %v1173_v17 = vshrl.u32 %v1155_v52, %v1171_v55  ;;  %v1176_v63 = vadd.s32 127, %v1175_v22  ;;  %v977_v16 = vsel %vm894_vm14, %v976_v8, %v975_v60  ;;  %v1511_v56 = vshrl.u32 %v1510_v5, 5 }
  0xa4   :  { %v1513_v44 = vsub.s32 32, %v1512_v40  ;;  %v4043_v49 = vmov 683565275   ;;  %v4044_v54 = vmov 2475754826   ;;  %v3342_v60 = vshll.u32 %v1506_v24, 8 }
  0xa5   :  { %v1174_v48 = vor.u32 %v1173_v17, %v1172_v35  ;;  %v1177_v4 = vshll.u32 %v1176_v63, 23  ;;  %v1515_v18 = vshll.u32 %v4043_v49, %v1512_v40  ;;  %v1518_v32 = vshll.u32 %v4044_v54, %v1512_v40 }
  0xa6   :  { %v4045_v15 = vmov 2131351028   ;;  %v4046_v52 = vmov 2102212464   ;;  %v4047_v22 = vmov 920167782   ;;  %v1514_v27 = vshrl.u32 %v4043_v49, %v1513_v44 }
  0xa7   :  { %v1521_v13 = vshll.u32 %v4045_v15, %v1512_v40  ;;  %v1524_v55 = vshll.u32 %v4046_v52, %v1512_v40  ;;  %v1527_v39 = vshll.u32 %v4047_v22, %v1512_v40  ;;  %v1178_v19 = vor.u32 4788187, %v1177_v4 }
  0xa8   :  { %v1516_v1 = vshrl.u32 %v4044_v54, %v1513_v44  ;;  %v1519_v8 = vshrl.u32 %v4045_v15, %v1513_v44  ;;  %v1522_v35 = vshrl.u32 %v4046_v52, %v1513_v44  ;;  %v1525_v5 = vshrl.u32 %v4047_v22, %v1513_v44 }
  0xa9   :  { %v4048_v17 = vmov 1326507024   ;;  %v1179_v62 = vand.u32 2147483647, %v1178_v19  ;;  %v1181_v33 = vcvt.s32.f32 %v1174_v48  ;;  %vm1530_vm2 = vcmp.lt.s32.totalorder %v1511_v56, 1  ;;  %v3348_v31 = vpop.eup %2347 }
  0xaa   :  { %v1528_v63 = vshrl.u32 %v4048_v17, %v1513_v44  ;;  %v1517_v61 = vor.u32 %v1516_v1, %v1515_v18  ;;  %v1520_v40 = vor.u32 %v1519_v8, %v1518_v32  ;;  %v1523_v4 = vor.u32 %v1522_v35, %v1521_v13 }
  0xab   :  { %v1526_v30 = vor.u32 %v1525_v5, %v1524_v55  ;;  %vm1531_vm3 = vcmp.lt.s32.totalorder %v1511_v56, 2  ;;  %vm1532_vm4 = vcmp.lt.s32.totalorder %v1511_v56, 3  ;;  %vm1533_vm5 = vcmp.lt.s32.totalorder %v1511_v56, 4 }
  0xac   :  { %v1529_v26 = vor.u32 %v1528_v63, %v1527_v39  ;;  %v1534_v24 = vsel %vm1530_vm2, %v1514_v27, %v1517_v61  ;;  %vm1101_vm6 = vcmp.lt.s32.totalorder %v4049_v38, 0  ;;  %v1535_v58 = vsel %vm1533_vm5, %v1523_v4, 2102212464 }
  0xad   :  { %v1538_v0 = vsel %vm1530_vm2, %v1517_v61, %v1520_v40  ;;  %v1539_v28 = vsel %vm1533_vm5, %v1526_v30, 920167782  ;;  %v1542_v44 = vsel %vm1530_vm2, %v1520_v40, %v1523_v4  ;;  %v980_v19 = vsel %vm3308_vm15, %v4036_v9, %v977_v16 }
  0xae   :  { %v1536_v18 = vsel %vm1532_vm4, %v1520_v40, %v1535_v58  ;;  %v1540_v1 = vsel %vm1532_vm4, %v1523_v4, %v1539_v28  ;;  %v1543_v48 = vsel %vm1533_vm5, %v1529_v26, 1326507024  ;;  %v1182_v32 = vmul.f32 %v1181_v33, %v1179_v62 }
  0xaf   :  { %v1541_v13 = vsel %vm1531_vm3, %v1538_v0, %v1540_v1  ;;  %v1544_v55 = vsel %vm1532_vm4, %v1526_v30, %v1543_v48  ;;  %v4050_v39 = vand.u32 2139095040, %v4042_v42  ;;  %v1537_v8 = vsel %vm1531_vm3, %v1534_v24, %v1536_v18 }
  0xb0   :  { %v1545_v61 = vsel %vm1531_vm3, %v1542_v44, %v1544_v55  ;;  %v3360_v35 = vmul.u32.u64.low %v3342_v60, %v1541_v13  ;;  %v3361_v5 = vmul.u32.u64.high %v3342_v60, %v1541_v13, %v3360_v35  ;;  %2349 = vlog2.f32 %v3329_v3 }
  0xb1   :  { %v1709_v27 = vshrl.u32 %v4050_v39, 23  ;;  %v768_v28 = vsub.f32 1.0, %v3329_v3  ;;  %v3367_v26 = vmul.u32.u64.low %v3342_v60, %v1545_v61  ;;  %v3368_v58 = vmul.u32.u64.high %v3342_v60, %v1545_v61, %v3367_v26 }
  0xb2   :  { %2351 = vlog2.f32 %v3331_v36  ;;  %v791_v30 = vsub.f32 1.0, %v3331_v36  ;;  %v847_v62 = vmul.f32 0.5, %v846_v29  ;;  %v1088_v0 = vadd.s32 3, %v3318_v10 }
  0xb3   :  { %v804_v51 = vmul.f32 0.5, %v803_v14  ;;  %v826_v33 = vadd.f32 1.0, %v3323_v43  ;;  %2353 = vcosq.f32 %v980_v19  ;;  %v1553_v16 = vmul.u32 %v3342_v60, %v1537_v8 }
  0xb4   :  { %2355 = vsinq.f32 %v980_v19  ;;  %v1183_v56 = vxor.u32 2147483648, %v1182_v32  ;;  %v1556_v3 = vadd.s32 1, %v3361_v5  ;;  %v2254_v63 = vadd.s32 4294967169, %v1709_v27 }
  0xb5   :  { %2357 = vlog2.f32 %v768_v28  ;;  %v870_v40 = vmul.f32 0.5, %v3327_v25  ;;  %v3378_v4 = vand.u32 3, %v3318_v10  ;;  %vm1555_vm7 = vc.u32 %v3368_v58, %v3360_v35 }
  0xb6   :  { %v721_v43 = vadd.f32 %v3217_v41, %v3215_v20  ;;  %2359 = vlog2.f32 %v791_v30  ;;  %v848_v29 = vadd.f32 1.0, %v847_v62  ;;  %v1557_v14 = vsel %vm1555_vm7, %v1556_v3, %v3361_v5 }
  0xb7   :  { %v813_v36 = vsub.f32 1.0, %v804_v51  ;;  %v4051_v24 = vand.u32 2147483647, %v4049_v38  ;;  %v1558_v10 = vadd.s32 %v1557_v14, %v1553_v16  ;;  %v827_v44 = vmul.f32 0.5, %v826_v33 }
  0xb8   :  { %v3392_v19 = vand.u32 3, %v1088_v0  ;;  %v1184_v20 = vsel %vm1101_vm6, %v1183_v56, %v1182_v32  ;;  %v1715_v41 = vadd.s32 1, %v2254_v63  ;;  %v871_v18 = vadd.f32 1.0, %v870_v40 }
  0xb9   :  { %vm3388_vm8 = vcmp.le.f32.partialorder %v4051_v24, 0.7853982  ;;  %v1559_v48 = vadd.s32 536870912, %v1558_v10  ;;  %v3986_v13 = vand.u32 2147483647, %v4042_v42  ;;  %v3399_v55 = vmul.f32 0.5, %v721_v43 }
  0xba   :  { %2361 = vlog2.f32 %v804_v51  ;;  %v849_v39 = vmul.f32 0.5, %v848_v29  ;;  %vm987_vm9 = vcmp.eq.s32.totalorder %v3378_v4, 0  ;;  %v2350_v27 = vpop.eup %2349  ;;  %v1185_v8 = vsub.s32 4, %v3259_v2 }
  0xbb   :  { %2363 = vlog2.f32 %v813_v36  ;;  %v1187_v32 = vsel %vm3388_vm8, %v4049_v38, %v1184_v20  ;;  %v3406_v61 = vshrl.u32 %v1559_v48, 30  ;;  %v836_v28 = vsub.f32 1.0, %v827_v44 }
  0xbc   :  { %v2352_v5 = vpop.eup %2351  ;;  %vm990_vm11 = vcmp.eq.s32.totalorder %v3378_v4, 2  ;;  %vm1091_vm10 = vcmp.eq.s32.totalorder %v3392_v19, 0  ;;  %vm1716_vm12 = vcmp.gt.s32.totalorder %v1715_v41, 0  ;;  %2365 = vlog2.f32 %v827_v44 }
  0xbd   :  { %4054 = vst [vmem:[#allocation2_spill] sm:$0xff] %v3406_v61  ;;  %v2354_v26 = vpop.eup %2353  ;;  %v872_v30 = vmul.f32 0.5, %v871_v18  ;;  %vm986_vm13 = vcmp.lt.s32.totalorder %v3378_v4, 2  ;;  %vm1090_vm14 = vcmp.lt.s32.totalorder %v3392_v19, 2  ;;  %vm1094_vm15 = vcmp.eq.s32.totalorder %v3392_v19, 2 }
  0xbe   :  { %v1561_v62 = vshll.u32 %v3406_v61, 30  ;;  %v2356_v0 = vpop.eup %2355  ;;  %vm732_vm0 = vcmp.eq.f32.partialorder %v3312_v34, inf  ;;  %v766_v51 = vmul.f32 0.6931472, %v2350_v27  ;;  %v858_v33 = vsub.f32 1.0, %v849_v39 }
  0xbf   :  { %2367 = vcosq.f32 %v1187_v32  ;;  %v2358_v16 = vpop.eup %2357  ;;  %v1186_v56 = vsel %vm1101_vm6, %v1185_v8, %v3259_v2  ;;  %v1717_v63 = vsel %vm1716_vm12, %v1715_v41, 0  ;;  %v789_v29 = vmul.f32 0.6931472, %v2352_v5 }
  0xc0   :  { %2369 = vsinq.f32 %v1187_v32  ;;  %v3418_v3 = vsub.s32 %v1558_v10, %v1561_v62  ;;  %v2360_v40 = vpop.eup %2359  ;;  %v991_v14 = vxor.u32 2147483648, %v2354_v26  ;;  %v881_v36 = vsub.f32 1.0, %v872_v30 }
  0xc1   :  { %2371 = vlog2.f32 %v836_v28  ;;  %v988_v24 = vxor.u32 2147483648, %v2356_v0  ;;  %v731_v20 = vmul.f32 %v3348_v31, %v3312_v34  ;;  %v1188_v2 = vsel %vm3388_vm8, 0, %v1186_v56 }
  0xc2   :  { %2373 = vlog2.f32 %v849_v39  ;;  %v1564_v44 = vsub.s32 0, %v3418_v3  ;;  %v1719_v10 = vand.u32 31, %v1717_v63  ;;  %v767_v41 = vmax.f32 %v766_v51, -100.0 }
  0xc3   :  { %2375 = vlog2.f32 %v858_v33  ;;  %v3427_v18 = vmul.f32 0.6931472, %v2358_v16  ;;  %v3429_v48 = vmul.f32 0.6931472, %v2360_v40  ;;  %v790_v8 = vmax.f32 %v789_v29, -100.0 }
  0xc4   :  { %v2247_v27 = vmin.u32 %v1564_v44, %v3418_v3  ;;  %v2362_v39 = vpop.eup %2361  ;;  %2377 = vlog2.f32 %v872_v30  ;;  %v992_v32 = vsel %vm990_vm11, %v991_v14, %v2356_v0  ;;  %v1096_v31 = vsel %vm1094_vm15, %v991_v14, %v2356_v0 }
  0xc5   :  { %v2364_v5 = vpop.eup %2363  ;;  %v989_v25 = vsel %vm987_vm9, %v2354_v26, %v988_v24  ;;  %v1093_v28 = vsel %vm1091_vm10, %v2354_v26, %v988_v24  ;;  %v3440_v62 = vand.u32 3, %v1188_v2  ;;  %v1295_v51 = vadd.s32 3, %v1188_v2 }
  0xc6   :  { %v3445_v30 = vsel %vm732_vm0, %v3312_v34, %v731_v20  ;;  %2379 = vlog2.f32 %v881_v36  ;;  %v1566_v33 = vclz %v2247_v27  ;;  %v1720_v16 = vsub.s32 32, %v1719_v10  ;;  %v3447_v56 = vpop.eup %2365 }
  0xc7   :  { %v3451_v40 = vmul.f32 %v767_v41, %v3251_v53  ;;  %v3454_v29 = vmul.f32 0.6931472, %v2362_v39  ;;  %v3457_v24 = vmul.f32 %v790_v8, %v3253_v59  ;;  %v3459_v44 = vmul.f32 0.6931472, %v2364_v5 }
  0xc8   :  { %vm984_vm1 = vweird.f32 %v4036_v9  ;;  %v993_v36 = vsel %vm986_vm13, %v989_v25, %v992_v32  ;;  %v1097_v20 = vsel %vm1090_vm14, %v1093_v28, %v1096_v31  ;;  %vm1193_vm2 = vcmp.lt.s32.totalorder %v3440_v62, 2 }
  0xc9   :  { %v2368_v14 = vpop.eup %2367  ;;  %vm1194_vm3 = vcmp.eq.s32.totalorder %v3440_v62, 0  ;;  %v1296_v41 = vand.u32 3, %v1295_v51  ;;  %v2248_v27 = vadd.s32 4294967294, %v1566_v33  ;;  %v1731_v8 = vshll.u32 %v4046_v52, %v1719_v10 }
  0xca   :  { %v2370_v2 = vpop.eup %2369  ;;  %v1732_v5 = vshrl.u32 %v4047_v22, %v1720_v16  ;;  %v1734_v60 = vshll.u32 %v4047_v22, %v1719_v10  ;;  %v1735_v4 = vshrl.u32 %v4048_v17, %v1720_v16  ;;  %vm1191_vm4 = vweird.f32 %v4049_v38 }
  0xcb   :  { %v3468_v39 = vpop.eup %2371  ;;  %vm1197_vm5 = vcmp.eq.s32.totalorder %v3440_v62, 2  ;;  %v1712_v19 = vand.u32 8388607, %v3986_v13  ;;  %v3480_v31 = vshrl.u32 %v1717_v63, 5  ;;  %v1722_v25 = vshll.u32 %v4043_v49, %v1719_v10 }
  0xcc   :  { %v3474_v32 = vpop.eup %2373  ;;  %v1195_v51 = vxor.u32 2147483648, %v2370_v2  ;;  %v1198_v33 = vxor.u32 2147483648, %v2368_v14  ;;  %v1723_v22 = vshrl.u32 %v4044_v54, %v1720_v16  ;;  %v1725_v17 = vshll.u32 %v4044_v54, %v1719_v10 }
  0xcd   :  { %v3483_v28 = vpop.eup %2375  ;;  %vm2249_vm6 = vcmp.lt.s32.totalorder %v2248_v27, 0  ;;  %v1726_v1 = vshrl.u32 %v4045_v15, %v1720_v16  ;;  %v1728_v43 = vshll.u32 %v4045_v15, %v1719_v10  ;;  %v1729_v26 = vshrl.u32 %v4046_v52, %v1720_v16 }
  0xce   :  { %v3490_v13 = vpop.eup %2377  ;;  %vm1298_vm7 = vcmp.eq.s32.totalorder %v1296_v41, 0  ;;  %vm1301_vm8 = vcmp.eq.s32.totalorder %v1296_v41, 2  ;;  %v1733_v63 = vor.u32 %v1732_v5, %v1731_v8  ;;  %v1736_v0 = vor.u32 %v1735_v4, %v1734_v60 }
  0xcf   :  { %vm1297_vm9 = vcmp.lt.s32.totalorder %v1296_v41, 2  ;;  %v1713_v42 = vor.u32 8388608, %v1712_v19  ;;  %vm1737_vm11 = vcmp.lt.s32.totalorder %v3480_v31, 1  ;;  %vm1740_vm10 = vcmp.lt.s32.totalorder %v3480_v31, 4 }
  0xd0   :  { %v3494_v54 = vpop.eup %2379  ;;  %v1196_v61 = vsel %vm1194_vm3, %v2368_v14, %v1195_v51  ;;  %v1199_v15 = vsel %vm1197_vm5, %v1198_v33, %v2370_v2  ;;  %v3501_v52 = vsel %vm2249_vm6, 0, %v2248_v27  ;;  %v1724_v10 = vor.u32 %v1723_v22, %v1722_v25 }
  0xd1   :  { %vm734_vm12 = vcmp.eq.f32.partialorder %v3312_v34, 0.0  ;;  %v1300_v60 = vsel %vm1298_vm7, %v2368_v14, %v1195_v51  ;;  %v1303_v8 = vsel %vm1301_vm8, %v1198_v33, %v2370_v2  ;;  %v1727_v5 = vor.u32 %v1726_v1, %v1725_v17 }
  0xd2   :  { %v1730_v4 = vor.u32 %v1729_v26, %v1728_v43  ;;  %v1721_v19 = vshrl.u32 %v4043_v49, %v1720_v16  ;;  %vm1739_vm13 = vcmp.lt.s32.totalorder %v3480_v31, 3  ;;  %v1746_v7 = vsel %vm1740_vm10, %v1733_v63, 920167782 }
  0xd3   :  { %v1750_v11 = vsel %vm1740_vm10, %v1736_v0, 1326507024  ;;  %v994_v27 = vsel %vm984_vm1, nan, %v993_v36  ;;  %v1098_v25 = vsel %vm984_vm1, nan, %v1097_v20  ;;  %v1200_v1 = vsel %vm1193_vm2, %v1196_v61, %v1199_v15  ;;  %v2442_v36 = vld [vmem:[%s3938_s0 + $0x28] sm:$0xff] }
  0xd4   :  { %v1574_v43 = vsub.s32 4294967266, %v3501_v52  ;;  %v1304_v49 = vsel %vm1297_vm9, %v1300_v60, %v1303_v8  ;;  %vm1738_vm14 = vcmp.lt.s32.totalorder %v3480_v31, 2  ;;  %v1742_v16 = vsel %vm1740_vm10, %v1730_v4, 2102212464 }
  0xd5   :  { %v1753_v26 = vshll.u32 %v1713_v42, 8  ;;  %v1745_v0 = vsel %vm1737_vm11, %v1724_v10, %v1727_v5  ;;  %v1747_v9 = vsel %vm1739_vm13, %v1730_v4, %v1746_v7  ;;  %v1749_v62 = vsel %vm1737_vm11, %v1727_v5, %v1730_v4 }
  0xd6   :  { %v1751_v61 = vsel %vm1739_vm13, %v1733_v63, %v1750_v11  ;;  %v1201_v14 = vsel %vm1191_vm4, nan, %v1200_v1  ;;  %v1307_v42 = vmul.f32 %v2442_v36, %v1098_v25  ;;  %v1554_v20 = vadd.s32 %v3360_v35, %v3368_v58 }
  0xd7   :  { %v1741_v7 = vsel %vm1737_vm11, %v1721_v19, %v1724_v10  ;;  %v1305_v2 = vsel %vm1191_vm4, nan, %v1304_v49  ;;  %v1570_v41 = vsub.s32 32, %v3501_v52  ;;  %v1575_v11 = vadd.s32 127, %v1574_v43 }
  0xd8   :  { %v1743_v51 = vsel %vm1739_vm13, %v1727_v5, %v1742_v16  ;;  %v4055_v33 = vmax.f32 %v3427_v18, -100.0  ;;  %v4056_v22 = vsub.f32 1.0, %v3251_v53  ;;  %v834_v63 = vmul.f32 0.6931472, %v3447_v56 }
  0xd9   :  { %v1748_v35 = vsel %vm1738_vm14, %v1745_v0, %v1747_v9  ;;  %v1752_v38 = vsel %vm1738_vm14, %v1749_v62, %v1751_v61  ;;  %v4057_v58 = vmax.f32 %v3429_v48, -100.0  ;;  %v4058_v15 = vsub.f32 1.0, %v3253_v59 }
  0xda   :  { %v774_v17 = vmul.f32 %v4056_v22, %v4055_v33  ;;  %v3556_v60 = vmul.f32 %v2442_v36, %v994_v27  ;;  %v3558_v8 = vmul.u32.u64.low %v1753_v26, %v1752_v38  ;;  %v3559_v18 = vmul.u32.u64.high %v1753_v26, %v1752_v38, %v3558_v8 }
  0xdb   :  { %v797_v10 = vmul.f32 %v4058_v15, %v4057_v58  ;;  %v3561_v53 = vmul.f32 %v1307_v42, %v1201_v14  ;;  %v3563_v5 = vmul.f32 %v1307_v42, %v1305_v2  ;;  %v1571_v56 = vshll.u32 %v3418_v3, %v3501_v52  ;;  %v4065_v15 = vld [vmem:[#allocation7_spill] sm:$0xff] }
  0xdc   :  { %v1744_v4 = vsel %vm1738_vm14, %v1741_v7, %v1743_v51  ;;  %v1572_v19 = vshrl.u32 %v1554_v20, %v1570_v41  ;;  %v1576_v48 = vshll.u32 %v1575_v11, 23  ;;  %v4059_v27 = vand.u32 2147483648, %v3312_v34 }
  0xdd   :  { %v3569_v25 = vmul.u32.u64.low %v1753_v26, %v1748_v35  ;;  %v3570_v59 = vmul.u32.u64.high %v1753_v26, %v1748_v35, %v3569_v25  ;;  %v812_v43 = vmax.f32 %v3454_v29, -100.0  ;;  %v816_v3 = vmax.f32 %v3459_v44, -100.0 }
  0xde   :  { %v3578_v1 = vsel %vm734_vm12, %v4059_v27, %v3445_v30  ;;  %v838_v31 = vmul.f32 0.6931472, %v3468_v39  ;;  %v775_v52 = vadd.f32 %v774_v17, %v3451_v40  ;;  %v835_v49 = vmax.f32 %v834_v63, -100.0  ;;  %v2236_v39 = vld [vmem:[%s3939_s1 + $0x68] sm:$0xff] }
  0xdf   :  { %v856_v16 = vmul.f32 0.6931472, %v3474_v32  ;;  %v1318_v0 = vsub.f32 0.0, %v3556_v60  ;;  %v4060_v9 = vsub.f32 %v3011_v47, %v3045_v45  ;;  %v4061_v30 = vsub.f32 %v3023_v23, %v3009_v12  ;;  %v2238_v47 = vld [vmem:[%s3939_s1 + $0x78] sm:$0xff] }
  0xe0   :  { %v1760_v44 = vmul.u32 %v1753_v26, %v1744_v4  ;;  %vm1762_vm15 = vc.u32 %v3559_v18, %v3569_v25  ;;  %v798_v40 = vadd.f32 %v797_v10, %v3457_v24  ;;  %v1573_v45 = vor.u32 %v1572_v19, %v1571_v56  ;;  %v4067_v56 = vld [vmem:[#allocation6_spill] sm:$0xff]  ;;  %v4068_v19 = vld [vmem:[#allocation12_spill] sm:$0xff] }
  0xe1   :  { %v1353_v34 = vmul.f32 %v3561_v53, %v4060_v9  ;;  %v1354_v29 = vmul.f32 %v3563_v5, %v4061_v30  ;;  %v1577_v32 = vor.u32 4788187, %v1576_v48  ;;  %v1763_v12 = vadd.s32 1, %v3570_v59  ;;  %v2240_v48 = vld [vmem:[%s3939_s1 + $0xd8] sm:$0xff] }
  0xe2   :  { %v817_v23 = vmul.f32 %v812_v43, %v3270_v37  ;;  %v4062_v26 = vsub.f32 1.0, %v3270_v37  ;;  %v839_v61 = vmax.f32 %v838_v31, -100.0  ;;  %v860_v24 = vmul.f32 0.6931472, %v3483_v28  ;;  %v4070_v43 = vld [vmem:[#allocation8_spill] sm:$0xff] }
  0xe3   :  { %v776_v14 = vsub.f32 0.0, %v775_v52  ;;  %v840_v36 = vmul.f32 %v835_v49, %v3277_v46  ;;  %v857_v42 = vmax.f32 %v856_v16, -100.0  ;;  %v1764_v20 = vsel %vm1762_vm15, %v1763_v12, %v3570_v59  ;;  %v2237_v52 = vld [vmem:[%s3939_s1 + $0x70] sm:$0xff]  ;;  %v2239_v12 = vld [vmem:[%s3939_s1 + $0x80] sm:$0xff] }
  0xe4   :  { %v819_v62 = vmul.f32 %v4062_v26, %v816_v3  ;;  %v3611_v7 = vsub.f32 %v3556_v60, %v2236_v39  ;;  %v3613_v2 = vsub.f32 %v1318_v0, %v2238_v47  ;;  %v1355_v41 = vadd.f32 %v1354_v29, %v1353_v34  ;;  %v4071_v49 = vld [vmem:[#allocation4_spill] sm:$0xff] }
  0xe5   :  { %v3615_v11 = vadd.s32 %v1764_v20, %v1760_v44  ;;  %v799_v51 = vsub.f32 0.0, %v798_v40  ;;  %v879_v37 = vmul.f32 0.6931472, %v3490_v13  ;;  %v1578_v33 = vand.u32 2147483647, %v1577_v32  ;;  %v2241_v40 = vld [vmem:[%s3939_s1 + $0xe0] sm:$0xff] }
  0xe6   :  { %v1580_v22 = vcvt.s32.f32 %v1573_v45  ;;  %v820_v28 = vadd.f32 %v819_v62, %v817_v23  ;;  %v4063_v17 = vsub.f32 1.0, %v3277_v46  ;;  %v861_v35 = vmax.f32 %v860_v24, -100.0 }
  0xe7   :  { %v883_v38 = vmul.f32 0.6931472, %v3494_v54  ;;  %v4064_v58 = vsub.f32 %v3132_v21, %v3152_v50  ;;  %v4066_v10 = vsub.f32 %v3041_v57, %v4065_v15  ;;  %v737_v13 = vadd.f32 %v3578_v1, %v3399_v55 }
  0xe8   :  { %v842_v63 = vmul.f32 %v4063_v17, %v839_v61  ;;  %v886_v4 = vsub.f32 1.0, %v4067_v56  ;;  %v3634_v46 = vadd.f32 %v4068_v19, %v3222_v6  ;;  %v1329_v54 = vsub.f32 %v3611_v7, %v3613_v2 }
  0xe9   :  { %v3627_v8 = vsub.f32 %v4066_v10, %v4064_v58  ;;  %v4069_v21 = vsub.f32 %v3222_v6, %v4068_v19  ;;  %v1356_v57 = vmul.f32 2.0, %v1355_v41  ;;  %v1766_v59 = vadd.s32 536870912, %v3615_v11  ;;  %v2243_v41 = vld [vmem:[%s3939_s1 + $0xf0] sm:$0xff] }
  0xea   :  { %v800_v27 = vadd.f32 %v799_v51, %v776_v14  ;;  %v862_v3 = vmul.f32 %v857_v42, %v4070_v43  ;;  %v880_v31 = vmax.f32 %v879_v37, -100.0  ;;  %v4072_v16 = vand.u32 2147483647, %v4071_v49 }
  0xeb   :  { %v1352_v50 = vmul.f32 %v4069_v21, %v3556_v60  ;;  %v1581_v0 = vmul.f32 %v1580_v22, %v1578_v33  ;;  %v821_v9 = vsub.f32 0.0, %v820_v28  ;;  %v843_v34 = vadd.f32 %v842_v63, %v840_v36 }
  0xec   :  { %vm3652_vm0 = vcmp.le.f32.partialorder %v4072_v16, 0.7853982  ;;  %v4075_v30 = vsub.f32 1.0, %v4070_v43  ;;  %v884_v44 = vmax.f32 %v883_v38, -100.0  ;;  %v739_v39 = vsub.f32 %v3399_v55, %v3578_v1 }
  0xed   :  { %v1358_v47 = vmul.f32 %v3634_v46, %v3561_v53  ;;  %v1369_v45 = vadd.f32 1.0, %v2240_v48  ;;  %vm1500_vm1 = vcmp.lt.s32.totalorder %v4071_v49, 0  ;;  %v1317_v32 = vsub.f32 %v3561_v53, %v2237_v52  ;;  %v2242_v53 = vld [vmem:[%s3939_s1 + $0xe8] sm:$0xff] }
  0xee   :  { %v864_v29 = vmul.f32 %v4075_v30, %v861_v35  ;;  %v1330_v23 = vmul.f32 %v1329_v54, %v1329_v54  ;;  %v3670_v26 = vadd.f32 %v1356_v57, %v1352_v50  ;;  %v3672_v62 = vshrl.u32 %v1766_v59, 30  ;;  %v4076_v30 = vld [vmem:[#allocation2_spill] sm:$0xff] }
  0xef   :  { %v738_v61 = vand.u32 2147483647, %v737_v13  ;;  %v885_v55 = vmul.f32 %v880_v31, %v4067_v56  ;;  %v1392_v1 = vadd.f32 1.0, %v2241_v40  ;;  %v1582_v24 = vxor.u32 2147483648, %v1581_v0 }
  0xf0   :  { %v822_v14 = vadd.f32 %v821_v9, %v800_v27  ;;  %v844_v36 = vsub.f32 0.0, %v843_v34  ;;  %v865_v42 = vadd.f32 %v864_v29, %v862_v3  ;;  %v887_v20 = vmul.f32 %v886_v4, %v884_v44  ;;  %v2245_v34 = vld [vmem:[%s3939_s1 + $0x100] sm:$0xff] }
  0xf1   :  { %v740_v51 = vand.u32 2147483647, %v739_v39  ;;  %v1326_v37 = vsub.f32 %v3563_v5, %v2239_v12  ;;  %v1359_v33 = vmul.f32 %v3634_v46, %v3563_v5  ;;  %v1384_v22 = vmul.f32 -1.0, %v1358_v47  ;;  %v2244_v5 = vld [vmem:[%s3939_s1 + $0xf8] sm:$0xff] }
  0xf2   :  { %v1331_v28 = vmul.f32 0.25, %v1330_v23  ;;  %v1332_v17 = vmul.f32 %v1317_v32, %v1317_v32  ;;  %v1362_v63 = vadd.f32 %v1358_v47, %v3670_v26  ;;  %v1768_v35 = vshll.u32 %v3672_v62, 30 }
  0xf3   :  { %v3686_v38 = vmul.f32 0.5, %v1369_v45  ;;  %v1414_v58 = vadd.f32 1.0, %v2242_v53  ;;  %v1437_v15 = vadd.f32 1.0, %v2243_v41  ;;  %v1583_v10 = vsel %vm1500_vm1, %v1582_v24, %v1581_v0 }
  0xf4   :  { %v845_v13 = vadd.f32 %v844_v36, %v822_v14  ;;  %v866_v56 = vsub.f32 0.0, %v865_v42  ;;  %v888_v4 = vadd.f32 %v887_v20, %v885_v55  ;;  %v3690_v19 = vmul.f32 0.5, %v1392_v1 }
  0xf5   :  { %v741_v54 = vadd.f32 %v740_v51, %v738_v61  ;;  %v1334_v21 = vmul.f32 %v1326_v37, %v1326_v37  ;;  %v1360_v50 = vsub.f32 0.0, %v1359_v33  ;;  %v1385_v57 = vadd.f32 %v1384_v22, %v3670_v26 }
  0xf6   :  { %v1333_v48 = vadd.f32 %v1332_v17, %v1331_v28  ;;  %v1363_v59 = vmul.f32 0.5, %v1362_v63  ;;  %v1586_v27 = vsel %vm3652_vm0, %v4071_v49, %v1583_v10  ;;  %v3700_v43 = vsub.s32 %v3615_v11, %v1768_v35  ;;  %v4077_v35 = vld [vmem:[#allocation5_spill] sm:$0xff] }
  0xf7   :  { %v1379_v3 = vsub.f32 1.0, %v3686_v38  ;;  %v3703_v31 = vmul.f32 0.5, %v1414_v58  ;;  %v3705_v52 = vmul.f32 0.5, %v1437_v15  ;;  %v1459_v16 = vadd.f32 1.0, %v2244_v5  ;;  %v4078_v58 = vld [vmem:[#allocation9_spill] sm:$0xff] }
  0xf8   :  { %v867_v0 = vadd.f32 %v866_v56, %v845_v13  ;;  %v889_v9 = vsub.f32 0.0, %v888_v4  ;;  %v1584_v29 = vsub.s32 4, %v4076_v30  ;;  %v1771_v44 = vsub.s32 0, %v3700_v43 }
  0xf9   :  { %v1386_v40 = vmul.f32 0.5, %v1385_v57  ;;  %v1407_v11 = vadd.f32 %v1360_v50, %v3670_v26  ;;  %v1429_v39 = vmul.f32 -1.0, %v1360_v50  ;;  %2381 = vcosq.f32 %v1586_v27 }
  0xfa   :  { %v3713_v47 = vadd.f32 %v1334_v21, %v1333_v48  ;;  %v1364_v45 = vadd.f32 1.0, %v1363_v59  ;;  %2383 = vsinq.f32 %v1586_v27  ;;  %v2255_v32 = vmin.u32 %v1771_v44, %v3700_v43 }
  0xfb   :  { %v3716_v12 = vmul.f32 0.5, %v741_v54  ;;  %v1361_v23 = vmul.f32 %v3634_v46, %v3556_v60  ;;  %v1402_v61 = vsub.f32 1.0, %v3690_v19  ;;  %v1482_v55 = vadd.f32 1.0, %v2245_v34 }
  0xfc   :  { %v1424_v1 = vsub.f32 1.0, %v3703_v31  ;;  %v1447_v24 = vsub.f32 1.0, %v3705_v52  ;;  %v1585_v14 = vsel %vm1500_vm1, %v1584_v29, %v4076_v30  ;;  %v1773_v36 = vclz %v2255_v32 }
  0xfd   :  { %v1387_v42 = vadd.f32 1.0, %v1386_v40  ;;  %v1408_v20 = vmul.f32 0.5, %v1407_v11  ;;  %v1430_v53 = vadd.f32 %v1429_v39, %v3670_v26  ;;  %v3727_v41 = vmul.f32 0.5, %v1459_v16 }
  0xfe   :  { %v3729_v51 = vadd.f32 %v889_v9, %v867_v0  ;;  %2385 = vrsqrt.f32 %v3713_v47  ;;  %v1365_v60 = vmul.f32 0.5, %v1364_v45  ;;  %v2256_v46 = vadd.s32 4294967294, %v1773_v36 }
  0xff   :  { %v1327_v37 = vadd.f32 %v3613_v2, %v3611_v7  ;;  %v1474_v33 = vmul.f32 -1.0, %v1361_v23  ;;  %v3734_v22 = vmul.f32 0.5, %v1482_v55  ;;  %v1587_v28 = vsel %vm3652_vm0, 0, %v1585_v14 }
 0x100   :  { %v1591_v17 = vand.u32 3, %v1587_v28  ;;  %v1761_v63 = vadd.s32 %v3569_v25, %v3559_v18  ;;  %vm2257_vm2 = vcmp.lt.s32.totalorder %v2256_v46, 0  ;;  %v2103_v15 = vmul.f32 %v4078_v58, %v4077_v35 }
 0x101   :  { %v1388_v10 = vmul.f32 0.5, %v1387_v42  ;;  %v1409_v13 = vadd.f32 1.0, %v1408_v20  ;;  %v1431_v56 = vmul.f32 0.5, %v1430_v53  ;;  %v1776_v4 = vsel %vm2257_vm2, 0, %v2256_v46 }
 0x102   :  { %v1374_v5 = vsub.f32 1.0, %v1365_v60  ;;  %v1777_v7 = vsub.s32 32, %v1776_v4  ;;  %v1778_v2 = vshll.u32 %v3700_v43, %v1776_v4  ;;  %v1781_v54 = vsub.s32 4294967266, %v1776_v4  ;;  %2109 = vst [vmem:[%s3940_s2] sm:$0xff] %v2103_v15 }
 0x103   :  { %v3746_v6 = vpop.eup %2381  ;;  %v3748_v18 = vmul.f32 0.5, %v1327_v37  ;;  %v1452_v25 = vadd.f32 %v1361_v23, %v3670_v26  ;;  %v1469_v21 = vsub.f32 1.0, %v3727_v41  ;;  %v1492_v50 = vsub.f32 1.0, %v3734_v22 }
 0x104   :  { %v3753_v57 = vpop.eup %2383  ;;  %v1475_v48 = vadd.f32 %v1474_v33, %v3670_v26  ;;  %vm1593_vm3 = vcmp.eq.s32.totalorder %v1591_v17, 0  ;;  %v1779_v59 = vshrl.u32 %v1761_v63, %v1777_v7  ;;  %v1782_v27 = vadd.s32 127, %v1781_v54  ;;  %v4079_v63 = vld [vmem:[#allocation3_spill] sm:$0xff] }
 0x105   :  { %2387 = vlog2.f32 %v1365_v60  ;;  %v1410_v43 = vmul.f32 0.5, %v1409_v13  ;;  %v1432_v16 = vadd.f32 1.0, %v1431_v56  ;;  %vm1596_vm4 = vcmp.eq.s32.totalorder %v1591_v17, 2 }
 0x106   :  { %2389 = vlog2.f32 %v1374_v5  ;;  %v1397_v0 = vsub.f32 1.0, %v1388_v10  ;;  %v1780_v9 = vor.u32 %v1779_v59, %v1778_v2  ;;  %v1783_v34 = vshll.u32 %v1782_v27, 23 }
 0x107   :  { %v1453_v30 = vmul.f32 0.5, %v1452_v25  ;;  %v1594_v29 = vxor.u32 2147483648, %v3753_v57  ;;  %v1597_v44 = vxor.u32 2147483648, %v3746_v6  ;;  %v1694_v40 = vadd.s32 3, %v1587_v28  ;;  %v4083_v25 = vld [vmem:[#allocation13_spill] sm:$0xff] }
 0x108   :  { %v2386_v11 = vpop.eup %2385  ;;  %v1476_v39 = vmul.f32 0.5, %v1475_v48  ;;  %vm1592_vm5 = vcmp.lt.s32.totalorder %v1591_v17, 2  ;;  %v1784_v26 = vor.u32 4788187, %v1783_v34  ;;  %v1787_v45 = vcvt.s32.f32 %v1780_v9  ;;  %v4084_v48 = vld [vmem:[#allocation14_spill] sm:$0xff]  ;;  %v2266_v9 = vld [vmem:[%s3939_s1 + $0x108] sm:$0xff] }
 0x109   :  { %2391 = vlog2.f32 %v1388_v10  ;;  %v1433_v32 = vmul.f32 0.5, %v1432_v16  ;;  %v1595_v23 = vsel %vm1593_vm3, %v3746_v6, %v1594_v29  ;;  %v1598_v55 = vsel %vm1596_vm4, %v1597_v44, %v3753_v57  ;;  %v3800_v16 = vld [vmem:[%s3938_s0 + $0x40] sm:$0xff] }
 0x10a   :  { %2393 = vlog2.f32 %v1397_v0  ;;  %v1419_v14 = vsub.f32 1.0, %v1410_v43  ;;  %v1785_v36 = vand.u32 2147483647, %v1784_v26  ;;  %v1791_v42 = vsub.s32 4, %v3672_v62 }
 0x10b   :  { %v1337_v20 = vmul.f32 %v2386_v11, %v3713_v47  ;;  %v1454_v53 = vadd.f32 1.0, %v1453_v30  ;;  %vm1590_vm6 = vweird.f32 %v4071_v49  ;;  %v3769_v60 = vand.u32 3, %v1694_v40 }
 0x10c   :  { %vm1338_vm7 = vcmp.eq.f32.partialorder %v3713_v47, inf  ;;  %2395 = vlog2.f32 %v1410_v43  ;;  %v1599_v46 = vsel %vm1592_vm5, %v1595_v23, %v1598_v55  ;;  %v1788_v37 = vmul.f32 %v1787_v45, %v1785_v36  ;;  %v2262_v36 = vld [vmem:[%s3939_s1 + $0x88] sm:$0xff] }
 0x10d   :  { %v1442_v33 = vsub.f32 1.0, %v1433_v32  ;;  %v1477_v28 = vadd.f32 1.0, %v1476_v39  ;;  %v4080_v58 = vand.u32 2147483647, %v4079_v63  ;;  %vm1707_vm9 = vcmp.lt.s32.totalorder %v4079_v63, 0 }
 0x10e   :  { %v1341_v10 = vand.u32 2147483648, %v3713_v47  ;;  %2397 = vlog2.f32 %v1419_v14  ;;  %v1789_v13 = vxor.u32 2147483648, %v1788_v37  ;;  %v1792_v56 = vsel %vm1707_vm9, %v1791_v42, %v3672_v62  ;;  %v2264_v42 = vld [vmem:[%s3939_s1 + $0x98] sm:$0xff] }
 0x10f   :  { %vm3775_vm8 = vcmp.le.f32.partialorder %v4080_v58, 0.7853982  ;;  %v2388_v4 = vpop.eup %2387  ;;  %v1339_v17 = vsel %vm1338_vm7, %v3713_v47, %v1337_v20  ;;  %vm1340_vm11 = vcmp.eq.f32.partialorder %v3713_v47, 0.0  ;;  %v1455_v5 = vmul.f32 0.5, %v1454_v53 }
 0x110   :  { %v1600_v7 = vsel %vm1590_vm6, nan, %v1599_v46  ;;  %v2390_v2 = vpop.eup %2389  ;;  %2399 = vlog2.f32 %v1433_v32  ;;  %vm1697_vm10 = vcmp.eq.s32.totalorder %v3769_v60, 0  ;;  %v1790_v54 = vsel %vm1707_vm9, %v1789_v13, %v1788_v37 }
 0x111   :  { %v3789_v59 = vadd.f32 %v4084_v48, %v4083_v25  ;;  %2401 = vlog2.f32 %v1442_v33  ;;  %v1478_v62 = vmul.f32 0.5, %v1477_v28  ;;  %v1793_v27 = vsel %vm3775_vm8, %v4079_v63, %v1790_v54 }
 0x112   :  { %v1794_v47 = vsel %vm3775_vm8, 0, %v1792_v56  ;;  %v1342_v43 = vsel %vm1340_vm11, %v1341_v10, %v1339_v17  ;;  %vm1700_vm12 = vcmp.eq.s32.totalorder %v3769_v60, 2  ;;  %2403 = vcosq.f32 %v1793_v27 }
 0x113   :  { %v3803_v0 = vmul.f32 %v3800_v16, %v1600_v7  ;;  %v2392_v34 = vpop.eup %2391  ;;  %v1372_v30 = vmul.f32 0.6931472, %v2388_v4  ;;  %v1376_v40 = vmul.f32 0.6931472, %v2390_v2  ;;  %v1464_v11 = vsub.f32 1.0, %v1455_v5 }
 0x114   :  { %2405 = vsinq.f32 %v1793_v27  ;;  %v2394_v39 = vpop.eup %2393  ;;  %vm1696_vm13 = vcmp.lt.s32.totalorder %v3769_v60, 2  ;;  %v1901_v26 = vadd.s32 3, %v1794_v47  ;;  %v1957_v32 = vsub.f32 %v4083_v25, %v4084_v48 }
 0x115   :  { %v1924_v45 = vsub.f32 0.0, %v3803_v0  ;;  %v3813_v23 = vadd.f32 %v1342_v43, %v3748_v18  ;;  %v1345_v55 = vsub.f32 %v3748_v18, %v1342_v43  ;;  %v1487_v14 = vsub.f32 1.0, %v1478_v62 }
 0x116   :  { %v1975_v20 = vadd.f32 1.0, %v2266_v9  ;;  %v2396_v53 = vpop.eup %2395  ;;  %v1395_v46 = vmul.f32 0.6931472, %v2392_v34  ;;  %2407 = vlog2.f32 %v1455_v5  ;;  %v1699_v37 = vsel %vm1697_vm10, %v3746_v6, %v1594_v29 }
 0x117   :  { %v1702_v18 = vsel %vm1700_vm12, %v1597_v44, %v3753_v57  ;;  %v1373_v33 = vmax.f32 %v1372_v30, -100.0  ;;  %v1377_v28 = vmax.f32 %v1376_v40, -100.0  ;;  %v1399_v58 = vmul.f32 0.6931472, %v2394_v39 }
 0x118   :  { %2409 = vlog2.f32 %v1464_v11  ;;  %vm1797_vm14 = vweird.f32 %v4079_v63  ;;  %v2398_v15 = vpop.eup %2397  ;;  %v1798_v10 = vand.u32 3, %v1794_v47  ;;  %v1902_v13 = vand.u32 3, %v1901_v26 }
 0x119   :  { %v3834_v56 = vsub.f32 %v3803_v0, %v2262_v36  ;;  %v3836_v4 = vsub.f32 %v1924_v45, %v2264_v42  ;;  %v1344_v29 = vand.u32 2147483647, %v3813_v23  ;;  %v1417_v6 = vmul.f32 0.6931472, %v2396_v53 }
 0x11a   :  { %2411 = vlog2.f32 %v1478_v62  ;;  %v1703_v57 = vsel %vm1696_vm13, %v1699_v37, %v1702_v18  ;;  %v2400_v44 = vpop.eup %2399  ;;  %v3841_v17 = vand.u32 2147483647, %v1345_v55  ;;  %v1396_v5 = vmax.f32 %v1395_v46, -100.0 }
 0x11b   :  { %2413 = vlog2.f32 %v1487_v14  ;;  %v3843_v7 = vmul.f32 0.5, %v1975_v20  ;;  %v2402_v2 = vpop.eup %2401  ;;  %v1378_v54 = vmul.f32 %v1373_v33, %v3686_v38  ;;  %v1380_v27 = vmul.f32 %v1379_v3, %v1377_v28  ;;  %v2267_v3 = vld [vmem:[%s3939_s1 + $0x110] sm:$0xff] }
 0x11c   :  { %v1400_v47 = vmax.f32 %v1399_v58, -100.0  ;;  %v1421_v43 = vmul.f32 0.6931472, %v2398_v15  ;;  %v2404_v9 = vpop.eup %2403  ;;  %v1704_v60 = vsel %vm1590_vm6, nan, %v1703_v57  ;;  %vm1803_vm15 = vcmp.eq.s32.totalorder %v1798_v10, 2 }
 0x11d   :  { %vm1907_vm0 = vcmp.eq.s32.totalorder %v1902_v13, 2  ;;  %v1935_v62 = vsub.f32 %v3834_v56, %v3836_v4  ;;  %v1418_v30 = vmax.f32 %v1417_v6, -100.0  ;;  %vm1800_vm1 = vcmp.eq.s32.totalorder %v1798_v10, 0 }
 0x11e   :  { %v2406_v34 = vpop.eup %2405  ;;  %v1804_v40 = vxor.u32 2147483648, %v2404_v9  ;;  %vm1904_vm2 = vcmp.eq.s32.totalorder %v1902_v13, 0  ;;  %v1440_v11 = vmul.f32 0.6931472, %v2400_v44  ;;  %vm1799_vm3 = vcmp.lt.s32.totalorder %v1798_v10, 2  ;;  %v2263_v10 = vld [vmem:[%s3939_s1 + $0x90] sm:$0xff] }
 0x11f   :  { %v1801_v38 = vxor.u32 2147483648, %v2406_v34  ;;  %vm1903_vm4 = vcmp.lt.s32.totalorder %v1902_v13, 2  ;;  %v1422_v49 = vmax.f32 %v1421_v43, -100.0  ;;  %v1913_v45 = vmul.f32 %v3800_v16, %v1704_v60  ;;  %v2265_v13 = vld [vmem:[%s3939_s1 + $0xa0] sm:$0xff]  ;;  %v4086_v60 = vld [vmem:[#allocation11_spill] sm:$0xff] }
 0x120   :  { %v1805_v39 = vsel %vm1803_vm15, %v1804_v40, %v2406_v34  ;;  %v1909_v26 = vsel %vm1907_vm0, %v1804_v40, %v2406_v34  ;;  %v2408_v55 = vpop.eup %2407  ;;  %v1444_v14 = vmul.f32 0.6931472, %v2402_v2  ;;  %v1936_v20 = vmul.f32 %v1935_v62, %v1935_v62 }
 0x121   :  { %v1802_v36 = vsel %vm1800_vm1, %v2404_v9, %v1801_v38  ;;  %v1906_v42 = vsel %vm1904_vm2, %v2404_v9, %v1801_v38  ;;  %v1401_v46 = vmul.f32 %v1396_v5, %v3690_v19  ;;  %v3857_v33 = vadd.f32 1.0, %v2267_v3  ;;  %v4085_v9 = vld [vmem:[#allocation10_spill] sm:$0xff] }
 0x122   :  { %v2410_v53 = vpop.eup %2409  ;;  %v1806_v37 = vsel %vm1799_vm3, %v1802_v36, %v1805_v39  ;;  %v1910_v18 = vsel %vm1903_vm4, %v1906_v42, %v1909_v26  ;;  %v1381_v28 = vadd.f32 %v1380_v27, %v1378_v54  ;;  %v1403_v58 = vmul.f32 %v1402_v61, %v1400_v47 }
 0x123   :  { %v1807_v15 = vsel %vm1797_vm14, nan, %v1806_v37  ;;  %v1911_v16 = vsel %vm1797_vm14, nan, %v1910_v18  ;;  %v1423_v57 = vmul.f32 %v1418_v30, %v3703_v31  ;;  %v1441_v44 = vmax.f32 %v1440_v11, -100.0 }
 0x124   :  { %v2412_v6 = vpop.eup %2411  ;;  %v1914_v19 = vmul.f32 %v1913_v45, %v1807_v15  ;;  %v1915_v61 = vmul.f32 %v1913_v45, %v1911_v16  ;;  %v1425_v2 = vmul.f32 %v1424_v1, %v1422_v49  ;;  %v1445_v63 = vmax.f32 %v1444_v14, -100.0 }
 0x125   :  { %v2414_v5 = vpop.eup %2413  ;;  %v1462_v54 = vmul.f32 0.6931472, %v2408_v55  ;;  %v1937_v27 = vmul.f32 0.25, %v1936_v20  ;;  %v4087_v62 = vsub.f32 %v4085_v9, %v4086_v60  ;;  %v1466_v38 = vmul.f32 0.6931472, %v2410_v53 }
 0x126   :  { %v1923_v47 = vsub.f32 %v1914_v19, %v2263_v10  ;;  %v1932_v43 = vsub.f32 %v1915_v61, %v2265_v13  ;;  %v1960_v40 = vmul.f32 %v1915_v61, %v3627_v8  ;;  %v1958_v30 = vmul.f32 %v1957_v32, %v3803_v0 }
 0x127   :  { %v1959_v34 = vmul.f32 %v1914_v19, %v4087_v62  ;;  %v1964_v31 = vmul.f32 %v3789_v59, %v1914_v19  ;;  %v1965_v1 = vmul.f32 %v3789_v59, %v1915_v61  ;;  %v1967_v39 = vmul.f32 %v3789_v59, %v3803_v0 }
 0x128   :  { %v1938_v11 = vmul.f32 %v1923_v47, %v1923_v47  ;;  %v1940_v3 = vmul.f32 %v1932_v43, %v1932_v43  ;;  %v1382_v26 = vsub.f32 0.0, %v1381_v28  ;;  %v1404_v45 = vadd.f32 %v1403_v58, %v1401_v46 }
 0x129   :  { %v1961_v49 = vadd.f32 %v1960_v40, %v1959_v34  ;;  %v1463_v55 = vmax.f32 %v1462_v54, -100.0  ;;  %v1966_v8 = vsub.f32 0.0, %v1965_v1  ;;  %v1426_v14 = vadd.f32 %v1425_v2, %v1423_v57 }
 0x12a   :  { %v1485_v36 = vmul.f32 0.6931472, %v2412_v6  ;;  %v1939_v42 = vadd.f32 %v1938_v11, %v1937_v27  ;;  %v1446_v25 = vmul.f32 %v1441_v44, %v3705_v52  ;;  %v1448_v48 = vmul.f32 %v1447_v24, %v1445_v63 }
 0x12b   :  { %v1962_v20 = vmul.f32 2.0, %v1961_v49  ;;  %v1990_v32 = vmul.f32 -1.0, %v1964_v31  ;;  %v2035_v53 = vmul.f32 -1.0, %v1966_v8  ;;  %v1467_v37 = vmax.f32 %v1466_v38, -100.0 }
 0x12c   :  { %v3889_v18 = vadd.f32 %v1940_v3, %v1939_v42  ;;  %v2080_v59 = vmul.f32 -1.0, %v1967_v39  ;;  %v3894_v0 = vadd.f32 %v3841_v17, %v1344_v29  ;;  %v1383_v46 = vadd.f32 %v1382_v26, %v3729_v51 }
 0x12d   :  { %v1963_v15 = vadd.f32 %v1962_v20, %v1958_v30  ;;  %v1405_v28 = vsub.f32 0.0, %v1404_v45  ;;  %v1468_v58 = vmul.f32 %v1463_v55, %v3727_v41  ;;  %v1427_v16 = vsub.f32 0.0, %v1426_v14  ;;  %v2268_v45 = vld [vmem:[%s3939_s1 + $0x118] sm:$0xff] }
 0x12e   :  { %v1486_v52 = vmax.f32 %v1485_v36, -100.0  ;;  %v1489_v24 = vmul.f32 0.6931472, %v2414_v5  ;;  %2415 = vrsqrt.f32 %v3889_v18  ;;  %v1449_v44 = vadd.f32 %v1448_v48, %v1446_v25 }
 0x12f   :  { %v1968_v10 = vadd.f32 %v1964_v31, %v1963_v15  ;;  %v1991_v13 = vadd.f32 %v1990_v32, %v1963_v15  ;;  %v2013_v6 = vadd.f32 %v1966_v8, %v1963_v15  ;;  %v2036_v57 = vadd.f32 %v2035_v53, %v1963_v15  ;;  %v2269_v32 = vld [vmem:[%s3939_s1 + $0x120] sm:$0xff] }
 0x130   :  { %v1470_v23 = vmul.f32 %v1469_v21, %v1467_v37  ;;  %v2058_v29 = vadd.f32 %v1967_v39, %v1963_v15  ;;  %v2081_v17 = vadd.f32 %v2080_v59, %v1963_v15  ;;  %v1406_v63 = vadd.f32 %v1405_v28, %v1383_v46 }
 0x131   :  { %v1969_v19 = vmul.f32 0.5, %v1968_v10  ;;  %v1992_v51 = vmul.f32 0.5, %v1991_v13  ;;  %v2014_v61 = vmul.f32 0.5, %v2013_v6  ;;  %v2037_v2 = vmul.f32 0.5, %v2036_v57 }
 0x132   :  { %v1490_v54 = vmax.f32 %v1489_v24, -100.0  ;;  %v2059_v27 = vmul.f32 0.5, %v2058_v29  ;;  %v2082_v5 = vmul.f32 0.5, %v2081_v17  ;;  %v1450_v62 = vsub.f32 0.0, %v1449_v44 }
 0x133   :  { %v1970_v47 = vadd.f32 1.0, %v1969_v19  ;;  %v1993_v43 = vadd.f32 1.0, %v1992_v51  ;;  %v2015_v9 = vadd.f32 1.0, %v2014_v61  ;;  %v2038_v60 = vadd.f32 1.0, %v2037_v2 }
 0x134   :  { %v1471_v34 = vadd.f32 %v1470_v23, %v1468_v58  ;;  %v1491_v40 = vmul.f32 %v1486_v52, %v3734_v22  ;;  %v2060_v41 = vadd.f32 1.0, %v2059_v27  ;;  %v1933_v21 = vadd.f32 %v3836_v4, %v3834_v56  ;;  %v2270_v58 = vld [vmem:[%s3939_s1 + $0x128] sm:$0xff]  ;;  %v2271_v52 = vld [vmem:[%s3939_s1 + $0x130] sm:$0xff] }
 0x135   :  { %v1971_v38 = vmul.f32 0.5, %v1970_v47  ;;  %v1994_v30 = vmul.f32 0.5, %v1993_v43  ;;  %v2016_v31 = vmul.f32 0.5, %v2015_v9  ;;  %v1428_v1 = vadd.f32 %v1427_v16, %v1406_v63 }
 0x136   :  { %v1493_v11 = vmul.f32 %v1492_v50, %v1490_v54  ;;  %v2039_v3 = vmul.f32 0.5, %v2038_v60  ;;  %v2083_v49 = vadd.f32 1.0, %v2082_v5  ;;  %vm1944_vm5 = vcmp.eq.f32.partialorder %v3889_v18, inf }
 0x137   :  { %2417 = vlog2.f32 %v1971_v38  ;;  %v1980_v39 = vsub.f32 1.0, %v1971_v38  ;;  %v2003_v26 = vsub.f32 1.0, %v1994_v30  ;;  %v1947_v56 = vand.u32 2147483648, %v3889_v18 }
 0x138   :  { %v2416_v55 = vpop.eup %2415  ;;  %2419 = vlog2.f32 %v1994_v30  ;;  %v2025_v4 = vsub.f32 1.0, %v2016_v31  ;;  %v2061_v8 = vmul.f32 0.5, %v2060_v41  ;;  %v1934_v14 = vmul.f32 0.5, %v1933_v21 }
 0x139   :  { %v1943_v22 = vmul.f32 %v2416_v55, %v3889_v18  ;;  %vm1946_vm6 = vcmp.eq.f32.partialorder %v3889_v18, 0.0  ;;  %2421 = vlog2.f32 %v1980_v39  ;;  %v2020_v50 = vadd.f32 1.0, %v2268_v45 }
 0x13a   :  { %2423 = vlog2.f32 %v2003_v26  ;;  %v2048_v36 = vsub.f32 1.0, %v2039_v3  ;;  %v2084_v42 = vmul.f32 0.5, %v2083_v49  ;;  %v1451_v20 = vadd.f32 %v1450_v62, %v1428_v1 }
 0x13b   :  { %v1472_v25 = vsub.f32 0.0, %v1471_v34  ;;  %v1945_v48 = vsel %vm1944_vm5, %v3889_v18, %v1943_v22  ;;  %2425 = vlog2.f32 %v2016_v31  ;;  %v1494_v53 = vadd.f32 %v1493_v11, %v1491_v40 }
 0x13c   :  { %v1948_v37 = vsel %vm1946_vm6, %v1947_v56, %v1945_v48  ;;  %2427 = vlog2.f32 %v2025_v4  ;;  %v2070_v15 = vsub.f32 1.0, %v2061_v8  ;;  %v1348_v59 = vmul.f32 0.5, %v3894_v0 }
 0x13d   :  { %v1949_v46 = vadd.f32 %v1948_v37, %v1934_v14  ;;  %v1951_v28 = vsub.f32 %v1934_v14, %v1948_v37  ;;  %2429 = vlog2.f32 %v2039_v3  ;;  %v1999_v18 = vmul.f32 0.5, %v3857_v33 }
 0x13e   :  { %v2043_v16 = vadd.f32 1.0, %v2269_v32  ;;  %2431 = vlog2.f32 %v2048_v36  ;;  %v2093_v24 = vsub.f32 1.0, %v2084_v42  ;;  %v2021_v6 = vmul.f32 0.5, %v2020_v50 }
 0x13f   :  { %v1950_v10 = vand.u32 2147483647, %v1949_v46  ;;  %v1952_v13 = vand.u32 2147483647, %v1951_v28  ;;  %2433 = vlog2.f32 %v2061_v8  ;;  %v1473_v0 = vadd.f32 %v1472_v25, %v1451_v20 }
 0x140   :  { %v1495_v57 = vsub.f32 0.0, %v1494_v53  ;;  %v2065_v44 = vadd.f32 1.0, %v2270_v58  ;;  %2435 = vlog2.f32 %v2070_v15  ;;  %v1349_v29 = vadd.f32 %v1348_v59, %v3716_v12 }
 0x141   :  { %v2418_v23 = vpop.eup %2417  ;;  %v1953_v17 = vadd.f32 %v1952_v13, %v1950_v10  ;;  %v2088_v33 = vadd.f32 1.0, %v2271_v52  ;;  %2437 = vlog2.f32 %v2084_v42  ;;  %v1985_v61 = vsub.f32 1.0, %v3843_v7 }
 0x142   :  { %v2420_v19 = vpop.eup %2419  ;;  %v1978_v51 = vmul.f32 0.6931472, %v2418_v23  ;;  %v2044_v2 = vmul.f32 0.5, %v2043_v16  ;;  %2439 = vlog2.f32 %v2093_v24  ;;  %v2008_v5 = vsub.f32 1.0, %v1999_v18 }
 0x143   :  { %v2422_v63 = vpop.eup %2421  ;;  %v1954_v54 = vmul.f32 0.5, %v1953_v17  ;;  %v2001_v27 = vmul.f32 0.6931472, %v2420_v19  ;;  %v2030_v47 = vsub.f32 1.0, %v2021_v6  ;;  %v1496_v9 = vadd.f32 %v1495_v57, %v1473_v0 }
 0x144   :  { %v2424_v43 = vpop.eup %2423  ;;  %v1979_v60 = vmax.f32 %v1978_v51, -100.0  ;;  %v1982_v62 = vmul.f32 0.6931472, %v2422_v63  ;;  %v2066_v34 = vmul.f32 0.5, %v2065_v44  ;;  %v2089_v38 = vmul.f32 0.5, %v2088_v33 }
 0x145   :  { %v2426_v12 = vpop.eup %2425  ;;  %v1955_v40 = vadd.f32 %v1954_v54, %v1349_v29  ;;  %v2002_v41 = vmax.f32 %v2001_v27, -100.0  ;;  %v2005_v21 = vmul.f32 0.6931472, %v2424_v43  ;;  %v2053_v3 = vsub.f32 1.0, %v2044_v2 }
 0x146   :  { %v2428_v30 = vpop.eup %2427  ;;  %v1983_v31 = vmax.f32 %v1982_v62, -100.0  ;;  %v1984_v1 = vmul.f32 %v1979_v60, %v3843_v7  ;;  %v2023_v11 = vmul.f32 0.6931472, %v2426_v12  ;;  %v2075_v22 = vsub.f32 1.0, %v2066_v34 }
 0x147   :  { %v2430_v49 = vpop.eup %2429  ;;  %v2006_v39 = vmax.f32 %v2005_v21, -100.0  ;;  %v2007_v26 = vmul.f32 %v2002_v41, %v1999_v18  ;;  %v2027_v45 = vmul.f32 0.6931472, %v2428_v30  ;;  %v2105_v55 = vmul.f32 %v1955_v40, %v4077_v35 }
 0x148   :  { %v2432_v56 = vpop.eup %2431  ;;  %v1986_v4 = vmul.f32 %v1985_v61, %v1983_v31  ;;  %v2024_v8 = vmax.f32 %v2023_v11, -100.0  ;;  %v2046_v14 = vmul.f32 0.6931472, %v2430_v49  ;;  %v2098_v25 = vsub.f32 1.0, %v2089_v38 }
 0x149   :  { %v2434_v50 = vpop.eup %2433  ;;  %v2009_v36 = vmul.f32 %v2008_v5, %v2006_v39  ;;  %v2028_v42 = vmax.f32 %v2027_v45, -100.0  ;;  %v2050_v20 = vmul.f32 0.6931472, %v2432_v56  ;;  %2110 = vst [vmem:[%s3940_s2 + $0x8] sm:$0xff] %v2105_v55 }
 0x14a   :  { %v2436_v7 = vpop.eup %2435  ;;  %v1987_v48 = vadd.f32 %v1986_v4, %v1984_v1  ;;  %v2029_v32 = vmul.f32 %v2024_v8, %v2021_v6  ;;  %v2047_v53 = vmax.f32 %v2046_v14, -100.0  ;;  %v2068_v37 = vmul.f32 0.6931472, %v2434_v50 }
 0x14b   :  { %v2438_v15 = vpop.eup %2437  ;;  %v2010_v59 = vadd.f32 %v2009_v36, %v2007_v26  ;;  %v2031_v46 = vmul.f32 %v2030_v47, %v2028_v42  ;;  %v2051_v28 = vmax.f32 %v2050_v20, -100.0  ;;  %v2072_v58 = vmul.f32 0.6931472, %v2436_v7 }
 0x14c   :  { %v2440_v18 = vpop.eup %2439  ;;  %v1988_v16 = vsub.f32 0.0, %v1987_v48  ;;  %v2052_v52 = vmul.f32 %v2047_v53, %v2044_v2  ;;  %v2069_v24 = vmax.f32 %v2068_v37, -100.0  ;;  %v2091_v10 = vmul.f32 0.6931472, %v2438_v15 }
 0x14d   :  { %v2011_v13 = vsub.f32 0.0, %v2010_v59  ;;  %v2032_v0 = vadd.f32 %v2031_v46, %v2029_v32  ;;  %v2054_v57 = vmul.f32 %v2053_v3, %v2051_v28  ;;  %v2073_v44 = vmax.f32 %v2072_v58, -100.0 }
 0x14e   :  { %v1989_v23 = vadd.f32 %v1988_v16, %v1496_v9  ;;  %v2074_v29 = vmul.f32 %v2069_v24, %v2066_v34  ;;  %v2092_v17 = vmax.f32 %v2091_v10, -100.0  ;;  %v2095_v6 = vmul.f32 0.6931472, %v2440_v18 }
 0x14f   :  { %v2033_v33 = vsub.f32 0.0, %v2032_v0  ;;  %v2055_v19 = vadd.f32 %v2054_v57, %v2052_v52  ;;  %v2076_v51 = vmul.f32 %v2075_v22, %v2073_v44 }
 0x150   :  { %v2012_v61 = vadd.f32 %v2011_v13, %v1989_v23  ;;  %v2096_v63 = vmax.f32 %v2095_v6, -100.0  ;;  %v2097_v54 = vmul.f32 %v2092_v17, %v2089_v38 }
 0x151   :  { %v2056_v27 = vsub.f32 0.0, %v2055_v19  ;;  %v2077_v5 = vadd.f32 %v2076_v51, %v2074_v29 }
 0x152   :  { %v2034_v47 = vadd.f32 %v2033_v33, %v2012_v61  ;;  %v2099_v2 = vmul.f32 %v2098_v25, %v2096_v63 }
 0x153   :  { %v2078_v43 = vsub.f32 0.0, %v2077_v5 }
 0x154   :  { %v2057_v60 = vadd.f32 %v2056_v27, %v2034_v47  ;;  %v2100_v62 = vadd.f32 %v2099_v2, %v2097_v54 }
 0x156   :  { %v2079_v12 = vadd.f32 %v2078_v43, %v2057_v60  ;;  %v2101_v40 = vsub.f32 0.0, %v2100_v62 }
 0x158   :  { %v2102_v41 = vadd.f32 %v2101_v40, %v2079_v12 }
 0x15a   :  { %v2107_v9 = vmul.f32 %v2102_v41, %v4077_v35 }
 0x15c   :  { %2111 = vst [vmem:[%s3940_s2 + $0x10] sm:$0xff] %v2107_v9 }

</bundles_post_ra>
